<compile_context>
chip_gen: v5e
topology: v5e:2x2
jax: 0.10.0
libtpu: 0.0.40
codegen_flags: <defaults>
</compile_context>

<pallas_src>
import functools
import math

import jax
import jax.numpy as jnp
from jax.experimental import pallas as pl
from jax.experimental.pallas import tpu as pltpu


def _encoder_layer_kernel(x_ref, mask_ref,
                          g1_ref, bt1_ref,
                          wqkv_ref, bqkv_ref, wo_ref, bo_ref,
                          g2_ref, bt2_ref,
                          w1_ref, bb1_ref, w2_ref, bb2_ref,
                          o_ref, attn_ref, *, num_heads: int, ffn_chunk: int):
    """One grid step == one batch element. S x D activations fit in one VMEM tile."""
    f32 = jnp.float32
    bf16 = jnp.bfloat16

    x = x_ref[0].astype(f32)              # (S, D)
    add_mask = mask_ref[0]                # (1, S) additive mask: 0 (real) / -1e30 (pad)

    S, D = x.shape
    H = num_heads
    hd = D // H

    def layer_norm(v, g_ref, b_ref):
        # Fused single-pass statistics: var = E[x^2] - E[x]^2.
        mu = jnp.mean(v, axis=-1, keepdims=True)
        ms = jnp.mean(v * v, axis=-1, keepdims=True)
        var = ms - mu * mu
        return (v - mu) * jax.lax.rsqrt(var + 1e-5) * g_ref[...] + b_ref[...]

    # ---- pre-norm1 + fused qkv projection (do_selfattn=True) ----
    # softmax scale already folded into the q columns of wqkv/bqkv by the wrapper.
    xb = layer_norm(x, g1_ref, bt1_ref).astype(bf16)
    q_all = (jnp.dot(xb, wqkv_ref[:, :D], preferred_element_type=f32)
             + bqkv_ref[:, :D]).astype(bf16)
    k_all = (jnp.dot(xb, wqkv_ref[:, D:2 * D], preferred_element_type=f32)
             + bqkv_ref[:, D:2 * D]).astype(bf16)
    v_all = (jnp.dot(xb, wqkv_ref[:, 2 * D:], preferred_element_type=f32)
             + bqkv_ref[:, 2 * D:]).astype(bf16)

    # Hoisted mask broadcast: one (1,S)->(S,S) broadcast for all heads.
    mask_b = jnp.broadcast_to(add_mask, (S, S))

    # ---- per-head scaled-dot-product attention, lane-dense head groups ----
    G = max(1, 128 // hd)                  # heads per group -> >=128-lane-wide stores
    for g0 in range(0, H, G):
        gend = min(g0 + G, H)
        outs = []
        for h in range(g0, gend):
            sl = slice(h * hd, (h + 1) * hd)
            q_h, k_h, v_h = q_all[:, sl], k_all[:, sl], v_all[:, sl]
            # q @ k^T via contraction — no explicit transpose materialized.
            s = jax.lax.dot_general(q_h, k_h, (((1,), (1,)), ((), ())),
                                    preferred_element_type=f32)
            s = s + mask_b                               # (S, S) f32
            m = jnp.max(s, axis=-1, keepdims=True)
            p = jnp.exp(s - m)
            inv = pl.reciprocal(jnp.sum(p, axis=-1, keepdims=True), approx=True)
            w = (p * inv).astype(bf16)
            outs.append(jnp.dot(w, v_h, preferred_element_type=f32))
        grp = outs[0] if len(outs) == 1 else jnp.concatenate(outs, axis=-1)
        attn_ref[:, g0 * hd:gend * hd] = grp.astype(bf16)   # lane-dense slab store

    # ---- output projection + residual ----
    attn_out = (jnp.dot(attn_ref[...], wo_ref[...], preferred_element_type=f32)
                + bo_ref[...])
    h1 = x + attn_out

    # ---- pre-norm2 + feed-forward (chunked over ffn_dim) + residual ----
    yb = layer_norm(h1, g2_ref, bt2_ref).astype(bf16)
    ffn_dim = w1_ref.shape[1]
    ff = jnp.zeros((S, D), f32)
    for c0 in range(0, ffn_dim, ffn_chunk):
        c1 = min(c0 + ffn_chunk, ffn_dim)
        hmid = (jnp.dot(yb, w1_ref[:, c0:c1], preferred_element_type=f32)
                + bb1_ref[:, c0:c1])
        hmid = jax.nn.gelu(hmid)            # f32 elementwise (v5e has no bf16 VPU/EUP)
        ff = ff + jnp.dot(hmid.astype(bf16), w2_ref[c0:c1, :],
                          preferred_element_type=f32)
    ff = ff + bb2_ref[...]

    o_ref[0] = (h1 + ff).astype(o_ref.dtype)


def transformer_encoder_layer(x, kv_mask, params, *, num_heads: int):
    """Pallas wrapper. x: (B, S, D) float32, kv_mask: (B, S) bool or None."""
    B, S, D = x.shape
    (wqkv, bqkv, wo, bo, g1, bt1, g2, bt2, w1, bb1, w2, bb2) = params
    ffn_dim = w1.shape[1]
    bf16 = jnp.bfloat16

    # Additive mask precomputed on the host side of the kernel boundary; finite
    # sentinel avoids NaN for fully-masked rows.
    if kv_mask is None:
        add_mask = jnp.zeros((B, 1, S), jnp.float32)
    else:
        add_mask = jnp.where(kv_mask, 0.0, -1e30).astype(jnp.float32).reshape(B, 1, S)

    # Fold the 1/sqrt(head_dim) softmax scale into the q projection (free at runtime).
    scale = 1.0 / math.sqrt(D // num_heads)
    wqkv_s = jnp.concatenate([wqkv[:, :D] * scale, wqkv[:, D:]], axis=1).astype(bf16)
    bqkv_s = jnp.concatenate([bqkv[:, :D] * scale, bqkv[:, D:]], axis=1)

    def seq_spec():
        return pl.BlockSpec((1, S, D), lambda b: (b, 0, 0))

    def const_spec(shape):
        # Grid-invariant operand: single-buffer it (no point double-buffering).
        return pl.BlockSpec(shape, lambda b: (0,) * len(shape),
                            pipeline_mode=pl.Buffered(1))

    in_specs = [
        seq_spec(),                                         # x
        pl.BlockSpec((1, 1, S), lambda b: (b, 0, 0)),       # additive mask
        const_spec((1, D)), const_spec((1, D)),             # norm1 gamma / beta
        const_spec((D, 3 * D)), const_spec((1, 3 * D)),     # fused qkv linear
        const_spec((D, D)), const_spec((1, D)),             # attention out linear
        const_spec((1, D)), const_spec((1, D)),             # norm2 gamma / beta
        const_spec((D, ffn_dim)), const_spec((1, ffn_dim)), # ffn linear 1
        const_spec((ffn_dim, D)), const_spec((1, D)),       # ffn linear 2
    ]

    # VMEM limit: ~85% of physical capacity (leaves headroom for compiler scratch);
    # ~109 MiB on v5e/v6e, ~54 MiB on v7x.
    try:
        vmem_cap = int(pltpu.get_tpu_info().vmem_capacity_bytes)
    except Exception:
        vmem_cap = 64 * 1024 * 1024
    vmem_limit = int(vmem_cap * 0.85)

    kernel = functools.partial(_encoder_layer_kernel, num_heads=num_heads,
                               ffn_chunk=min(ffn_dim, 512))

    return pl.pallas_call(
        kernel,
        out_shape=jax.ShapeDtypeStruct((B, S, D), x.dtype),
        grid_spec=pltpu.PrefetchScalarGridSpec(
            num_scalar_prefetch=0,
            grid=(B,),
            in_specs=in_specs,
            out_specs=seq_spec(),
            scratch_shapes=[pltpu.VMEM((S, D), jnp.bfloat16)],  # head-group output slab
        ),
        compiler_params=pltpu.CompilerParams(
            dimension_semantics=("parallel",),
            vmem_limit_bytes=vmem_limit,
        ),
    )(x, add_mask,
      g1, bt1,
      wqkv_s, bqkv_s, wo.astype(bf16), bo,
      g2, bt2,
      w1.astype(bf16), bb1, w2.astype(bf16), bb2)


def encoder_layer_reference(x, kv_mask, params, *, num_heads: int):
    """Pure-JAX reference mirroring the PyTorch forward (bf16 MXU operands, f32 accum)."""
    (wqkv, bqkv, wo, bo, g1, bt1, g2, bt2, w1, bb1, w2, bb2) = params
    B, S, D = x.shape
    hd = D // num_heads
    bf16 = jnp.bfloat16
    f32 = jnp.float32

    def ln(v, g, b):
        mu = v.mean(-1, keepdims=True)
        var = ((v - mu) ** 2).mean(-1, keepdims=True)
        return (v - mu) * jax.lax.rsqrt(var + 1e-5) * g + b

    xn = ln(x, g1, bt1)
    qkv = jnp.dot(xn.astype(bf16), wqkv.astype(bf16), preferred_element_type=f32) + bqkv
    q, k, v = jnp.split(qkv, 3, axis=-1)
    q = q.reshape(B, S, num_heads, hd).transpose(0, 2, 1, 3).astype(bf16)
    k = k.reshape(B, S, num_heads, hd).transpose(0, 2, 1, 3).astype(bf16)
    v = v.reshape(B, S, num_heads, hd).transpose(0, 2, 1, 3).astype(bf16)

    s = jnp.einsum("bhqd,bhkd->bhqk", q, k, preferred_element_type=f32) / math.sqrt(hd)
    if kv_mask is not None:
        s = s + jnp.where(kv_mask, 0.0, -1e30)[:, None, None, :]
    w = jax.nn.softmax(s, axis=-1)
    a = jnp.einsum("bhqk,bhkd->bhqd", w.astype(bf16), v, preferred_element_type=f32)
    a = a.transpose(0, 2, 1, 3).reshape(B, S, D)
    attn_out = jnp.dot(a.astype(bf16), wo.astype(bf16), preferred_element_type=f32) + bo
    h1 = x + attn_out

    yn = ln(h1, g2, bt2)
    f = jnp.dot(yn.astype(bf16), w1.astype(bf16), preferred_element_type=f32) + bb1
    f = jax.nn.gelu(f)
    f2 = jnp.dot(f.astype(bf16), w2.astype(bf16), preferred_element_type=f32) + bb2
    return h1 + f2


def init_params(key, model_dim: int, ffn_dim: int):
    """Deterministic nn.Linear-style init: U(-1/sqrt(fan_in), 1/sqrt(fan_in))."""
    D = model_dim
    ks = jax.random.split(key, 8)

    def u(k, shape, fan_in):
        lim = 1.0 / math.sqrt(fan_in)
        return jax.random.uniform(k, shape, jnp.float32, -lim, lim)

    wqkv, bqkv = u(ks[0], (D, 3 * D), D), u(ks[1], (1, 3 * D), D)
    wo, bo = u(ks[2], (D, D), D), u(ks[3], (1, D), D)
    w1, bb1 = u(ks[4], (D, ffn_dim), D), u(ks[5], (1, ffn_dim), D)
    w2, bb2 = u(ks[6], (ffn_dim, D), ffn_dim), u(ks[7], (1, D), ffn_dim)
    g1 = jnp.ones((1, D), jnp.float32)
    bt1 = jnp.zeros((1, D), jnp.float32)
    g2 = jnp.ones((1, D), jnp.float32)
    bt2 = jnp.zeros((1, D), jnp.float32)
    return (wqkv, bqkv, wo, bo, g1, bt1, g2, bt2, w1, bb1, w2, bb2)


if __name__ == "__main__":
    # Lane-dense small shapes: D and S multiples of 128.
    B, S, D, H = 2, 128, 128, 4
    FFN = 2 * D

    key = jax.random.PRNGKey(0)
    kx, kp = jax.random.split(key)
    x = jax.random.normal(kx, (B, S, D), jnp.float32)
    # kv padding mask: last 16 positions of batch 1 are padded
    kv_mask = jnp.ones((B, S), bool).at[1, -16:].set(False)

    params = init_params(kp, D, FFN)

    out = transformer_encoder_layer(x, kv_mask, params, num_heads=H)
    out = jax.block_until_ready(out)

    ref = encoder_layer_reference(x, kv_mask, params, num_heads=H)
    assert out.shape == (B, S, D) and out.dtype == jnp.float32
    max_err = float(jnp.max(jnp.abs(out - ref)))
    assert jnp.allclose(out, ref, atol=3e-2, rtol=3e-2), (
        f"mismatch vs JAX reference (max abs err {max_err})")

    print("KERNEL_OK")
</pallas_src>

<mosaic_0001>
module attributes {stable_mosaic.version = 11 : i64} {
  func.func @_encoder_layer_kernel(%arg0: i32, %arg1: memref<1x128x128xf32, #tpu.memory_space<vmem>>, %arg2: memref<1x1x128xf32, #tpu.memory_space<vmem>>, %arg3: memref<1x128xf32, #tpu.memory_space<vmem>>, %arg4: memref<1x128xf32, #tpu.memory_space<vmem>>, %arg5: memref<128x384xbf16, #tpu.memory_space<vmem>>, %arg6: memref<1x384xf32, #tpu.memory_space<vmem>>, %arg7: memref<128x128xbf16, #tpu.memory_space<vmem>>, %arg8: memref<1x128xf32, #tpu.memory_space<vmem>>, %arg9: memref<1x128xf32, #tpu.memory_space<vmem>>, %arg10: memref<1x128xf32, #tpu.memory_space<vmem>>, %arg11: memref<128x256xbf16, #tpu.memory_space<vmem>>, %arg12: memref<1x256xf32, #tpu.memory_space<vmem>>, %arg13: memref<256x128xbf16, #tpu.memory_space<vmem>>, %arg14: memref<1x128xf32, #tpu.memory_space<vmem>>, %arg15: memref<1x128x128xf32, #tpu.memory_space<vmem>>, %arg16: memref<128x128xbf16, #tpu.memory_space<vmem>>) attributes {dimension_semantics = [#tpu.dimension_semantics<parallel>], iteration_bounds = array<i64: 2>, scalar_prefetch = 0 : i64, scratch_operands = 1 : i64, tpu.core_type = #tpu.core_type<tc>, window_params = [{transform_indices = @transform_0, window_bounds = array<i64: 1, 128, 128>}, {transform_indices = @transform_1, window_bounds = array<i64: 1, 1, 128>}, {pipeline_mode = #tpu.pipeline_mode<synchronous>, transform_indices = @transform_2, window_bounds = array<i64: 1, 128>}, {pipeline_mode = #tpu.pipeline_mode<synchronous>, transform_indices = @transform_3, window_bounds = array<i64: 1, 128>}, {pipeline_mode = #tpu.pipeline_mode<synchronous>, transform_indices = @transform_4, window_bounds = array<i64: 128, 384>}, {pipeline_mode = #tpu.pipeline_mode<synchronous>, transform_indices = @transform_5, window_bounds = array<i64: 1, 384>}, {pipeline_mode = #tpu.pipeline_mode<synchronous>, transform_indices = @transform_6, window_bounds = array<i64: 128, 128>}, {pipeline_mode = #tpu.pipeline_mode<synchronous>, transform_indices = @transform_7, window_bounds = array<i64: 1, 128>}, {pipeline_mode = #tpu.pipeline_mode<synchronous>, transform_indices = @transform_8, window_bounds = array<i64: 1, 128>}, {pipeline_mode = #tpu.pipeline_mode<synchronous>, transform_indices = @transform_9, window_bounds = array<i64: 1, 128>}, {pipeline_mode = #tpu.pipeline_mode<synchronous>, transform_indices = @transform_10, window_bounds = array<i64: 128, 256>}, {pipeline_mode = #tpu.pipeline_mode<synchronous>, transform_indices = @transform_11, window_bounds = array<i64: 1, 256>}, {pipeline_mode = #tpu.pipeline_mode<synchronous>, transform_indices = @transform_12, window_bounds = array<i64: 256, 128>}, {pipeline_mode = #tpu.pipeline_mode<synchronous>, transform_indices = @transform_13, window_bounds = array<i64: 1, 128>}, {transform_indices = @transform_14, window_bounds = array<i64: 1, 128, 128>}]} {
    %c0 = arith.constant 0 : index
    %c0_0 = arith.constant 0 : index
    %c0_1 = arith.constant 0 : index
    %0 = vector.load %arg1[%c0, %c0_0, %c0_1] : memref<1x128x128xf32, #tpu.memory_space<vmem>>, vector<1x128x128xf32>
    %1 = vector.shape_cast %0 : vector<1x128x128xf32> to vector<128x128xf32>
    %c0_2 = arith.constant 0 : index
    %c0_3 = arith.constant 0 : index
    %c0_4 = arith.constant 0 : index
    %2 = vector.load %arg2[%c0_2, %c0_3, %c0_4] : memref<1x1x128xf32, #tpu.memory_space<vmem>>, vector<1x1x128xf32>
    %3 = vector.shape_cast %2 : vector<1x1x128xf32> to vector<1x128xf32>
    %cst = arith.constant dense<0.000000e+00> : vector<128xf32>
    %4 = vector.multi_reduction <add>, %1, %cst [1] : vector<128x128xf32> to vector<128xf32>
    %5 = vector.shape_cast %4 : vector<128xf32> to vector<128x1xf32>
    %cst_5 = arith.constant 1.280000e+02 : f32
    %6 = vector.broadcast %cst_5 : f32 to vector<128x1xf32>
    %7 = arith.divf %5, %6 : vector<128x1xf32>
    %8 = arith.mulf %1, %1 : vector<128x128xf32>
    %cst_6 = arith.constant dense<0.000000e+00> : vector<128xf32>
    %9 = vector.multi_reduction <add>, %8, %cst_6 [1] : vector<128x128xf32> to vector<128xf32>
    %10 = vector.shape_cast %9 : vector<128xf32> to vector<128x1xf32>
    %cst_7 = arith.constant 1.280000e+02 : f32
    %11 = vector.broadcast %cst_7 : f32 to vector<128x1xf32>
    %12 = arith.divf %10, %11 : vector<128x1xf32>
    %13 = arith.mulf %7, %7 : vector<128x1xf32>
    %14 = arith.subf %12, %13 : vector<128x1xf32>
    %15 = vector.broadcast %7 : vector<128x1xf32> to vector<128x128xf32>
    %16 = arith.subf %1, %15 : vector<128x128xf32>
    %cst_8 = arith.constant 9.99999974E-6 : f32
    %17 = vector.broadcast %cst_8 : f32 to vector<128x1xf32>
    %18 = arith.addf %14, %17 : vector<128x1xf32>
    %19 = math.rsqrt %18 : vector<128x1xf32>
    %20 = vector.broadcast %19 : vector<128x1xf32> to vector<128x128xf32>
    %21 = arith.mulf %16, %20 : vector<128x128xf32>
    %c0_9 = arith.constant 0 : index
    %c0_10 = arith.constant 0 : index
    %22 = vector.load %arg3[%c0_9, %c0_10] : memref<1x128xf32, #tpu.memory_space<vmem>>, vector<1x128xf32>
    %23 = vector.broadcast %22 : vector<1x128xf32> to vector<128x128xf32>
    %24 = arith.mulf %21, %23 : vector<128x128xf32>
    %c0_11 = arith.constant 0 : index
    %c0_12 = arith.constant 0 : index
    %25 = vector.load %arg4[%c0_11, %c0_12] : memref<1x128xf32, #tpu.memory_space<vmem>>, vector<1x128xf32>
    %26 = vector.broadcast %25 : vector<1x128xf32> to vector<128x128xf32>
    %27 = arith.addf %24, %26 : vector<128x128xf32>
    %28 = arith.truncf %27 : vector<128x128xf32> to vector<128x128xbf16>
    %c0_13 = arith.constant 0 : index
    %c0_14 = arith.constant 0 : index
    %29 = vector.load %arg5[%c0_13, %c0_14] : memref<128x384xbf16, #tpu.memory_space<vmem>>, vector<128x128xbf16>
    %cst_15 = arith.constant dense<0.000000e+00> : vector<128x128xf32>
    %30 = tpu.matmul %28, %29, %cst_15 {dimension_numbers = #tpu.dot_dimension_numbers<[1], [0], [0], [1], [0, 0, 1, 1], [], []>} : vector<128x128xbf16>, vector<128x128xbf16>, vector<128x128xf32> -> vector<128x128xf32>
    %c0_16 = arith.constant 0 : index
    %c0_17 = arith.constant 0 : index
    %31 = vector.load %arg6[%c0_16, %c0_17] : memref<1x384xf32, #tpu.memory_space<vmem>>, vector<1x128xf32>
    %32 = vector.broadcast %31 : vector<1x128xf32> to vector<128x128xf32>
    %33 = arith.addf %30, %32 : vector<128x128xf32>
    %34 = arith.truncf %33 : vector<128x128xf32> to vector<128x128xbf16>
    %c0_18 = arith.constant 0 : index
    %c128 = arith.constant 128 : index
    %35 = vector.load %arg5[%c0_18, %c128] : memref<128x384xbf16, #tpu.memory_space<vmem>>, vector<128x128xbf16>
    %cst_19 = arith.constant dense<0.000000e+00> : vector<128x128xf32>
    %36 = tpu.matmul %28, %35, %cst_19 {dimension_numbers = #tpu.dot_dimension_numbers<[1], [0], [0], [1], [0, 0, 1, 1], [], []>} : vector<128x128xbf16>, vector<128x128xbf16>, vector<128x128xf32> -> vector<128x128xf32>
    %c0_20 = arith.constant 0 : index
    %c128_21 = arith.constant 128 : index
    %37 = vector.load %arg6[%c0_20, %c128_21] : memref<1x384xf32, #tpu.memory_space<vmem>>, vector<1x128xf32>
    %38 = vector.broadcast %37 : vector<1x128xf32> to vector<128x128xf32>
    %39 = arith.addf %36, %38 : vector<128x128xf32>
    %40 = arith.truncf %39 : vector<128x128xf32> to vector<128x128xbf16>
    %c0_22 = arith.constant 0 : index
    %c256 = arith.constant 256 : index
    %41 = vector.load %arg5[%c0_22, %c256] : memref<128x384xbf16, #tpu.memory_space<vmem>>, vector<128x128xbf16>
    %cst_23 = arith.constant dense<0.000000e+00> : vector<128x128xf32>
    %42 = tpu.matmul %28, %41, %cst_23 {dimension_numbers = #tpu.dot_dimension_numbers<[1], [0], [0], [1], [0, 0, 1, 1], [], []>} : vector<128x128xbf16>, vector<128x128xbf16>, vector<128x128xf32> -> vector<128x128xf32>
    %c0_24 = arith.constant 0 : index
    %c256_25 = arith.constant 256 : index
    %43 = vector.load %arg6[%c0_24, %c256_25] : memref<1x384xf32, #tpu.memory_space<vmem>>, vector<1x128xf32>
    %44 = vector.broadcast %43 : vector<1x128xf32> to vector<128x128xf32>
    %45 = arith.addf %42, %44 : vector<128x128xf32>
    %46 = arith.truncf %45 : vector<128x128xf32> to vector<128x128xbf16>
    %47 = vector.shape_cast %3 : vector<1x128xf32> to vector<1x128xf32>
    %48 = vector.broadcast %47 : vector<1x128xf32> to vector<128x128xf32>
    %49 = vector.extract_strided_slice %34 {offsets = [0, 0], sizes = [128, 32], strides = [1, 1]} : vector<128x128xbf16> to vector<128x32xbf16>
    %50 = vector.extract_strided_slice %40 {offsets = [0, 0], sizes = [128, 32], strides = [1, 1]} : vector<128x128xbf16> to vector<128x32xbf16>
    %51 = vector.extract_strided_slice %46 {offsets = [0, 0], sizes = [128, 32], strides = [1, 1]} : vector<128x128xbf16> to vector<128x32xbf16>
    %cst_26 = arith.constant dense<0.000000e+00> : vector<128x128xf32>
    %52 = tpu.matmul %49, %50, %cst_26 {dimension_numbers = #tpu.dot_dimension_numbers<[1], [1], [0], [0], [0, 0, 1, 0], [], []>} : vector<128x32xbf16>, vector<128x32xbf16>, vector<128x128xf32> -> vector<128x128xf32>
    %53 = arith.addf %52, %48 : vector<128x128xf32>
    %cst_27 = arith.constant dense<0xFF800000> : vector<128xf32>
    %54 = vector.multi_reduction <maximumf>, %53, %cst_27 [1] : vector<128x128xf32> to vector<128xf32>
    %55 = vector.shape_cast %54 : vector<128xf32> to vector<128x1xf32>
    %56 = vector.broadcast %55 : vector<128x1xf32> to vector<128x128xf32>
    %57 = arith.subf %53, %56 : vector<128x128xf32>
    %58 = math.exp %57 : vector<128x128xf32>
    %cst_28 = arith.constant dense<0.000000e+00> : vector<128xf32>
    %59 = vector.multi_reduction <add>, %58, %cst_28 [1] : vector<128x128xf32> to vector<128xf32>
    %60 = vector.shape_cast %59 : vector<128xf32> to vector<128x1xf32>
    %61 = tpu.reciprocal %60 {approx = true} : vector<128x1xf32> -> vector<128x1xf32>
    %62 = vector.broadcast %61 : vector<128x1xf32> to vector<128x128xf32>
    %63 = arith.mulf %58, %62 : vector<128x128xf32>
    %64 = arith.truncf %63 : vector<128x128xf32> to vector<128x128xbf16>
    %cst_29 = arith.constant dense<0.000000e+00> : vector<128x32xf32>
    %65 = tpu.matmul %64, %51, %cst_29 {dimension_numbers = #tpu.dot_dimension_numbers<[1], [0], [0], [1], [0, 0, 1, 1], [], []>} : vector<128x128xbf16>, vector<128x32xbf16>, vector<128x32xf32> -> vector<128x32xf32>
    %66 = vector.extract_strided_slice %34 {offsets = [0, 32], sizes = [128, 32], strides = [1, 1]} : vector<128x128xbf16> to vector<128x32xbf16>
    %67 = vector.extract_strided_slice %40 {offsets = [0, 32], sizes = [128, 32], strides = [1, 1]} : vector<128x128xbf16> to vector<128x32xbf16>
    %68 = vector.extract_strided_slice %46 {offsets = [0, 32], sizes = [128, 32], strides = [1, 1]} : vector<128x128xbf16> to vector<128x32xbf16>
    %cst_30 = arith.constant dense<0.000000e+00> : vector<128x128xf32>
    %69 = tpu.matmul %66, %67, %cst_30 {dimension_numbers = #tpu.dot_dimension_numbers<[1], [1], [0], [0], [0, 0, 1, 0], [], []>} : vector<128x32xbf16>, vector<128x32xbf16>, vector<128x128xf32> -> vector<128x128xf32>
    %70 = arith.addf %69, %48 : vector<128x128xf32>
    %cst_31 = arith.constant dense<0xFF800000> : vector<128xf32>
    %71 = vector.multi_reduction <maximumf>, %70, %cst_31 [1] : vector<128x128xf32> to vector<128xf32>
    %72 = vector.shape_cast %71 : vector<128xf32> to vector<128x1xf32>
    %73 = vector.broadcast %72 : vector<128x1xf32> to vector<128x128xf32>
    %74 = arith.subf %70, %73 : vector<128x128xf32>
    %75 = math.exp %74 : vector<128x128xf32>
    %cst_32 = arith.constant dense<0.000000e+00> : vector<128xf32>
    %76 = vector.multi_reduction <add>, %75, %cst_32 [1] : vector<128x128xf32> to vector<128xf32>
    %77 = vector.shape_cast %76 : vector<128xf32> to vector<128x1xf32>
    %78 = tpu.reciprocal %77 {approx = true} : vector<128x1xf32> -> vector<128x1xf32>
    %79 = vector.broadcast %78 : vector<128x1xf32> to vector<128x128xf32>
    %80 = arith.mulf %75, %79 : vector<128x128xf32>
    %81 = arith.truncf %80 : vector<128x128xf32> to vector<128x128xbf16>
    %cst_33 = arith.constant dense<0.000000e+00> : vector<128x32xf32>
    %82 = tpu.matmul %81, %68, %cst_33 {dimension_numbers = #tpu.dot_dimension_numbers<[1], [0], [0], [1], [0, 0, 1, 1], [], []>} : vector<128x128xbf16>, vector<128x32xbf16>, vector<128x32xf32> -> vector<128x32xf32>
    %83 = vector.extract_strided_slice %34 {offsets = [0, 64], sizes = [128, 32], strides = [1, 1]} : vector<128x128xbf16> to vector<128x32xbf16>
    %84 = vector.extract_strided_slice %40 {offsets = [0, 64], sizes = [128, 32], strides = [1, 1]} : vector<128x128xbf16> to vector<128x32xbf16>
    %85 = vector.extract_strided_slice %46 {offsets = [0, 64], sizes = [128, 32], strides = [1, 1]} : vector<128x128xbf16> to vector<128x32xbf16>
    %cst_34 = arith.constant dense<0.000000e+00> : vector<128x128xf32>
    %86 = tpu.matmul %83, %84, %cst_34 {dimension_numbers = #tpu.dot_dimension_numbers<[1], [1], [0], [0], [0, 0, 1, 0], [], []>} : vector<128x32xbf16>, vector<128x32xbf16>, vector<128x128xf32> -> vector<128x128xf32>
    %87 = arith.addf %86, %48 : vector<128x128xf32>
    %cst_35 = arith.constant dense<0xFF800000> : vector<128xf32>
    %88 = vector.multi_reduction <maximumf>, %87, %cst_35 [1] : vector<128x128xf32> to vector<128xf32>
    %89 = vector.shape_cast %88 : vector<128xf32> to vector<128x1xf32>
    %90 = vector.broadcast %89 : vector<128x1xf32> to vector<128x128xf32>
    %91 = arith.subf %87, %90 : vector<128x128xf32>
    %92 = math.exp %91 : vector<128x128xf32>
    %cst_36 = arith.constant dense<0.000000e+00> : vector<128xf32>
    %93 = vector.multi_reduction <add>, %92, %cst_36 [1] : vector<128x128xf32> to vector<128xf32>
    %94 = vector.shape_cast %93 : vector<128xf32> to vector<128x1xf32>
    %95 = tpu.reciprocal %94 {approx = true} : vector<128x1xf32> -> vector<128x1xf32>
    %96 = vector.broadcast %95 : vector<128x1xf32> to vector<128x128xf32>
    %97 = arith.mulf %92, %96 : vector<128x128xf32>
    %98 = arith.truncf %97 : vector<128x128xf32> to vector<128x128xbf16>
    %cst_37 = arith.constant dense<0.000000e+00> : vector<128x32xf32>
    %99 = tpu.matmul %98, %85, %cst_37 {dimension_numbers = #tpu.dot_dimension_numbers<[1], [0], [0], [1], [0, 0, 1, 1], [], []>} : vector<128x128xbf16>, vector<128x32xbf16>, vector<128x32xf32> -> vector<128x32xf32>
    %100 = vector.extract_strided_slice %34 {offsets = [0, 96], sizes = [128, 32], strides = [1, 1]} : vector<128x128xbf16> to vector<128x32xbf16>
    %101 = vector.extract_strided_slice %40 {offsets = [0, 96], sizes = [128, 32], strides = [1, 1]} : vector<128x128xbf16> to vector<128x32xbf16>
    %102 = vector.extract_strided_slice %46 {offsets = [0, 96], sizes = [128, 32], strides = [1, 1]} : vector<128x128xbf16> to vector<128x32xbf16>
    %cst_38 = arith.constant dense<0.000000e+00> : vector<128x128xf32>
    %103 = tpu.matmul %100, %101, %cst_38 {dimension_numbers = #tpu.dot_dimension_numbers<[1], [1], [0], [0], [0, 0, 1, 0], [], []>} : vector<128x32xbf16>, vector<128x32xbf16>, vector<128x128xf32> -> vector<128x128xf32>
    %104 = arith.addf %103, %48 : vector<128x128xf32>
    %cst_39 = arith.constant dense<0xFF800000> : vector<128xf32>
    %105 = vector.multi_reduction <maximumf>, %104, %cst_39 [1] : vector<128x128xf32> to vector<128xf32>
    %106 = vector.shape_cast %105 : vector<128xf32> to vector<128x1xf32>
    %107 = vector.broadcast %106 : vector<128x1xf32> to vector<128x128xf32>
    %108 = arith.subf %104, %107 : vector<128x128xf32>
    %109 = math.exp %108 : vector<128x128xf32>
    %cst_40 = arith.constant dense<0.000000e+00> : vector<128xf32>
    %110 = vector.multi_reduction <add>, %109, %cst_40 [1] : vector<128x128xf32> to vector<128xf32>
    %111 = vector.shape_cast %110 : vector<128xf32> to vector<128x1xf32>
    %112 = tpu.reciprocal %111 {approx = true} : vector<128x1xf32> -> vector<128x1xf32>
    %113 = vector.broadcast %112 : vector<128x1xf32> to vector<128x128xf32>
    %114 = arith.mulf %109, %113 : vector<128x128xf32>
    %115 = arith.truncf %114 : vector<128x128xf32> to vector<128x128xbf16>
    %cst_41 = arith.constant dense<0.000000e+00> : vector<128x32xf32>
    %116 = tpu.matmul %115, %102, %cst_41 {dimension_numbers = #tpu.dot_dimension_numbers<[1], [0], [0], [1], [0, 0, 1, 1], [], []>} : vector<128x128xbf16>, vector<128x32xbf16>, vector<128x32xf32> -> vector<128x32xf32>
    %117 = tpu.concatenate %65, %82, %99, %116 in 1 : vector<128x32xf32>, vector<128x32xf32>, vector<128x32xf32>, vector<128x32xf32> -> vector<128x128xf32>
    %118 = arith.truncf %117 : vector<128x128xf32> to vector<128x128xbf16>
    %c0_42 = arith.constant 0 : index
    %c0_43 = arith.constant 0 : index
    %119 = vector.load %arg16[%c0_42, %c0_43] : memref<128x128xbf16, #tpu.memory_space<vmem>>, vector<128x128xbf16>
    tpu.vector_store %arg16[%c0_42, %c0_43], %118 {strides = array<i32>} : memref<128x128xbf16, #tpu.memory_space<vmem>>, vector<128x128xbf16>,
    %c0_44 = arith.constant 0 : index
    %c0_45 = arith.constant 0 : index
    %120 = vector.load %arg16[%c0_44, %c0_45] : memref<128x128xbf16, #tpu.memory_space<vmem>>, vector<128x128xbf16>
    %c0_46 = arith.constant 0 : index
    %c0_47 = arith.constant 0 : index
    %121 = vector.load %arg7[%c0_46, %c0_47] : memref<128x128xbf16, #tpu.memory_space<vmem>>, vector<128x128xbf16>
    %cst_48 = arith.constant dense<0.000000e+00> : vector<128x128xf32>
    %122 = tpu.matmul %120, %121, %cst_48 {dimension_numbers = #tpu.dot_dimension_numbers<[1], [0], [0], [1], [0, 0, 1, 1], [], []>} : vector<128x128xbf16>, vector<128x128xbf16>, vector<128x128xf32> -> vector<128x128xf32>
    %c0_49 = arith.constant 0 : index
    %c0_50 = arith.constant 0 : index
    %123 = vector.load %arg8[%c0_49, %c0_50] : memref<1x128xf32, #tpu.memory_space<vmem>>, vector<1x128xf32>
    %124 = vector.broadcast %123 : vector<1x128xf32> to vector<128x128xf32>
    %125 = arith.addf %122, %124 : vector<128x128xf32>
    %126 = arith.addf %1, %125 : vector<128x128xf32>
    %cst_51 = arith.constant dense<0.000000e+00> : vector<128xf32>
    %127 = vector.multi_reduction <add>, %126, %cst_51 [1] : vector<128x128xf32> to vector<128xf32>
    %128 = vector.shape_cast %127 : vector<128xf32> to vector<128x1xf32>
    %cst_52 = arith.constant 1.280000e+02 : f32
    %129 = vector.broadcast %cst_52 : f32 to vector<128x1xf32>
    %130 = arith.divf %128, %129 : vector<128x1xf32>
    %131 = arith.mulf %126, %126 : vector<128x128xf32>
    %cst_53 = arith.constant dense<0.000000e+00> : vector<128xf32>
    %132 = vector.multi_reduction <add>, %131, %cst_53 [1] : vector<128x128xf32> to vector<128xf32>
    %133 = vector.shape_cast %132 : vector<128xf32> to vector<128x1xf32>
    %cst_54 = arith.constant 1.280000e+02 : f32
    %134 = vector.broadcast %cst_54 : f32 to vector<128x1xf32>
    %135 = arith.divf %133, %134 : vector<128x1xf32>
    %136 = arith.mulf %130, %130 : vector<128x1xf32>
    %137 = arith.subf %135, %136 : vector<128x1xf32>
    %138 = vector.broadcast %130 : vector<128x1xf32> to vector<128x128xf32>
    %139 = arith.subf %126, %138 : vector<128x128xf32>
    %cst_55 = arith.constant 9.99999974E-6 : f32
    %140 = vector.broadcast %cst_55 : f32 to vector<128x1xf32>
    %141 = arith.addf %137, %140 : vector<128x1xf32>
    %142 = math.rsqrt %141 : vector<128x1xf32>
    %143 = vector.broadcast %142 : vector<128x1xf32> to vector<128x128xf32>
    %144 = arith.mulf %139, %143 : vector<128x128xf32>
    %c0_56 = arith.constant 0 : index
    %c0_57 = arith.constant 0 : index
    %145 = vector.load %arg9[%c0_56, %c0_57] : memref<1x128xf32, #tpu.memory_space<vmem>>, vector<1x128xf32>
    %146 = vector.broadcast %145 : vector<1x128xf32> to vector<128x128xf32>
    %147 = arith.mulf %144, %146 : vector<128x128xf32>
    %c0_58 = arith.constant 0 : index
    %c0_59 = arith.constant 0 : index
    %148 = vector.load %arg10[%c0_58, %c0_59] : memref<1x128xf32, #tpu.memory_space<vmem>>, vector<1x128xf32>
    %149 = vector.broadcast %148 : vector<1x128xf32> to vector<128x128xf32>
    %150 = arith.addf %147, %149 : vector<128x128xf32>
    %151 = arith.truncf %150 : vector<128x128xf32> to vector<128x128xbf16>
    %cst_60 = arith.constant 0.000000e+00 : f32
    %152 = vector.broadcast %cst_60 : f32 to vector<128x128xf32>
    %c0_61 = arith.constant 0 : index
    %c0_62 = arith.constant 0 : index
    %153 = vector.load %arg11[%c0_61, %c0_62] : memref<128x256xbf16, #tpu.memory_space<vmem>>, vector<128x256xbf16>
    %cst_63 = arith.constant dense<0.000000e+00> : vector<128x256xf32>
    %154 = tpu.matmul %151, %153, %cst_63 {dimension_numbers = #tpu.dot_dimension_numbers<[1], [0], [0], [1], [0, 0, 1, 1], [], []>} : vector<128x128xbf16>, vector<128x256xbf16>, vector<128x256xf32> -> vector<128x256xf32>
    %c0_64 = arith.constant 0 : index
    %c0_65 = arith.constant 0 : index
    %155 = vector.load %arg12[%c0_64, %c0_65] : memref<1x256xf32, #tpu.memory_space<vmem>>, vector<1x256xf32>
    %156 = vector.broadcast %155 : vector<1x256xf32> to vector<128x256xf32>
    %157 = arith.addf %154, %156 : vector<128x256xf32>
    %158 = arith.mulf %157, %157 : vector<128x256xf32>
    %159 = arith.mulf %157, %158 : vector<128x256xf32>
    %cst_66 = arith.constant 4.471500e-02 : f32
    %160 = vector.broadcast %cst_66 : f32 to vector<128x256xf32>
    %161 = arith.mulf %160, %159 : vector<128x256xf32>
    %162 = arith.addf %157, %161 : vector<128x256xf32>
    %cst_67 = arith.constant 0.797884583 : f32
    %163 = vector.broadcast %cst_67 : f32 to vector<128x256xf32>
    %164 = arith.mulf %163, %162 : vector<128x256xf32>
    %165 = math.tanh %164 : vector<128x256xf32>
    %cst_68 = arith.constant 1.000000e+00 : f32
    %166 = vector.broadcast %cst_68 : f32 to vector<128x256xf32>
    %167 = arith.addf %166, %165 : vector<128x256xf32>
    %cst_69 = arith.constant 5.000000e-01 : f32
    %168 = vector.broadcast %cst_69 : f32 to vector<128x256xf32>
    %169 = arith.mulf %168, %167 : vector<128x256xf32>
    %170 = arith.mulf %157, %169 : vector<128x256xf32>
    %171 = arith.truncf %170 : vector<128x256xf32> to vector<128x256xbf16>
    %c0_70 = arith.constant 0 : index
    %c0_71 = arith.constant 0 : index
    %172 = vector.load %arg13[%c0_70, %c0_71] : memref<256x128xbf16, #tpu.memory_space<vmem>>, vector<256x128xbf16>
    %cst_72 = arith.constant dense<0.000000e+00> : vector<128x128xf32>
    %173 = tpu.matmul %171, %172, %cst_72 {dimension_numbers = #tpu.dot_dimension_numbers<[1], [0], [0], [1], [0, 0, 1, 1], [], []>} : vector<128x256xbf16>, vector<256x128xbf16>, vector<128x128xf32> -> vector<128x128xf32>
    %174 = arith.addf %152, %173 : vector<128x128xf32>
    %c0_73 = arith.constant 0 : index
    %c0_74 = arith.constant 0 : index
    %175 = vector.load %arg14[%c0_73, %c0_74] : memref<1x128xf32, #tpu.memory_space<vmem>>, vector<1x128xf32>
    %176 = vector.broadcast %175 : vector<1x128xf32> to vector<128x128xf32>
    %177 = arith.addf %174, %176 : vector<128x128xf32>
    %178 = arith.addf %126, %177 : vector<128x128xf32>
    %c0_75 = arith.constant 0 : index
    %c0_76 = arith.constant 0 : index
    %c0_77 = arith.constant 0 : index
    %179 = vector.load %arg15[%c0_75, %c0_76, %c0_77] : memref<1x128x128xf32, #tpu.memory_space<vmem>>, vector<1x128x128xf32>
    %180 = vector.shape_cast %179 : vector<1x128x128xf32> to vector<128x128xf32>
    %181 = vector.shape_cast %178 : vector<128x128xf32> to vector<1x128x128xf32>
    tpu.vector_store %arg15[%c0_75, %c0_76, %c0_77], %181 {strides = array<i32>} : memref<1x128x128xf32, #tpu.memory_space<vmem>>, vector<1x128x128xf32>,
    return
  }
  func.func @transform_0(%arg0: i32) -> (i32, i32, i32) {
    %c0_i32 = arith.constant 0 : i32
    %c0_i32_0 = arith.constant 0 : i32
    %c0_i32_1 = arith.constant 0 : i32
    return %arg0, %c0_i32, %c0_i32_0 : i32, i32, i32
  }
  func.func @transform_1(%arg0: i32) -> (i32, i32, i32) {
    %c0_i32 = arith.constant 0 : i32
    %c0_i32_0 = arith.constant 0 : i32
    %c0_i32_1 = arith.constant 0 : i32
    return %arg0, %c0_i32, %c0_i32_0 : i32, i32, i32
  }
  func.func @transform_2(%arg0: i32) -> (i32, i32) {
    %c0_i32 = arith.constant 0 : i32
    %c0_i32_0 = arith.constant 0 : i32
    %c0_i32_1 = arith.constant 0 : i32
    return %c0_i32, %c0_i32_0 : i32, i32
  }
  func.func @transform_3(%arg0: i32) -> (i32, i32) {
    %c0_i32 = arith.constant 0 : i32
    %c0_i32_0 = arith.constant 0 : i32
    %c0_i32_1 = arith.constant 0 : i32
    return %c0_i32, %c0_i32_0 : i32, i32
  }
  func.func @transform_4(%arg0: i32) -> (i32, i32) {
    %c0_i32 = arith.constant 0 : i32
    %c0_i32_0 = arith.constant 0 : i32
    %c0_i32_1 = arith.constant 0 : i32
    return %c0_i32, %c0_i32_0 : i32, i32
  }
  func.func @transform_5(%arg0: i32) -> (i32, i32) {
    %c0_i32 = arith.constant 0 : i32
    %c0_i32_0 = arith.constant 0 : i32
    %c0_i32_1 = arith.constant 0 : i32
    return %c0_i32, %c0_i32_0 : i32, i32
  }
  func.func @transform_6(%arg0: i32) -> (i32, i32) {
    %c0_i32 = arith.constant 0 : i32
    %c0_i32_0 = arith.constant 0 : i32
    %c0_i32_1 = arith.constant 0 : i32
    return %c0_i32, %c0_i32_0 : i32, i32
  }
  func.func @transform_7(%arg0: i32) -> (i32, i32) {
    %c0_i32 = arith.constant 0 : i32
    %c0_i32_0 = arith.constant 0 : i32
    %c0_i32_1 = arith.constant 0 : i32
    return %c0_i32, %c0_i32_0 : i32, i32
  }
  func.func @transform_8(%arg0: i32) -> (i32, i32) {
    %c0_i32 = arith.constant 0 : i32
    %c0_i32_0 = arith.constant 0 : i32
    %c0_i32_1 = arith.constant 0 : i32
    return %c0_i32, %c0_i32_0 : i32, i32
  }
  func.func @transform_9(%arg0: i32) -> (i32, i32) {
    %c0_i32 = arith.constant 0 : i32
    %c0_i32_0 = arith.constant 0 : i32
    %c0_i32_1 = arith.constant 0 : i32
    return %c0_i32, %c0_i32_0 : i32, i32
  }
  func.func @transform_10(%arg0: i32) -> (i32, i32) {
    %c0_i32 = arith.constant 0 : i32
    %c0_i32_0 = arith.constant 0 : i32
    %c0_i32_1 = arith.constant 0 : i32
    return %c0_i32, %c0_i32_0 : i32, i32
  }
  func.func @transform_11(%arg0: i32) -> (i32, i32) {
    %c0_i32 = arith.constant 0 : i32
    %c0_i32_0 = arith.constant 0 : i32
    %c0_i32_1 = arith.constant 0 : i32
    return %c0_i32, %c0_i32_0 : i32, i32
  }
  func.func @transform_12(%arg0: i32) -> (i32, i32) {
    %c0_i32 = arith.constant 0 : i32
    %c0_i32_0 = arith.constant 0 : i32
    %c0_i32_1 = arith.constant 0 : i32
    return %c0_i32, %c0_i32_0 : i32, i32
  }
  func.func @transform_13(%arg0: i32) -> (i32, i32) {
    %c0_i32 = arith.constant 0 : i32
    %c0_i32_0 = arith.constant 0 : i32
    %c0_i32_1 = arith.constant 0 : i32
    return %c0_i32, %c0_i32_0 : i32, i32
  }
  func.func @transform_14(%arg0: i32) -> (i32, i32, i32) {
    %c0_i32 = arith.constant 0 : i32
    %c0_i32_0 = arith.constant 0 : i32
    %c0_i32_1 = arith.constant 0 : i32
    return %arg0, %c0_i32, %c0_i32_0 : i32, i32, i32
  }
}

</mosaic_0001>

<bundles_post_ra>
// kernel: tpu_custom_call.1
= control target key start
LH: loop header
LB: loop body
LE: loop exit
PB: predicated region body
PF: predicated region fallthrough
CT: control target
= control target key end

     0   :  { %s8940_s0 = inlined_call_operand.hbm [shape: f32[2,128,128], index: 0, kind: input, shape index: {}]   ;;  %s8941_s1 = inlined_call_operand.hbm [shape: f32[2,1,128], index: 1, kind: input, shape index: {}]   ;;  %s8942_s2 = inlined_call_operand.hbm [shape: f32[1,128], index: 2, kind: input, shape index: {}]   ;;  %s8943_s3 = inlined_call_operand.hbm [shape: f32[1,128], index: 3, kind: input, shape index: {}]   ;;  %s8944_s4 = inlined_call_operand.hbm [shape: bf16[128,384], index: 4, kind: input, shape index: {}]   ;;  %s8945_s5 = inlined_call_operand.vmem [shape: f32[1,384], index: 5, kind: input, shape index: {}]   ;;  %s8946_s6 = inlined_call_operand.hbm [shape: bf16[128,128], index: 6, kind: input, shape index: {}]   ;;  %s8947_s7 = inlined_call_operand.vmem [shape: f32[1,128], index: 7, kind: input, shape index: {}]   ;;  %s8948_s8 = inlined_call_operand.vmem [shape: f32[1,128], index: 8, kind: input, shape index: {}]   ;;  %s8949_s9 = inlined_call_operand.vmem [shape: f32[1,128], index: 9, kind: input, shape index: {}]   ;;  %s8950_s10 = inlined_call_operand.hbm [shape: bf16[128,256], index: 10, kind: input, shape index: {}]   ;;  %s8951_s11 = inlined_call_operand.vmem [shape: f32[1,256], index: 11, kind: input, shape index: {}]   ;;  %s8952_s12 = inlined_call_operand.hbm [shape: bf16[256,128], index: 12, kind: input, shape index: {}]   ;;  %s8953_s13 = inlined_call_operand.vmem [shape: f32[1,128], index: 13, kind: input, shape index: {}]   ;;  %s8954_s14 = inlined_call_operand.hbm [shape: f32[2,128,128], index: 14, kind: output, shape index: {}]  }
   0x1   :  { %8966 = sst [smem:[#allocation33_spill]] %s8940_s0 }
   0x2   :  { %8967 = sst [smem:[#allocation34_spill]] %s8942_s2 }
   0x3   :  { %8968 = sst [smem:[#allocation35_spill]] %s8943_s3 }
   0x4   :  { %8969 = sst [smem:[#allocation36_spill]] %s8944_s4 }
   0x5   :  { %8970 = sst [smem:[#allocation37_spill]] %s8946_s6 }
   0x6   :  { %8971 = sst [smem:[#allocation38_spill]] %s8950_s10 }
   0x7   :  { %8972 = sst [smem:[#allocation39_spill]] %s8951_s11 }
   0x8   :  { %8973 = sst [smem:[#allocation40_spill]] %s8952_s12 }
   0x9   :  { %8974 = sst [smem:[#allocation41_spill]] %s8953_s13 }
   0xa   :  { %8975 = sst [smem:[#allocation42_spill]] %s8954_s14 }
   0xb   :  { %19 = vsyncpa [#allocation4], 0 }
   0xc   :  { %21 = vsyncpa [#allocation4 + $0x1], 0 }
   0xd   :  { %22 = vsyncpa [#allocation7], 0 }
   0xe   :  { %24 = vsyncpa [#allocation7 + $0x1], 0 }
   0xf   :  { %25 = vsyncpa [#allocation10], 0 }
  0x10   :  { %26 = vsyncpa [#allocation13], 0 }
  0x11   :  { %27 = vsyncpa [#allocation16], 0 }
  0x12   :  { %28 = vsyncpa [#allocation5], 0 }
  0x13   :  { %30 = vsyncpa [#allocation5 + $0x1], 0  ;;  %s6290_s29 = smov 0   ;;  %s6292_s30 = smov 0  }
  0x14   :  { %s6294_s15 = smov 0   ;;  %s6296_s16 = smov 0  }
  0x15 LB: > { %8976 = sst [smem:[#allocation25_spill]] %s6191_s15  ;;  %s6314_s20 = sadd.s32 4294967295, %s6195_s16   ;;  %s6195_s16 = sphi %s6296_s16, %s9031_s16   ;;  %s6191_s15 = sphi %s6294_s15, %s9033_s15   ;;  %s6187_s30 = sphi %s6292_s30, %s9035_s30   ;;  %s6183_s29 = sphi %s6290_s29, %s9034_s29  }
  0x16   : > { %s8977_s2 = sld [smem:[#allocation34_spill]]  ;;  %p4736_p0 = scmp.ge.s32.totalorder %s6195_s16, 1 }
  0x17   : > { %p57_p1 = scmp.eq.s32.totalorder %s6314_s20, 0  ;;  %p371_p2 = scmp.lt.s32.totalorder %s6195_s16, 3 }
  0x18   : > { %s6197_s22 = smov [#allocation8]   ;;  %s8979_s3 = sld [smem:[#allocation35_spill]] }
  0x19   : > { %p6319_p3 = pnand %p4736_p0, %p371_p2  ;;  %s385_s23 = sshll.u32 %s6197_s22, 4  ;;  %s386_s23 = int_to_ptr.vmem [resolvable:$true] %s385_s23 }
  0x1a   : > { %s6198_s28 = smov [#allocation9]   ;;  %s8981_s6 = sld [smem:[#allocation37_spill]] }
  0x1b   : > { %p5240_p5 = pneg %p6319_p3  ;;  %s397_s17 = sshll.u32 %s6198_s28, 4  ;;  %s398_s17 = int_to_ptr.vmem [resolvable:$true] %s397_s17 }
  0x1c   : > { %s383_s19 = sshll.u32 %s8977_s2, 4  ;;  %s6199_s24 = smov [#allocation12]   ;;  %s384_s19 = int_to_ptr.hbm [resolvable:$true] %s383_s19 }
  0x1d   : > { %p6331_p6 = pnand %p5240_p5, %p57_p1  ;;  %s425_s25 = sshll.u32 %s6199_s24, 4  ;;  %s426_s25 = int_to_ptr.vmem [resolvable:$true] %s425_s25 }
  0x1e   : > { %s395_s26 = sshll.u32 %s8979_s3, 4  ;;  %s8982_s4 = sld [smem:[#allocation36_spill]]  ;;  %s396_s26 = int_to_ptr.hbm [resolvable:$true] %s395_s26 }
  0x1f   : > { %5243 = dma.hbm_to_vmem [thread:$0]  (!%p6331_p6), %s384_s19, 16, %s386_s23, [#allocation7]  }
  0x20   : > { %s423_s2 = sshll.u32 %s8981_s6, 4  ;;  %s6200_s11 = smov 64   ;;  %s424_s2 = int_to_ptr.hbm [resolvable:$true] %s423_s2 }
  0x21   : > { %5246 = dma.hbm_to_vmem [thread:$0]  (!%p6331_p6), %s396_s26, 16, %s398_s17, [#allocation10]  }
  0x22   : > { %s6201_s28 = smov 4   ;;  %s6202_s18 = smov [#allocation11]  }
  0x23   : > { %5252 = dma.hbm_to_vmem [thread:$0]  (!%p6331_p6), %s424_s2, 1024, %s426_s25, [#allocation13], %s6200_s11, %s6200_s11, %s6201_s28  }
  0x24   : > { %s406_s13 = sshll.u32 %s8982_s4, 4  ;;  %s408_s22 = sshll.u32 %s6202_s18, 4  ;;  %s407_s13 = int_to_ptr.hbm [resolvable:$true] %s406_s13  ;;  %s409_s22 = int_to_ptr.vmem [resolvable:$true] %s408_s22 }
  0x25   : > { %s6203_s6 = smov 192   ;;  %s6204_s19 = smov 12  }
  0x26   : > { %5249 = dma.hbm_to_vmem [thread:$0]  (!%p6331_p6), %s407_s13, 3072, %s409_s22, [#allocation10], %s6203_s6, %s6203_s6, %s6204_s19  }
  0x27   : > { %s8983_s10 = sld [smem:[#allocation38_spill]]  ;;  %s6205_s2 = smov [#allocation14]  }
  0x28   : > { %s448_s14 = sshll.u32 %s6205_s2, 4  ;;  %s8984_s12 = sld [smem:[#allocation40_spill]]  ;;  %s449_s14 = int_to_ptr.vmem [resolvable:$true] %s448_s14 }
  0x29   : > { %s8956_s6 = smov 128   ;;  %s8957_s13 = smov 8  }
  0x2a   : > { %s6208_s18 = smov [#allocation15]   ;;  %s4735_s19 = sadd.s32 4294967294, %s6195_s16  }
  0x2b   : > { %s465_s22 = sshll.u32 %s6208_s18, 4  ;;  %s6364_s23 = sadd.s32 1, %s6195_s16   ;;  %s466_s22 = int_to_ptr.vmem [resolvable:$true] %s465_s22 }
  0x2c   : > { %8985 = sst [smem:[#allocation26_spill]] %s6364_s23  ;;  %s40_s26 = ssub.s32 %s6195_s16, %s6364_s23 }
  0x2d   : > { %s446_s3 = sshll.u32 %s8983_s10, 4  ;;  %s43_s2 = sadd.s32 1, %s6191_s15  ;;  %s447_s3 = int_to_ptr.hbm [resolvable:$true] %s446_s3 }
  0x2e   : > { %s463_s25 = sshll.u32 %s8984_s12, 4  ;;  %p41_p7 = scmp.eq.s32.totalorder %s40_s26, 0  ;;  %s464_s25 = int_to_ptr.hbm [resolvable:$true] %s463_s25 }
  0x2f   : > { %5255 = dma.hbm_to_vmem [thread:$0]  (!%p6331_p6), %s447_s3, 2048, %s449_s14, [#allocation13], %s8956_s6, %s8956_s6, %s8957_s13  }
  0x30   : > { %5258 = dma.hbm_to_vmem [thread:$0]  (!%p6331_p6), %s464_s25, 2048, %s466_s22, [#allocation16], %s6200_s11, %s6200_s11, %s6201_s28  }
  0x31   : > { %p50_p8 = scmp.ne.s32.totalorder %s6191_s15, %s6187_s30  ;;  %p51_p9 = scmp.eq.s32.totalorder %s6195_s16, 0 }
  0x32   : > { %p56_p10 = scmp.ne.s32.totalorder %s6187_s30, %s6183_s29  ;;  %p358_p13 = scmp.eq.s32.totalorder %s6314_s20, 1 }
  0x33   : > { %s6375_s3 = scalar_select %p41_p7, %s6191_s15, %s43_s2  }
  0x34   : > { %p6377_p11 = por %p51_p9, %p50_p8  ;;  %p6383_p12 = por %p57_p1, %p56_p10 }
  0x35   : > { %8986 = sst [smem:[#allocation27_spill]] %s6375_s3  ;;  %p364_p0 = scmp.eq.s32.totalorder %s4735_s19, 1 }
  0x36   : > { %p5276_p2 = scmp.lt.s32.totalorder %s6195_s16, 2  ;;  %s6390_s27 = sand.u32 1, %s6191_s15  }
  0x37   : > { %p6392_p5 = por %p358_p13, %p50_p8  ;;  %p6396_p6 = por %p364_p0, %p56_p10 }
  0x38   : > { %s4744_s24 = sshll.u32 %s6390_s27, 7  ;;  %s5081_s25 = sshll.u32 %s6195_s16, 7 }
  0x39   : > { %s8991_s0 = sld [smem:[#allocation33_spill]]  ;;  %s486_s19 = scalar_lea.vmem [#allocation3], %s4744_s24 }
  0x3a   : > { %s494_s2 = sshll.u32 %s486_s19, 4  ;;  %p6407_p7 = pnand %p5276_p2, %p6377_p11  ;;  %s495_s2 = int_to_ptr.vmem [resolvable:$true] %s494_s2 }
  0x3b   : > { %s504_s4 = sand.u32 1, %s6195_s16   ;;  %s483_s10 = scalar_lea.sflag [#allocation4], %s6390_s27 }
  0x3c   : > { %p6053_p9 = pneg %p6407_p7 }
  0x3f   : > { %s491_s26 = scalar_lea.hbm %s8991_s0, %s5081_s25  ;;  %s6056_s25 = scalar_lea.hbm %s8991_s0, 256 }
  0x40   : > { %s492_s6 = sshll.u32 %s491_s26, 4  ;;  %s493_s6 = int_to_ptr.hbm [resolvable:$true] %s492_s6 }
  0x41   : > { %s6049_s12 = sshra.s32 %s493_s6, 4  ;;  %s6050_s12 = int_to_ptr.hbm [resolvable:$true] %s6049_s12 }
  0x42   : > { %s6051_s3 = scalar_lea.hbm %s6050_s12, 128  ;;  %p6057_p11 = scmp.lt.s32.totalorder %s6050_s12, %s8991_s0 }
  0x43   : > { %p6052_p8 = scmp.ne.s32.totalorder %s6050_s12, %s6051_s3  ;;  %p6058_p0 = scmp.lt.s32.totalorder %s6056_s25, %s6051_s3 }
  0x45   : > { %p6054_p10 = pnand %p6053_p9, %p6052_p8  ;;  %p6059_p2 = por %p6058_p0, %p6057_p11 }
  0x47   : > { %p6055_p13 = pneg %p6054_p10 }
  0x49   : > { %p6060_p4 = pnand %p6059_p2, %p6055_p13 }
  0x4b   : > { %6063 = shalt.err (!%p6060_p4)
}
  0x4c   : > { %s8993_s26 = smov 8   ;;  %s8994_s19 = smov 128  }
  0x4d   : > { %5262 = dma.hbm_to_vmem [thread:$0]  (!%p6407_p7), %s493_s6, 2048, %s495_s2, %s483_s10, %s8994_s19, %s8994_s19, %s8993_s26  }
  0x4e   : > { %s510_s14 = scalar_lea.hbm %s8941_s1, %s6195_s16  ;;  %s507_s23 = scalar_lea.vmem [#allocation6], %s6390_s27 }
  0x4f   : > { %s514_s18 = sshll.u32 %s507_s23, 4  ;;  %s512_s12 = sshll.u32 %s510_s14, 4  ;;  %s515_s18 = int_to_ptr.vmem [resolvable:$true] %s514_s18  ;;  %s513_s12 = int_to_ptr.hbm [resolvable:$true] %s512_s12 }
  0x50   : > { %s505_s3 = scalar_lea.sflag [#allocation7], %s504_s4  ;;  %s6079_s25 = sshra.s32 %s513_s12, 4  ;;  %s6080_s25 = int_to_ptr.hbm [resolvable:$true] %s6079_s25 }
  0x51   : > { %s6081_s22 = scalar_lea.hbm %s6080_s25, 1  ;;  %s6086_s6 = scalar_lea.hbm %s8941_s1, 2 }
  0x52   : > { %p6082_p4 = scmp.ne.s32.totalorder %s6080_s25, %s6081_s22  ;;  %p6087_p13 = scmp.lt.s32.totalorder %s6080_s25, %s8941_s1 }
  0x53   : > { %p6088_p11 = scmp.lt.s32.totalorder %s6086_s6, %s6081_s22 }
  0x54   : > { %p6084_p8 = pnand %p6082_p4, %p6053_p9 }
  0x55   : > { %p6089_p0 = por %p6088_p11, %p6087_p13 }
  0x56   : > { %p6085_p10 = pneg %p6084_p8 }
  0x58   : > { %p6090_p2 = pnand %p6089_p0, %p6085_p10 }
  0x5a   : > { %6093 = shalt.err (!%p6090_p2)
}
  0x5b   : > { %5265 = dma.hbm_to_vmem [thread:$0]  (!%p6407_p7), %s513_s12, 16, %s515_s18, %s505_s3  }
  0x5c   : > { %523 = sbr.rel (%p6319_p3) target bundleno = 2537 (0x9e9), region = 76 }
  0x61   : > { %s6448_s4 = sand.u32 1, %s6187_s30  }
  0x62   : > { %s4748_s0 = sshll.u32 %s6448_s4, 7  ;;  %s526_s23 = scalar_lea.sflag [#allocation4], %s6448_s4 }
  0x63   : > { %s6454_s27 = scalar_lea.vmem [#allocation3], %s4748_s0 }
  0x64   : > { %6154 = dma.done.wait (%p6383_p12), %s526_s23, 2048  }
  0x65   : > { %6156 = vsyncadd (%p6383_p12), %s526_s23, 4294965248  ;;  %s535_s21 = sand.u32 1, %s6314_s20   ;;  %s538_s26 = scalar_lea.vmem [#allocation6], %s6448_s4 }
  0x66   : > { %s536_s13 = scalar_lea.sflag [#allocation7], %s535_s21 }
  0x67   : > { %6158 = dma.done.wait (%p6383_p12), %s536_s13, 16  }
  0x68   : > { %6160 = vsyncadd (%p6383_p12), %s536_s13, 4294967280 }
  0x69   : > { %6162 = dma.done.wait (%p57_p1), [#allocation7], 16  }
  0x6a   : > { %6164 = vsyncadd (%p57_p1), [#allocation7], 4294967280 }
  0x6b   : > { %6166 = dma.done.wait (%p57_p1), [#allocation10], 3088  }
  0x6c   : > { %6168 = vsyncadd (%p57_p1), [#allocation10], 4294964208 }
  0x6d   : > { %6170 = dma.done.wait (%p57_p1), [#allocation13], 3072  }
  0x6e   : > { %6172 = vsyncadd (%p57_p1), [#allocation13], 4294964224 }
  0x6f   : > { %6174 = dma.done.wait (%p57_p1), [#allocation16], 2048  }
  0x70   : > { %6176 = vsyncadd (%p57_p1), [#allocation16], 4294965248  ;;  %v6483_v0 = vld [vmem:[%s6454_s27] sm:$0xff]  ;;  %v6486_v1 = vld [vmem:[%s6454_s27 + $0x10] sm:$0xff]  ;;  %v6209_v29 = vmov 128.0   ;;  %s6210_s18 = smov 64  }
  0x71   : > { %635 = vadd.xlane.f32.xlu0 %v6483_v0  ;;  %639 = vadd.xlane.f32.xlu2 %v6486_v1  ;;  %v690_v2 = vmul.f32 %v6483_v0, %v6483_v0  ;;  %v6493_v3 = vld [vmem:[%s6454_s27 + $0x8] sm:$0xff]  ;;  %v6496_v4 = vld [vmem:[%s6454_s27 + $0x18] sm:$0xff]  ;;  %v692_v6 = vmul.f32 %v6486_v1, %v6486_v1  ;;  %v6505_v7 = vld [vmem:[%s6454_s27 + $0x20] sm:$0xff]  ;;  %5464 = vrcp.f32 %v6209_v29  ;;  %s6211_s12 = smov 96   ;;  %s6212_s3 = smov 32  }
  0x72   : > { %v691_v5 = vmul.f32 %v6493_v3, %v6493_v3  ;;  %v693_v8 = vmul.f32 %v6496_v4, %v6496_v4  ;;  %v6511_v9 = vld [vmem:[%s6454_s27 + $0x28] sm:$0xff]  ;;  %v694_v11 = vmul.f32 %v6505_v7, %v6505_v7  ;;  %v6519_v12 = vld [vmem:[%s6454_s27 + $0x30] sm:$0xff]  ;;  %v6524_v14 = vld [vmem:[%s6454_s27 + $0x38] sm:$0xff]  ;;  %s8820_s25 = scalar_lea.vmem [#allocation17], %s4748_s0  ;;  %s5154_s0 = sshll.u32 %s6314_s20, 7 }
  0x73   : > { %706 = vadd.xlane.f32.xlu1 %v690_v2  ;;  %v695_v10 = vmul.f32 %v6511_v9, %v6511_v9  ;;  %v696_v13 = vmul.f32 %v6519_v12, %v6519_v12  ;;  %v697_v15 = vmul.f32 %v6524_v14, %v6524_v14  ;;  %v6531_v16 = vld [vmem:[%s6454_s27 + $0x48] sm:$0xff]  ;;  %v6534_v17 = vld [vmem:[%s6454_s27 + $0x40] sm:$0xff]  ;;  %v6541_v19 = vld [vmem:[%s6454_s27 + $0x50] sm:$0xff]  ;;  %s9029_s6 = sld [smem:[#allocation42_spill]]  ;;  %s4583_s2 = sshll.u32 %s8820_s25, 4  ;;  %s4584_s2 = int_to_ptr.vmem [resolvable:$true] %s4583_s2 }
  0x74   : > { %v698_v18 = vmul.f32 %v6534_v17, %v6534_v17  ;;  %v699_v20 = vmul.f32 %v6531_v16, %v6531_v16  ;;  %v6547_v21 = vld [vmem:[%s6454_s27 + $0x58] sm:$0xff]  ;;  %v700_v23 = vmul.f32 %v6541_v19, %v6541_v19  ;;  %v6555_v24 = vld [vmem:[%s6454_s27 + $0x60] sm:$0xff]  ;;  %v6560_v26 = vld [vmem:[%s6454_s27 + $0x68] sm:$0xff]  ;;  %s4571_s20 = scalar_lea.sflag [#allocation5], %s6448_s4 }
  0x75   : > { %v701_v22 = vmul.f32 %v6547_v21, %v6547_v21  ;;  %v702_v25 = vmul.f32 %v6555_v24, %v6555_v24  ;;  %v703_v27 = vmul.f32 %v6560_v26, %v6560_v26  ;;  %v6567_v28 = vld [vmem:[%s6454_s27 + $0x70] sm:$0xff]  ;;  %v6571_v30 = vld [vmem:[%s6454_s27 + $0x78] sm:$0xff]  ;;  %v5105_v40 = vld [vmem:[#allocation11 + $0xb8] sm:$0xf0] }
  0x76   : > { %v704_v31 = vmul.f32 %v6567_v28, %v6567_v28  ;;  %v705_v32 = vmul.f32 %v6571_v30, %v6571_v30  ;;  %v4786_v34 = vld [vmem:[#allocation11 + $0xa8] sm:$0xf]  ;;  %v5089_v35 = vld [vmem:[#allocation11 + $0xb0] sm:$0xf0]  ;;  %v4818_v36 = vld [vmem:[#allocation11 + $0xac] sm:$0xf] }
  0x77   : > { %v6578_v33 = vpop.eup %5464  ;;  %v4787_v37 = vor.u32 %v5089_v35, %v4786_v34  ;;  %v5097_v38 = vld [vmem:[#allocation11 + $0xb4] sm:$0xf0]  ;;  %v4850_v39 = vld [vmem:[#allocation11 + $0xb0] sm:$0xf]  ;;  %v5088_v45 = vld [vmem:[#allocation11 + $0x98] sm:$0xf0] }
  0x78   : > { %v4819_v41 = vor.u32 %v5097_v38, %v4818_v36  ;;  %v4851_v42 = vor.u32 %v5105_v40, %v4850_v39  ;;  %v668_v43 = vmul.f32 128.0, %v6578_v33  ;;  %v4782_v44 = vld [vmem:[#allocation11 + $0x90] sm:$0xf]  ;;  %v4814_v46 = vld [vmem:[#allocation11 + $0x94] sm:$0xf]  ;;  %vm672_vm0 = vweird.f32 %v6578_v33 }
  0x79   : > { %637 = vadd.xlane.f32.xlu0 %v6493_v3  ;;  %641 = vadd.xlane.f32.xlu2 %v6496_v4  ;;  %v4783_v47 = vor.u32 %v5088_v45, %v4782_v44  ;;  %v5096_v48 = vld [vmem:[#allocation11 + $0x9c] sm:$0xf0]  ;;  %v4846_v49 = vld [vmem:[#allocation11 + $0x98] sm:$0xf]  ;;  %v5104_v50 = vld [vmem:[#allocation11 + $0xa0] sm:$0xf0]  ;;  %s4582_s15 = scalar_lea.hbm %s9029_s6, %s5154_s0 }
  0x7a   : > { %1110 = vmatpush.bf16.msra.mxu0 %v4787_v37  ;;  %1243 = vmatpush.bf16.msra.mxu1 %v4819_v41  ;;  %v4815_v51 = vor.u32 %v5096_v48, %v4814_v46  ;;  %v4847_v52 = vor.u32 %v5104_v50, %v4846_v49  ;;  %v669_v53 = vsub.f32 1.0, %v668_v43  ;;  %v4778_v54 = vld [vmem:[#allocation11 + $0x78] sm:$0xf]  ;;  %v5087_v55 = vld [vmem:[#allocation11 + $0x80] sm:$0xf0]  ;;  %s4585_s23 = sshll.u32 %s4582_s15, 4  ;;  %s4586_s23 = int_to_ptr.hbm [resolvable:$true] %s4585_s23 }
  0x7b   : > { %708 = vadd.xlane.f32.xlu1 %v691_v5  ;;  %1376 = vmatpush.bf16.msra.mxu2 %v4851_v42  ;;  %v4810_v56 = vld [vmem:[#allocation11 + $0x7c] sm:$0xf]  ;;  %v4779_v57 = vor.u32 %v5087_v55, %v4778_v54  ;;  %v5095_v58 = vld [vmem:[#allocation11 + $0x84] sm:$0xf0]  ;;  %v4842_v59 = vld [vmem:[#allocation11 + $0x80] sm:$0xf] }
  0x7c   : > { %v5103_v60 = vld [vmem:[#allocation11 + $0x88] sm:$0xf0]  ;;  %v4811_v61 = vor.u32 %v5095_v58, %v4810_v56  ;;  %v670_v63 = vmul.f32 %v6578_v33, %v669_v53  ;;  %v4774_v2 = vld [vmem:[#allocation11 + $0x60] sm:$0xf]  ;;  %v5093_v29 = vld [vmem:[#allocation11 + $0x54] sm:$0xf0] }
  0x7d   : > { %v4843_v62 = vor.u32 %v5103_v60, %v4842_v59  ;;  %v5086_v5 = vld [vmem:[#allocation11 + $0x68] sm:$0xf0]  ;;  %v4766_v37 = vld [vmem:[#allocation11 + $0x30] sm:$0xf]  ;;  %v5084_v38 = vld [vmem:[#allocation11 + $0x38] sm:$0xf0] }
  0x7e   : > { %1111 = vmatpush.bf16.msra.mxu0 %v4783_v47  ;;  %1244 = vmatpush.bf16.msra.mxu1 %v4815_v51  ;;  %v4798_v39 = vld [vmem:[#allocation11 + $0x34] sm:$0xf]  ;;  %v4767_v40 = vor.u32 %v5084_v38, %v4766_v37  ;;  %v5092_v41 = vld [vmem:[#allocation11 + $0x3c] sm:$0xf0]  ;;  %v4830_v42 = vld [vmem:[#allocation11 + $0x38] sm:$0xf] }
  0x7f   : > { %1377 = vmatpush.bf16.msra.mxu2 %v4847_v52  ;;  %v5100_v43 = vld [vmem:[#allocation11 + $0x40] sm:$0xf0]  ;;  %v4799_v46 = vor.u32 %v5092_v41, %v4798_v39  ;;  %v4762_v50 = vld [vmem:[#allocation11 + $0x18] sm:$0xf]  ;;  %v4794_v52 = vld [vmem:[#allocation11 + $0x1c] sm:$0xf] }
  0x80   : > { %v4831_v47 = vor.u32 %v5100_v43, %v4830_v42  ;;  %v5083_v51 = vld [vmem:[#allocation11 + $0x20] sm:$0xf0]  ;;  %v5091_v55 = vld [vmem:[#allocation11 + $0x24] sm:$0xf0]  ;;  %v4826_v56 = vld [vmem:[#allocation11 + $0x20] sm:$0xf] }
  0x81   : > { %710 = vadd.xlane.f32.xlu0 %v692_v6  ;;  %643 = vadd.xlane.f32.xlu2 %v6505_v7  ;;  %v4806_v6 = vld [vmem:[#allocation11 + $0x64] sm:$0xf]  ;;  %v4763_v54 = vor.u32 %v5083_v51, %v4762_v50  ;;  %v4795_v58 = vor.u32 %v5091_v55, %v4794_v52  ;;  %s6123_s21 = sshra.s32 %s4586_s23, 4  ;;  %s6129_s11 = scalar_lea.hbm %s9029_s6, 256  ;;  %s6124_s21 = int_to_ptr.hbm [resolvable:$true] %s6123_s21 }
  0x82   : > { %1112 = vmatpush.bf16.msra.mxu0 %v4779_v57  ;;  %1245 = vmatpush.bf16.msra.mxu1 %v4811_v61  ;;  %v5099_v57 = vld [vmem:[#allocation11 + $0x28] sm:$0xf0]  ;;  %v4758_v61 = vld [vmem:[#allocation11] sm:$0xf]  ;;  %p6130_p7 = scmp.lt.s32.totalorder %s6124_s21, %s9029_s6 }
  0x83   : > { %712 = vadd.xlane.f32.xlu1 %v693_v8  ;;  %1378 = vmatpush.bf16.msra.mxu2 %v4843_v62  ;;  %v4775_v8 = vor.u32 %v5086_v5, %v4774_v2  ;;  %v4827_v59 = vor.u32 %v5099_v57, %v4826_v56  ;;  %v5082_v62 = vld [vmem:[#allocation11 + $0x8] sm:$0xf0] }
  0x86   : > { %1113 = vmatpush.bf16.msra.mxu0 %v4775_v8  ;;  %v4759_v8 = vor.u32 %v5082_v62, %v4758_v61 }
  0x89   : > { %645 = vadd.xlane.f32.xlu0 %v6511_v9  ;;  %716 = vadd.xlane.f32.xlu2 %v695_v10  ;;  %v5094_v10 = vld [vmem:[#allocation11 + $0x6c] sm:$0xf0] }
  0x8b   : > { %714 = vadd.xlane.f32.xlu1 %v694_v11  ;;  %v4838_v11 = vld [vmem:[#allocation11 + $0x68] sm:$0xf] }
  0x91   : > { %647 = vadd.xlane.f32.xlu0 %v6519_v12  ;;  %718 = vadd.xlane.f32.xlu2 %v696_v13  ;;  %v5102_v13 = vld [vmem:[#allocation11 + $0x70] sm:$0xf0] }
  0x93   : > { %649 = vadd.xlane.f32.xlu1 %v6524_v14 }
  0x99   : > { %720 = vadd.xlane.f32.xlu0 %v697_v15  ;;  %653 = vadd.xlane.f32.xlu2 %v6531_v16  ;;  %v4807_v15 = vor.u32 %v5094_v10, %v4806_v6  ;;  %v5090_v10 = vld [vmem:[#allocation11 + $0xc] sm:$0xf0] }
  0x9b   : > { %651 = vadd.xlane.f32.xlu1 %v6534_v17  ;;  %1246 = vmatpush.bf16.msra.mxu1 %v4807_v15 }
  0xa1   : > { %722 = vadd.xlane.f32.xlu0 %v698_v18  ;;  %655 = vadd.xlane.f32.xlu2 %v6541_v19  ;;  %v4839_v18 = vor.u32 %v5102_v13, %v4838_v11  ;;  %v4822_v11 = vld [vmem:[#allocation11 + $0x8] sm:$0xf] }
  0xa3   : > { %724 = vadd.xlane.f32.xlu1 %v699_v20  ;;  %v671_v20 = vadd.f32 %v6578_v33, %v670_v63  ;;  %1379 = vmatpush.bf16.msra.mxu2 %v4839_v18  ;;  %v4790_v63 = vld [vmem:[#allocation11 + $0x4] sm:$0xf]  ;;  %v5098_v18 = vld [vmem:[#allocation11 + $0x10] sm:$0xf0] }
  0xa4   : > { %v4791_v15 = vor.u32 %v5090_v10, %v4790_v63 }
  0xa5   : > { %v6585_v36 = vsel %vm672_vm0, %v6578_v33, %v671_v20 }
  0xa6   : > { %8995 = vst [vmem:[#allocation28_spill] sm:$0xff] %v6585_v36 }
  0xa9   : > { %657 = vadd.xlane.f32.xlu0 %v6547_v21  ;;  %728 = vadd.xlane.f32.xlu2 %v701_v22  ;;  %v4770_v22 = vld [vmem:[#allocation11 + $0x48] sm:$0xf] }
  0xab   : > { %726 = vadd.xlane.f32.xlu1 %v700_v23  ;;  %v5085_v23 = vld [vmem:[#allocation11 + $0x50] sm:$0xf0] }
  0xb1   : > { %659 = vadd.xlane.f32.xlu0 %v6555_v24  ;;  %730 = vadd.xlane.f32.xlu2 %v702_v25  ;;  %v4802_v25 = vld [vmem:[#allocation11 + $0x4c] sm:$0xf] }
  0xb2   : > { %v4803_v34 = vor.u32 %v5093_v29, %v4802_v25 }
  0xb3   : > { %661 = vadd.xlane.f32.xlu1 %v6560_v26 }
  0xb4   : > { %1247 = vmatpush.bf16.msra.mxu1 %v4803_v34 }
  0xb8   : > { %1248 = vmatpush.bf16.msra.mxu1 %v4799_v46 }
  0xb9   : > { %732 = vadd.xlane.f32.xlu0 %v703_v27  ;;  %665 = vadd.xlane.f32.xlu2 %v6571_v30  ;;  %v4771_v27 = vor.u32 %v5085_v23, %v4770_v22  ;;  %v4823_v22 = vor.u32 %v5098_v18, %v4822_v11 }
  0xbb   : > { %663 = vadd.xlane.f32.xlu1 %v6567_v28  ;;  %1114 = vmatpush.bf16.msra.mxu0 %v4771_v27 }
  0xbc   : > { %1249 = vmatpush.bf16.msra.mxu1 %v4795_v58 }
  0xbf   : > { %1115 = vmatpush.bf16.msra.mxu0 %v4767_v40 }
  0xc0   : > { %1250 = vmatpush.bf16.msra.mxu1 %v4791_v15 }
  0xc1   : > { %734 = vadd.xlane.f32.xlu0 %v704_v31  ;;  %v4834_v31 = vld [vmem:[#allocation11 + $0x50] sm:$0xf] }
  0xc3   : > { %736 = vadd.xlane.f32.xlu1 %v705_v32  ;;  %v5101_v32 = vld [vmem:[#allocation11 + $0x58] sm:$0xf0]  ;;  %1116 = vmatpush.bf16.msra.mxu0 %v4763_v54 }
  0xc4   : > { %v4835_v35 = vor.u32 %v5101_v32, %v4834_v31 }
  0xc6   : > { %1380 = vmatpush.bf16.msra.mxu2 %v4835_v35 }
  0xc7   : > { %1117 = vmatpush.bf16.msra.mxu0 %v4759_v8 }
  0xca   : > { %1381 = vmatpush.bf16.msra.mxu2 %v4831_v47 }
  0xce   : > { %1382 = vmatpush.bf16.msra.mxu2 %v4827_v59 }
  0xd2   : > { %1383 = vmatpush.bf16.msra.mxu2 %v4823_v22 }
  0xe4   : > { %v636_v44 = vpop.xlane.xlu0 %635  ;;  %v640_v45 = vpop.xlane.xlu2 %639 }
  0xe5   : > { %v6588_v48 = vmul.f32 %v6585_v36, %v636_v44  ;;  %v6597_v23 = vmul.f32 %v6585_v36, %v640_v45 }
  0xe6   : > { %v707_v49 = vpop.xlane.xlu1 %706 }
  0xe7   : > { %v754_v33 = vmul.f32 %v6588_v48, %v6588_v48  ;;  %v738_v53 = vmul.f32 %v707_v49, %v6585_v36  ;;  %v756_v32 = vmul.f32 %v6597_v23, %v6597_v23 }
  0xe9   : > { %v770_v60 = vsub.f32 %v738_v53, %v754_v33 }
  0xeb   : > { %v802_v2 = vadd.f32 1e-05, %v770_v60 }
  0xec   : > { %v638_v5 = vpop.xlane.xlu0 %637  ;;  %v642_v6 = vpop.xlane.xlu2 %641 }
  0xed   : > { %v6594_v13 = vmul.f32 %v6585_v36, %v638_v5  ;;  %5466 = vrsqrt.f32 %v802_v2  ;;  %v6603_v29 = vmul.f32 %v6585_v36, %v642_v6  ;;  %vm824_vm2 = vweird.f32 %v802_v2 }
  0xee   : > { %v709_v20 = vpop.xlane.xlu1 %708 }
  0xef   : > { %v755_v25 = vmul.f32 %v6594_v13, %v6594_v13  ;;  %v739_v27 = vmul.f32 %v709_v20, %v6585_v36  ;;  %v757_v41 = vmul.f32 %v6603_v29, %v6603_v29  ;;  %v786_v20 = vsub.f32 %v6483_v0, %v6588_v48 }
  0xf1   : > { %v771_v31 = vsub.f32 %v739_v27, %v755_v25 }
  0xf3   : > { %v5467_v34 = vpop.eup %5466  ;;  %v803_v35 = vadd.f32 1e-05, %v771_v31 }
  0xf4   : > { %v711_v37 = vpop.xlane.xlu0 %710  ;;  %v644_v38 = vpop.xlane.xlu2 %643  ;;  %v819_v39 = vmul.f32 %v5467_v34, %v802_v2  ;;  %vm825_vm1 = vweird.f32 %v5467_v34 }
  0xf5   : > { %v740_v40 = vmul.f32 %v711_v37, %v6585_v36  ;;  %5468 = vrsqrt.f32 %v803_v35  ;;  %v6614_v49 = vmul.f32 %v6585_v36, %v644_v38  ;;  %vm6631_vm3 = vmor %vm824_vm2, %vm825_vm1  ;;  %vm834_vm5 = vweird.f32 %v803_v35 }
  0xf6   : > { %v713_v42 = vpop.xlane.xlu1 %712  ;;  %v820_v43 = vmul.f32 %v5467_v34, %v819_v39  ;;  %v6651_v39 = vld [vmem:[#allocation8] ss:$0 sm:$0xff] }
  0xf7   : > { %v772_v44 = vsub.f32 %v740_v40, %v756_v32  ;;  %v741_v45 = vmul.f32 %v713_v42, %v6585_v36  ;;  %v758_v56 = vmul.f32 %v6614_v49, %v6614_v49 }
  0xf8   : > { %v821_v46 = vmul.f32 0.5, %v820_v43  ;;  %v787_v43 = vsub.f32 %v6493_v3, %v6594_v13 }
  0xf9   : > { %v6611_v47 = vadd.f32 1e-05, %v772_v44  ;;  %v773_v33 = vsub.f32 %v741_v45, %v757_v41 }
  0xfa   : > { %v822_v50 = vsub.f32 1.5, %v821_v46 }
  0xfb   : > { %5470 = vrsqrt.f32 %v6611_v47  ;;  %v5469_v51 = vpop.eup %5468  ;;  %v6617_v52 = vadd.f32 1e-05, %v773_v33  ;;  %v6664_v33 = vld [vmem:[#allocation9] ss:$0 sm:$0xff]  ;;  %vm844_vm10 = vweird.f32 %v6611_v47 }
  0xfc   : > { %v646_v53 = vpop.xlane.xlu0 %645  ;;  %v717_v54 = vpop.xlane.xlu2 %716  ;;  %v829_v55 = vmul.f32 %v5469_v51, %v803_v35  ;;  %v823_v58 = vmul.f32 %v5467_v34, %v822_v50  ;;  %vm835_vm4 = vweird.f32 %v5469_v51 }
  0xfd   : > { %v6622_v57 = vmul.f32 %v6585_v36, %v646_v53  ;;  %5472 = vrsqrt.f32 %v6617_v52  ;;  %v743_v59 = vmul.f32 %v717_v54, %v6585_v36  ;;  %vm836_vm6 = vmor %vm834_vm5, %vm835_vm4  ;;  %vm854_vm7 = vweird.f32 %v6617_v52 }
  0xfe   : > { %v715_v60 = vpop.xlane.xlu1 %714  ;;  %v830_v61 = vmul.f32 %v5469_v51, %v829_v55  ;;  %v827_v18 = vsel %vm6631_vm3, %v5467_v34, %v823_v58 }
  0xff   : > { %v759_v62 = vmul.f32 %v6622_v57, %v6622_v57  ;;  %v742_v63 = vmul.f32 %v715_v60, %v6585_v36  ;;  %v978_v34 = vmul.f32 %v827_v18, %v786_v20 }
 0x100   : > { %v831_v8 = vmul.f32 0.5, %v830_v61 }
 0x101   : > { %v6629_v5 = vpop.eup %5470  ;;  %v775_v10 = vsub.f32 %v743_v59, %v759_v62  ;;  %v774_v11 = vsub.f32 %v742_v63, %v758_v56  ;;  %v998_v35 = vmul.f32 %v6651_v39, %v978_v34 }
 0x102   : > { %v839_v15 = vmul.f32 %v6629_v5, %v6611_v47  ;;  %v832_v22 = vsub.f32 1.5, %v831_v8  ;;  %vm845_vm9 = vweird.f32 %v6629_v5 }
 0x103   : > { %v6641_v2 = vadd.f32 1e-05, %v775_v10  ;;  %v6643_v25 = vadd.f32 1e-05, %v774_v11  ;;  %v6645_v27 = vpop.eup %5472  ;;  %v1018_v62 = vadd.f32 %v6664_v33, %v998_v35  ;;  %vm6697_vm12 = vmor %vm844_vm10, %vm845_vm9 }
 0x104   : > { %v840_v31 = vmul.f32 %v6629_v5, %v839_v15  ;;  %v648_v32 = vpop.xlane.xlu0 %647  ;;  %v833_v37 = vmul.f32 %v5469_v51, %v832_v22  ;;  %v849_v38 = vmul.f32 %v6645_v27, %v6617_v52  ;;  %v719_v42 = vpop.xlane.xlu2 %718  ;;  %vm855_vm8 = vweird.f32 %v6645_v27 }
 0x105   : > { %5474 = vrsqrt.f32 %v6641_v2  ;;  %v6656_v41 = vmul.f32 %v6585_v36, %v648_v32  ;;  %v744_v53 = vmul.f32 %v719_v42, %v6585_v36  ;;  %vm856_vm11 = vmor %vm854_vm7, %vm855_vm8  ;;  %vm874_vm13 = vweird.f32 %v6641_v2 }
 0x106   : > { %5476 = vrsqrt.f32 %v6643_v25  ;;  %v650_v0 = vpop.xlane.xlu1 %649  ;;  %v841_v48 = vmul.f32 0.5, %v840_v31  ;;  %v850_v40 = vmul.f32 %v6645_v27, %v849_v38  ;;  %v837_v45 = vsel %vm836_vm6, %v5469_v51, %v833_v37 }
 0x107   : > { %v6661_v44 = vmul.f32 %v6585_v36, %v650_v0  ;;  %v760_v50 = vmul.f32 %v6656_v41, %v6656_v41  ;;  %v979_v54 = vmul.f32 %v837_v45, %v787_v43  ;;  %v789_v37 = vsub.f32 %v6496_v4, %v6603_v29 }
 0x108   : > { %v851_v46 = vmul.f32 0.5, %v850_v40  ;;  %v842_v56 = vsub.f32 1.5, %v841_v48  ;;  %v788_v4 = vsub.f32 %v6486_v1, %v6597_v23  ;;  %vm864_vm15 = vweird.f32 %v6643_v25 }
 0x109   : > { %v761_v13 = vmul.f32 %v6661_v44, %v6661_v44  ;;  %v999_v59 = vmul.f32 %v6651_v39, %v979_v54  ;;  %v776_v6 = vsub.f32 %v744_v53, %v760_v50 }
 0x10a   : > { %v852_v58 = vsub.f32 1.5, %v851_v46  ;;  %v843_v15 = vmul.f32 %v6629_v5, %v842_v56 }
 0x10b   : > { %v6669_v55 = vpop.eup %5474  ;;  %v1019_v11 = vadd.f32 %v6664_v33, %v999_v59  ;;  %v6701_v34 = vadd.f32 1e-05, %v776_v6 }
 0x10c   : > { %v6671_v3 = vpop.eup %5476  ;;  %v721_v51 = vpop.xlane.xlu0 %720  ;;  %v869_v60 = vmul.f32 %v6669_v55, %v6641_v2  ;;  %v853_v63 = vmul.f32 %v6645_v27, %v852_v58  ;;  %v847_v52 = vsel %vm6697_vm12, %v6629_v5, %v843_v15  ;;  %vm875_vm14 = vweird.f32 %v6669_v55 }
 0x10d   : > { %v859_v61 = vmul.f32 %v6671_v3, %v6643_v25  ;;  %v745_v8 = vmul.f32 %v721_v51, %v6585_v36  ;;  %v1034_v20 = vpack.c.bf16 %v1019_v11, %v1018_v62  ;;  %v654_v22 = vpop.xlane.xlu2 %653  ;;  %v980_v45 = vmul.f32 %v847_v52, %v788_v4  ;;  %vm6740_vm1 = vmor %vm874_vm13, %vm875_vm14 }
 0x10e   : > { %v652_v10 = vpop.xlane.xlu1 %651  ;;  %v870_v31 = vmul.f32 %v6669_v55, %v869_v60  ;;  %v857_v47 = vsel %vm856_vm11, %v6645_v27, %v853_v63  ;;  %v6713_v29 = vmul.f32 %v6585_v36, %v654_v22  ;;  %vm865_vm0 = vweird.f32 %v6671_v3 }
 0x10f   : > { %v777_v18 = vsub.f32 %v745_v8, %v761_v13  ;;  %v860_v32 = vmul.f32 %v6671_v3, %v859_v61  ;;  %1118 = vmatmul.bf16.vlgmr.msra.gmra.mxu0 %v1034_v20  ;;  %1251 = vmatmul.bf16.vlgmr.msra.gmra.mxu1 %v1034_v20  ;;  %v981_v48 = vmul.f32 %v857_v47, %v789_v37  ;;  %vm6747_vm2 = vmor %vm864_vm15, %vm865_vm0  ;;  %vm884_vm5 = vweird.f32 %v6701_v34 }
 0x110   : > { %1384 = vmatmul.bf16.vlgmr.msra.gmra.mxu2 %v1034_v20  ;;  %v871_v40 = vmul.f32 0.5, %v870_v31  ;;  %v6717_v27 = vmul.f32 %v6585_v36, %v652_v10  ;;  %v763_v5 = vmul.f32 %v6713_v29, %v6713_v29  ;;  %v1000_v13 = vmul.f32 %v6651_v39, %v980_v45 }
 0x111   : > { %v6703_v0 = vadd.f32 1e-05, %v777_v18  ;;  %v861_v42 = vmul.f32 0.5, %v860_v32  ;;  %v1001_v23 = vmul.f32 %v6651_v39, %v981_v48  ;;  %v790_v32 = vsub.f32 %v6505_v7, %v6614_v49 }
 0x112   : > { %v872_v35 = vsub.f32 1.5, %v871_v40  ;;  %v762_v54 = vmul.f32 %v6717_v27, %v6717_v27  ;;  %v1020_v8 = vadd.f32 %v6664_v33, %v1000_v13  ;;  %v791_v37 = vsub.f32 %v6511_v9, %v6622_v57 }
 0x113   : > { %5478 = vrsqrt.f32 %v6703_v0  ;;  %v862_v50 = vsub.f32 1.5, %v861_v42  ;;  %v1021_v60 = vadd.f32 %v6664_v33, %v1001_v23  ;;  %vm894_vm3 = vweird.f32 %v6703_v0 }
 0x114   : > { %5480 = vrsqrt.f32 %v6701_v34  ;;  %v723_v46 = vpop.xlane.xlu0 %722  ;;  %v873_v61 = vmul.f32 %v6669_v55, %v872_v35 }
 0x115   : > { %v746_v56 = vmul.f32 %v723_v46, %v6585_v36  ;;  %v656_v58 = vpop.xlane.xlu2 %655  ;;  %v863_v62 = vmul.f32 %v6671_v3, %v862_v50  ;;  %v1035_v15 = vpack.c.bf16 %v1021_v60, %v1020_v8 }
 0x116   : > { %v725_v43 = vpop.xlane.xlu1 %724  ;;  %v877_v31 = vsel %vm6740_vm1, %v6669_v55, %v873_v61  ;;  %v6772_v55 = vmul.f32 %v6585_v36, %v656_v58 }
 0x117   : > { %v747_v1 = vmul.f32 %v725_v43, %v6585_v36  ;;  %v778_v6 = vsub.f32 %v746_v56, %v762_v54  ;;  %v867_v22 = vsel %vm6747_vm2, %v6671_v3, %v863_v62  ;;  %v983_v49 = vmul.f32 %v877_v31, %v791_v37 }
 0x118   : > { %v982_v7 = vmul.f32 %v867_v22, %v790_v32  ;;  %v764_v42 = vmul.f32 %v6772_v55, %v6772_v55 }
 0x119   : > { %v6723_v53 = vpop.eup %5478  ;;  %v779_v59 = vsub.f32 %v747_v1, %v763_v5  ;;  %v6764_v38 = vadd.f32 1e-05, %v778_v6  ;;  %v1003_v46 = vmul.f32 %v6651_v39, %v983_v49 }
 0x11a   : > { %v6731_v51 = vpop.eup %5480  ;;  %v889_v63 = vmul.f32 %v6723_v53, %v6703_v0  ;;  %v1002_v45 = vmul.f32 %v6651_v39, %v982_v7  ;;  %vm895_vm4 = vweird.f32 %v6723_v53 }
 0x11b   : > { %v879_v25 = vmul.f32 %v6731_v51, %v6701_v34  ;;  %v6751_v11 = vadd.f32 1e-05, %v779_v59  ;;  %v1023_v13 = vadd.f32 %v6664_v33, %v1003_v46  ;;  %vm885_vm6 = vweird.f32 %v6731_v51  ;;  %vm6796_vm7 = vmor %vm894_vm3, %vm895_vm4 }
 0x11c   : > { %v658_v18 = vpop.xlane.xlu0 %657  ;;  %v890_v20 = vmul.f32 %v6723_v53, %v889_v63  ;;  %v1022_v58 = vadd.f32 %v6664_v33, %v1002_v45  ;;  %vm6805_vm8 = vmor %vm884_vm5, %vm885_vm6  ;;  %vm904_vm11 = vweird.f32 %v6764_v38 }
 0x11d   : > { %v880_v47 = vmul.f32 %v6731_v51, %v879_v25  ;;  %v6768_v52 = vmul.f32 %v6585_v36, %v658_v18  ;;  %5482 = vrsqrt.f32 %v6751_v11  ;;  %v729_v3 = vpop.xlane.xlu2 %728  ;;  %vm914_vm9 = vweird.f32 %v6751_v11 }
 0x11e   : > { %v891_v4 = vmul.f32 0.5, %v890_v20  ;;  %v727_v9 = vpop.xlane.xlu1 %726  ;;  %5484 = vrsqrt.f32 %v6764_v38  ;;  %v749_v40 = vmul.f32 %v729_v3, %v6585_v36  ;;  %v1036_v6 = vpack.c.bf16 %v1023_v13, %v1022_v58 }
 0x11f   : > { %1123 = vmatmul.bf16.gmra.mxu0 %v1035_v15  ;;  %1256 = vmatmul.bf16.gmra.mxu1 %v1035_v15  ;;  %v881_v57 = vmul.f32 0.5, %v880_v47  ;;  %v765_v48 = vmul.f32 %v6768_v52, %v6768_v52  ;;  %v748_v43 = vmul.f32 %v727_v9, %v6585_v36 }
 0x120   : > { %1389 = vmatmul.bf16.gmra.mxu2 %v1035_v15  ;;  %v892_v5 = vsub.f32 1.5, %v891_v4  ;;  %v793_v15 = vsub.f32 %v6524_v14, %v6661_v44 }
 0x121   : > { %v882_v23 = vsub.f32 1.5, %v881_v57  ;;  %v781_v35 = vsub.f32 %v749_v40, %v765_v48  ;;  %v780_v56 = vsub.f32 %v748_v43, %v764_v42 }
 0x122   : > { %v893_v59 = vmul.f32 %v6723_v53, %v892_v5 }
 0x123   : > { %v6783_v1 = vpop.eup %5482  ;;  %v883_v61 = vmul.f32 %v6731_v51, %v882_v23  ;;  %v6803_v63 = vadd.f32 1e-05, %v781_v35  ;;  %v6809_v2 = vadd.f32 1e-05, %v780_v56 }
 0x124   : > { %v660_v50 = vpop.xlane.xlu0 %659  ;;  %v6787_v54 = vpop.eup %5484  ;;  %v909_v0 = vmul.f32 %v6783_v1, %v6751_v11  ;;  %v897_v25 = vsel %vm6796_vm7, %v6723_v53, %v893_v59  ;;  %v792_v53 = vsub.f32 %v6519_v12, %v6656_v41  ;;  %vm915_vm10 = vweird.f32 %v6783_v1 }
 0x125   : > { %v899_v62 = vmul.f32 %v6787_v54, %v6764_v38  ;;  %5486 = vrsqrt.f32 %v6803_v63  ;;  %v887_v20 = vsel %vm6805_vm8, %v6731_v51, %v883_v61  ;;  %v6823_v22 = vmul.f32 %v6585_v36, %v660_v50  ;;  %v731_v31 = vpop.xlane.xlu2 %730  ;;  %vm6853_vm13 = vmor %vm914_vm9, %vm915_vm10 }
 0x126   : > { %v910_v8 = vmul.f32 %v6783_v1, %v909_v0  ;;  %v662_v10 = vpop.xlane.xlu1 %661  ;;  %5488 = vrsqrt.f32 %v6809_v2  ;;  %v985_v14 = vmul.f32 %v897_v25, %v793_v15  ;;  %v984_v47 = vmul.f32 %v887_v20, %v792_v53 }
 0x127   : > { %v900_v18 = vmul.f32 %v6787_v54, %v899_v62  ;;  %v6829_v44 = vmul.f32 %v6585_v36, %v662_v10  ;;  %v766_v51 = vmul.f32 %v6823_v22, %v6823_v22  ;;  %v750_v7 = vmul.f32 %v731_v31, %v6585_v36 }
 0x128   : > { %v911_v32 = vmul.f32 0.5, %v910_v8  ;;  %v1005_v49 = vmul.f32 %v6651_v39, %v985_v14  ;;  %v1004_v40 = vmul.f32 %v6651_v39, %v984_v47  ;;  %vm905_vm12 = vweird.f32 %v6787_v54 }
 0x129   : > { %v901_v3 = vmul.f32 0.5, %v900_v18  ;;  %v767_v12 = vmul.f32 %v6829_v44, %v6829_v44  ;;  %v782_v43 = vsub.f32 %v750_v7, %v766_v51  ;;  %v795_v38 = vsub.f32 %v6531_v16, %v6713_v29  ;;  %vm6863_vm14 = vmor %vm904_vm11, %vm905_vm12 }
 0x12a   : > { %v912_v9 = vsub.f32 1.5, %v911_v32  ;;  %v1025_v46 = vadd.f32 %v6664_v33, %v1005_v49  ;;  %v1024_v50 = vadd.f32 %v6664_v33, %v1004_v40  ;;  %vm934_vm15 = vweird.f32 %v6803_v63 }
 0x12b   : > { %v6838_v4 = vpop.eup %5486  ;;  %v902_v42 = vsub.f32 1.5, %v901_v3  ;;  %v6859_v58 = vadd.f32 1e-05, %v782_v43  ;;  %vm924_vm1 = vweird.f32 %v6809_v2  ;;  %v796_v43 = vsub.f32 %v6541_v19, %v6772_v55 }
 0x12c   : > { %v733_v37 = vpop.xlane.xlu0 %732  ;;  %v6840_v48 = vpop.eup %5488  ;;  %v929_v45 = vmul.f32 %v6838_v4, %v6803_v63  ;;  %v913_v23 = vmul.f32 %v6783_v1, %v912_v9  ;;  %v1037_v60 = vpack.c.bf16 %v1025_v46, %v1024_v50  ;;  %vm935_vm0 = vweird.f32 %v6838_v4 }
 0x12d   : > { %v751_v41 = vmul.f32 %v733_v37, %v6585_v36  ;;  %v919_v35 = vmul.f32 %v6840_v48, %v6809_v2  ;;  %v903_v56 = vmul.f32 %v6787_v54, %v902_v42  ;;  %v666_v13 = vpop.xlane.xlu2 %665  ;;  %5490 = vrsqrt.f32 %v6859_v58  ;;  %vm6905_vm3 = vmor %vm934_vm15, %vm935_vm0 }
 0x12e   : > { %v664_v57 = vpop.xlane.xlu1 %663  ;;  %v930_v0 = vmul.f32 %v6838_v4, %v929_v45  ;;  %v917_v34 = vsel %vm6853_vm13, %v6783_v1, %v913_v23  ;;  %v6878_v16 = vmul.f32 %v6585_v36, %v666_v13  ;;  %v794_v1 = vsub.f32 %v6534_v17, %v6717_v27 }
 0x12f   : > { %1128 = vmatmul.bf16.gmra.mxu0 %v1036_v6  ;;  %1261 = vmatmul.bf16.gmra.mxu1 %v1036_v6  ;;  %v783_v5 = vsub.f32 %v751_v41, %v767_v12  ;;  %v920_v62 = vmul.f32 %v6840_v48, %v919_v35  ;;  %v907_v8 = vsel %vm6863_vm14, %v6787_v54, %v903_v56  ;;  %vm925_vm2 = vweird.f32 %v6840_v48 }
 0x130   : > { %1394 = vmatmul.bf16.gmra.mxu2 %v1036_v6  ;;  %v6875_v6 = vmul.f32 %v6585_v36, %v664_v57  ;;  %v931_v10 = vmul.f32 0.5, %v930_v0  ;;  %v987_v15 = vmul.f32 %v917_v34, %v795_v38  ;;  %v986_v14 = vmul.f32 %v907_v8, %v794_v1  ;;  %vm926_vm4 = vmor %vm924_vm1, %vm925_vm2 }
 0x131   : > { %v6868_v61 = vadd.f32 1e-05, %v783_v5  ;;  %v921_v18 = vmul.f32 0.5, %v920_v62  ;;  %v769_v31 = vmul.f32 %v6878_v16, %v6878_v16  ;;  %v797_v45 = vsub.f32 %v6547_v21, %v6768_v52 }
 0x132   : > { %v768_v20 = vmul.f32 %v6875_v6, %v6875_v6  ;;  %v932_v32 = vsub.f32 1.5, %v931_v10  ;;  %v1007_v37 = vmul.f32 %v6651_v39, %v987_v15  ;;  %v1006_v51 = vmul.f32 %v6651_v39, %v986_v14 }
 0x133   : > { %5492 = vrsqrt.f32 %v6868_v61  ;;  %v6894_v17 = vpop.eup %5490  ;;  %v922_v27 = vsub.f32 1.5, %v921_v18  ;;  %vm944_vm5 = vweird.f32 %v6859_v58  ;;  %vm954_vm7 = vweird.f32 %v6868_v61 }
 0x134   : > { %v735_v29 = vpop.xlane.xlu0 %734  ;;  %v933_v49 = vmul.f32 %v6838_v4, %v932_v32  ;;  %v1027_v12 = vadd.f32 %v6664_v33, %v1007_v37  ;;  %v939_v63 = vmul.f32 %v6894_v17, %v6859_v58  ;;  %v1026_v2 = vadd.f32 %v6664_v33, %v1006_v51 }
 0x135   : > { %v752_v53 = vmul.f32 %v735_v29, %v6585_v36  ;;  %v923_v9 = vmul.f32 %v6840_v48, %v922_v27  ;;  %vm945_vm6 = vweird.f32 %v6894_v17  ;;  %v801_v27 = vsub.f32 %v6571_v30, %v6878_v16  ;;  %v6956_v16 = vld [vmem:[%s8945_s5] ss:$0 sm:$0xff] }
 0x136   : > { %v737_v25 = vpop.xlane.xlu1 %736  ;;  %v1038_v46 = vpack.c.bf16 %v1027_v12, %v1026_v2  ;;  %v937_v5 = vsel %vm6905_vm3, %v6838_v4, %v933_v49  ;;  %v940_v23 = vmul.f32 %v6894_v17, %v939_v63  ;;  %vm946_vm9 = vmor %vm944_vm5, %vm945_vm6  ;;  %vm1524_vm1 = vcmask 261120  }
 0x137   : > { %v753_v54 = vmul.f32 %v737_v25, %v6585_v36  ;;  %v784_v47 = vsub.f32 %v752_v53, %v768_v20  ;;  %v927_v11 = vsel %vm926_vm4, %v6840_v48, %v923_v9  ;;  %v989_v55 = vmul.f32 %v937_v5, %v797_v45 }
 0x138   : > { %v988_v19 = vmul.f32 %v927_v11, %v796_v43  ;;  %v941_v50 = vmul.f32 0.5, %v940_v23  ;;  %v798_v25 = vsub.f32 %v6555_v24, %v6823_v22  ;;  %vm3141_vm2 = vcmask 523264  }
 0x139   : > { %v6896_v3 = vpop.eup %5492  ;;  %v785_v7 = vsub.f32 %v753_v54, %v769_v31  ;;  %v816_v40 = vadd.f32 1e-05, %v784_v47  ;;  %v1009_v4 = vmul.f32 %v6651_v39, %v989_v55  ;;  %vm3158_vm3 = vcmask 785408  }
 0x13a   : > { %v949_v57 = vmul.f32 %v6896_v3, %v6868_v61  ;;  %v1008_v13 = vmul.f32 %v6651_v39, %v988_v19  ;;  %v942_v38 = vsub.f32 1.5, %v941_v50  ;;  %vm955_vm8 = vweird.f32 %v6896_v3 }
 0x13b   : > { %v817_v42 = vadd.f32 1e-05, %v785_v7  ;;  %5494 = vrsqrt.f32 %v816_v40  ;;  %v1029_v62 = vadd.f32 %v6664_v33, %v1009_v4  ;;  %vm956_vm10 = vmor %vm954_vm7, %vm955_vm8  ;;  %v799_v61 = vsub.f32 %v6560_v26, %v6829_v44 }
 0x13c   : > { %v950_v35 = vmul.f32 %v6896_v3, %v949_v57  ;;  %v943_v34 = vmul.f32 %v6894_v17, %v942_v38  ;;  %vm964_vm11 = vweird.f32 %v816_v40  ;;  %v6961_v57 = vld [vmem:[%s8945_s5 + $0x1] ss:$0 sm:$0xff] }
 0x13d   : > { %5496 = vrsqrt.f32 %v817_v42  ;;  %vm974_vm13 = vweird.f32 %v817_v42 }
 0x13e   : > { %v951_v21 = vmul.f32 0.5, %v950_v35  ;;  %v947_v10 = vsel %vm946_vm9, %v6894_v17, %v943_v34  ;;  %v800_v17 = vsub.f32 %v6567_v28, %v6875_v6 }
 0x13f   : > { %1133 = vmatmul.bf16.gmra.mxu0 %v1037_v60  ;;  %1266 = vmatmul.bf16.gmra.mxu1 %v1037_v60  ;;  %v990_v53 = vmul.f32 %v947_v10, %v798_v25 }
 0x140   : > { %1399 = vmatmul.bf16.gmra.mxu2 %v1037_v60  ;;  %v952_v59 = vsub.f32 1.5, %v951_v21  ;;  %v1028_v60 = vadd.f32 %v6664_v33, %v1008_v13 }
 0x141   : > { %v5495_v52 = vpop.eup %5494  ;;  %v1010_v24 = vmul.f32 %v6651_v39, %v990_v53 }
 0x142   : > { %v959_v48 = vmul.f32 %v5495_v52, %v816_v40  ;;  %v953_v29 = vmul.f32 %v6896_v3, %v952_v59  ;;  %v1039_v1 = vpack.c.bf16 %v1029_v62, %v1028_v60  ;;  %vm965_vm12 = vweird.f32 %v5495_v52 }
 0x143   : > { %v5497_v56 = vpop.eup %5496  ;;  %vm966_vm15 = vmor %vm964_vm11, %vm965_vm12  ;;  %v1030_v32 = vadd.f32 %v6664_v33, %v1010_v24 }
 0x144   : > { %v969_v0 = vmul.f32 %v5497_v56, %v817_v42  ;;  %v960_v8 = vmul.f32 %v5495_v52, %v959_v48  ;;  %v957_v15 = vsel %vm956_vm10, %v6896_v3, %v953_v29  ;;  %vm975_vm14 = vweird.f32 %v5497_v56 }
 0x145   : > { %v991_v14 = vmul.f32 %v957_v15, %v799_v61  ;;  %vm976_vm0 = vmor %vm974_vm13, %vm975_vm14 }
 0x146   : > { %v970_v58 = vmul.f32 %v5497_v56, %v969_v0  ;;  %v961_v18 = vmul.f32 0.5, %v960_v8 }
 0x147   : > { %v1011_v26 = vmul.f32 %v6651_v39, %v991_v14 }
 0x148   : > { %v971_v20 = vmul.f32 0.5, %v970_v58  ;;  %v962_v31 = vsub.f32 1.5, %v961_v18 }
 0x149   : > { %v1031_v37 = vadd.f32 %v6664_v33, %v1011_v26 }
 0x14a   : > { %v972_v54 = vsub.f32 1.5, %v971_v20  ;;  %v963_v22 = vmul.f32 %v5495_v52, %v962_v31 }
 0x14b   : > { %v1040_v51 = vpack.c.bf16 %v1031_v37, %v1030_v32 }
 0x14c   : > { %v973_v44 = vmul.f32 %v5497_v56, %v972_v54  ;;  %v967_v47 = vsel %vm966_vm15, %v5495_v52, %v963_v22 }
 0x14d   : > { %v992_v7 = vmul.f32 %v967_v47, %v800_v17 }
 0x14e   : > { %v977_v3 = vsel %vm976_vm0, %v5497_v56, %v973_v44 }
 0x14f   : > { %1138 = vmatmul.bf16.gmra.mxu0 %v1038_v46  ;;  %1271 = vmatmul.bf16.gmra.mxu1 %v1038_v46  ;;  %v993_v49 = vmul.f32 %v977_v3, %v801_v27  ;;  %v1012_v12 = vmul.f32 %v6651_v39, %v992_v7 }
 0x150   : > { %1404 = vmatmul.bf16.gmra.mxu2 %v1038_v46 }
 0x151   : > { %v1013_v41 = vmul.f32 %v6651_v39, %v993_v49  ;;  %v1032_v9 = vadd.f32 %v6664_v33, %v1012_v12 }
 0x153   : > { %v1033_v63 = vadd.f32 %v6664_v33, %v1013_v41 }
 0x155   : > { %v1041_v28 = vpack.c.bf16 %v1033_v63, %v1032_v9 }
 0x15f   : > { %1143 = vmatmul.bf16.gmra.mxu0 %v1039_v1  ;;  %1276 = vmatmul.bf16.gmra.mxu1 %v1039_v1 }
 0x160   : > { %1409 = vmatmul.bf16.gmra.mxu2 %v1039_v1 }
 0x16f   : > { %1148 = vmatmul.bf16.gmra.mxu0 %v1040_v51  ;;  %1281 = vmatmul.bf16.gmra.mxu1 %v1040_v51 }
 0x170   : > { %1414 = vmatmul.bf16.gmra.mxu2 %v1040_v51 }
 0x17f   : > { %1286 = vmatmul.bf16.gmra.mxu1 %v1041_v28  ;;  %1153 = vmatmul.bf16.gmra.mxu0 %v1041_v28 }
 0x180   : > { %1419 = vmatmul.bf16.gmra.mxu2 %v1041_v28 }
 0x18c   : > { %v1119_v30 = vpop.f32.mrf.mxu0  ;;  %v1252_v6 = vpop.f32.mrf.mxu1 }
 0x18d   : > { %v1120_v39 = vadd.f32 %v6956_v16, %v1119_v30  ;;  %v1253_v33 = vadd.f32 %v6961_v57, %v1252_v6 }
 0x18f   : > { %v1159_v43 = vpack.c.bf16 %v1120_v39, %v1120_v39  ;;  %v1292_v45 = vpack.c.bf16 %v1253_v33, %v1253_v33 }
 0x191   : > { %v1460_v11 = vunpack.c.l.b16 %v1159_v43  ;;  %v1500_v19 = vunpack.c.l.b16 %v1292_v45 }
 0x193   : > { %v6965_v40 = vpop.f32.mrf.mxu2 }
 0x194   : > { %v1121_v2 = vpop.f32.mrf.mxu0  ;;  %v1254_v42 = vpop.f32.mrf.mxu1 }
 0x195   : > { %v1122_v46 = vadd.f32 %v6956_v16, %v1121_v2  ;;  %v1255_v5 = vadd.f32 %v6961_v57, %v1254_v42 }
 0x197   : > { %v1160_v23 = vpack.c.bf16 %v1122_v46, %v1122_v46  ;;  %v1293_v35 = vpack.c.bf16 %v1255_v5, %v1255_v5 }
 0x199   : > { %v1461_v55 = vunpack.c.l.b16 %v1160_v23  ;;  %v1501_v50 = vunpack.c.l.b16 %v1293_v35 }
 0x19b   : > { %v6969_v21 = vpack.c.b16 %v1461_v55, %v1460_v11  ;;  %v6971_v52 = vpack.c.b16 %v1501_v50, %v1500_v19  ;;  %v6973_v56 = vpop.f32.mrf.mxu2 }
 0x19c   : > { %v1124_v13 = vpop.f32.mrf.mxu0  ;;  %v1257_v4 = vpop.f32.mrf.mxu1 }
 0x19d   : > { %2241 = vrot.lane.b32.xlu1 %v6971_v52, %s6210_s18  ;;  %1887 = vrot.lane.b32.xlu0 %v6971_v52, %s6211_s12  ;;  %v1258_v38 = vadd.f32 %v6961_v57, %v1257_v4  ;;  %v1125_v8 = vadd.f32 %v6956_v16, %v1124_v13 }
 0x19e   : > { %1871 = vrot.lane.b32.xlu2 %v6969_v21, %s6211_s12 }
 0x19f   : > { %v1294_v60 = vpack.c.bf16 %v1258_v38, %v1258_v38  ;;  %v1161_v20 = vpack.c.bf16 %v1125_v8, %v1125_v8 }
 0x1a1   : > { %v1502_v58 = vunpack.c.l.b16 %v1294_v60  ;;  %v1462_v14 = vunpack.c.l.b16 %v1161_v20 }
 0x1a3   : > { %v6982_v59 = vpop.f32.mrf.mxu2 }
 0x1a4   : > { %v1126_v48 = vpop.f32.mrf.mxu0  ;;  %v1259_v0 = vpop.f32.mrf.mxu1 }
 0x1a5   : > { %v1260_v62 = vadd.f32 %v6961_v57, %v1259_v0  ;;  %v1127_v34 = vadd.f32 %v6956_v16, %v1126_v48 }
 0x1a7   : > { %v1295_v29 = vpack.c.bf16 %v1260_v62, %v1260_v62  ;;  %v1162_v61 = vpack.c.bf16 %v1127_v34, %v1127_v34 }
 0x1a9   : > { %v1503_v25 = vunpack.c.l.b16 %v1295_v29  ;;  %v1463_v53 = vunpack.c.l.b16 %v1162_v61 }
 0x1ab   : > { %v6987_v1 = vpack.c.b16 %v1503_v25, %v1502_v58  ;;  %v6989_v10 = vpop.f32.mrf.mxu2  ;;  %v6997_v24 = vpack.c.b16 %v1463_v53, %v1462_v14 }
 0x1ac   : > { %v1129_v15 = vpop.f32.mrf.mxu0  ;;  %v1262_v18 = vpop.f32.mrf.mxu1 }
 0x1ad   : > { %2597 = vrot.lane.b32.xlu2 %v6987_v1, %s6212_s3  ;;  %1889 = vrot.lane.b32.xlu1 %v6987_v1, %s6211_s12  ;;  %v1130_v31 = vadd.f32 %v6956_v16, %v1129_v15  ;;  %v1263_v54 = vadd.f32 %v6961_v57, %v1262_v18 }
 0x1af   : > { %v1163_v32 = vpack.c.bf16 %v1130_v31, %v1130_v31  ;;  %v1296_v37 = vpack.c.bf16 %v1263_v54, %v1263_v54 }
 0x1b1   : > { %v1464_v51 = vunpack.c.l.b16 %v1163_v32  ;;  %v1504_v7 = vunpack.c.l.b16 %v1296_v37 }
 0x1b3   : > { %v6999_v26 = vpop.f32.mrf.mxu2 }
 0x1b4   : > { %v1131_v22 = vpop.f32.mrf.mxu0  ;;  %v1264_v44 = vpop.f32.mrf.mxu1 }
 0x1b5   : > { %v1132_v17 = vadd.f32 %v6956_v16, %v1131_v22  ;;  %v1265_v27 = vadd.f32 %v6961_v57, %v1264_v44  ;;  %1873 = vrot.lane.b32.xlu1 %v6997_v24, %s6211_s12 }
 0x1b7   : > { %v1164_v47 = vpack.c.bf16 %v1132_v17, %v1132_v17  ;;  %v1297_v3 = vpack.c.bf16 %v1265_v27, %v1265_v27 }
 0x1b9   : > { %v1465_v49 = vunpack.c.l.b16 %v1164_v47  ;;  %v1505_v12 = vunpack.c.l.b16 %v1297_v3 }
 0x1bb   : > { %v7005_v41 = vpack.c.b16 %v1465_v49, %v1464_v51  ;;  %v7007_v9 = vpack.c.b16 %v1505_v12, %v1504_v7  ;;  %v7009_v63 = vpop.f32.mrf.mxu2 }
 0x1bc   : > { %v1134_v28 = vpop.f32.mrf.mxu0  ;;  %v1267_v30 = vpop.f32.mrf.mxu1 }
 0x1bd   : > { %2243 = vrot.lane.b32.xlu1 %v6987_v1, %s6210_s18  ;;  %1891 = vrot.lane.b32.xlu2 %v7007_v9, %s6211_s12  ;;  %v1135_v6 = vadd.f32 %v6956_v16, %v1134_v28  ;;  %v1268_v39 = vadd.f32 %v6961_v57, %v1267_v30 }
 0x1be   : > { %1875 = vrot.lane.b32.xlu0 %v7005_v41, %s6211_s12 }
 0x1bf   : > { %v1165_v43 = vpack.c.bf16 %v1135_v6, %v1135_v6  ;;  %v1298_v45 = vpack.c.bf16 %v1268_v39, %v1268_v39 }
 0x1c1   : > { %v1466_v11 = vunpack.c.l.b16 %v1165_v43  ;;  %v1506_v19 = vunpack.c.l.b16 %v1298_v45 }
 0x1c3   : > { %v7019_v33 = vpop.f32.mrf.mxu2 }
 0x1c4   : > { %v1136_v2 = vpop.f32.mrf.mxu0  ;;  %v1269_v42 = vpop.f32.mrf.mxu1 }
 0x1c5   : > { %v1137_v46 = vadd.f32 %v6956_v16, %v1136_v2  ;;  %v1270_v5 = vadd.f32 %v6961_v57, %v1269_v42  ;;  %2599 = vrot.lane.b32.xlu2 %v7007_v9, %s6212_s3 }
 0x1c6   : > { %2245 = vrot.lane.b32.xlu0 %v7007_v9, %s6210_s18 }
 0x1c7   : > { %v1166_v23 = vpack.c.bf16 %v1137_v46, %v1137_v46  ;;  %v1299_v35 = vpack.c.bf16 %v1270_v5, %v1270_v5 }
 0x1c9   : > { %v1467_v55 = vunpack.c.l.b16 %v1166_v23  ;;  %v1507_v50 = vunpack.c.l.b16 %v1299_v35 }
 0x1cb   : > { %v7027_v13 = vpack.c.b16 %v1467_v55, %v1466_v11  ;;  %v7029_v4 = vpack.c.b16 %v1507_v50, %v1506_v19  ;;  %v7031_v38 = vpop.f32.mrf.mxu2 }
 0x1cc   : > { %v1139_v48 = vpop.f32.mrf.mxu0  ;;  %v1272_v0 = vpop.f32.mrf.mxu1 }
 0x1cd   : > { %2601 = vrot.lane.b32.xlu1 %v7029_v4, %s6212_s3  ;;  %1877 = vrot.lane.b32.xlu2 %v7027_v13, %s6211_s12  ;;  %v1140_v60 = vadd.f32 %v6956_v16, %v1139_v48  ;;  %v1273_v62 = vadd.f32 %v6961_v57, %v1272_v0 }
 0x1ce   : > { %1893 = vrot.lane.b32.xlu0 %v7029_v4, %s6211_s12 }
 0x1cf   : > { %v1167_v58 = vpack.c.bf16 %v1140_v60, %v1140_v60  ;;  %v1300_v25 = vpack.c.bf16 %v1273_v62, %v1273_v62 }
 0x1d1   : > { %v1468_v53 = vunpack.c.l.b16 %v1167_v58  ;;  %v1508_v14 = vunpack.c.l.b16 %v1300_v25 }
 0x1d3   : > { %v7041_v34 = vpop.f32.mrf.mxu2 }
 0x1d4   : > { %v1141_v29 = vpop.f32.mrf.mxu0  ;;  %v1274_v8 = vpop.f32.mrf.mxu1 }
 0x1d5   : > { %v1142_v61 = vadd.f32 %v6956_v16, %v1141_v29  ;;  %v1275_v15 = vadd.f32 %v6961_v57, %v1274_v8 }
 0x1d6   : > { %2247 = vrot.lane.b32.xlu0 %v7029_v4, %s6210_s18 }
 0x1d7   : > { %v1168_v18 = vpack.c.bf16 %v1142_v61, %v1142_v61  ;;  %v1301_v20 = vpack.c.bf16 %v1275_v15, %v1275_v15 }
 0x1d9   : > { %v1469_v31 = vunpack.c.l.b16 %v1168_v18  ;;  %v1509_v54 = vunpack.c.l.b16 %v1301_v20 }
 0x1db   : > { %v7047_v22 = vpack.c.b16 %v1469_v31, %v1468_v53  ;;  %v7049_v44 = vpack.c.b16 %v1509_v54, %v1508_v14  ;;  %v7051_v32 = vpop.f32.mrf.mxu2 }
 0x1dc   : > { %v1144_v37 = vpop.f32.mrf.mxu0  ;;  %v1277_v17 = vpop.f32.mrf.mxu1 }
 0x1dd   : > { %2603 = vrot.lane.b32.xlu1 %v7049_v44, %s6212_s3  ;;  %1895 = vrot.lane.b32.xlu2 %v7049_v44, %s6211_s12  ;;  %v1278_v27 = vadd.f32 %v6961_v57, %v1277_v17  ;;  %v1145_v39 = vadd.f32 %v6956_v16, %v1144_v37 }
 0x1de   : > { %1879 = vrot.lane.b32.xlu0 %v7047_v22, %s6211_s12 }
 0x1df   : > { %v1302_v7 = vpack.c.bf16 %v1278_v27, %v1278_v27  ;;  %v1169_v5 = vpack.c.bf16 %v1145_v39, %v1145_v39 }
 0x1e1   : > { %v1510_v30 = vunpack.c.l.b16 %v1302_v7  ;;  %v1470_v11 = vunpack.c.l.b16 %v1169_v5  ;;  %v7104_v7 = vld [vmem:[%s8945_s5 + $0x2] ss:$0 sm:$0xff] }
 0x1e3   : > { %v7060_v47 = vpop.f32.mrf.mxu2 }
 0x1e4   : > { %v1146_v3 = vpop.f32.mrf.mxu0  ;;  %v1279_v51 = vpop.f32.mrf.mxu1 }
 0x1e5   : > { %v1280_v49 = vadd.f32 %v6961_v57, %v1279_v51  ;;  %2249 = vrot.lane.b32.xlu2 %v7049_v44, %s6210_s18  ;;  %v1147_v28 = vadd.f32 %v6956_v16, %v1146_v3 }
 0x1e7   : > { %v1303_v12 = vpack.c.bf16 %v1280_v49, %v1280_v49  ;;  %v1170_v43 = vpack.c.bf16 %v1147_v28, %v1147_v28 }
 0x1e9   : > { %v1511_v6 = vunpack.c.l.b16 %v1303_v12  ;;  %v1471_v23 = vunpack.c.l.b16 %v1170_v43 }
 0x1eb   : > { %v7067_v2 = vpack.c.b16 %v1511_v6, %v1510_v30  ;;  %v1412_v42 = vpop.f32.mrf.mxu2  ;;  %v7076_v55 = vpack.c.b16 %v1471_v23, %v1470_v11 }
 0x1ec   : > { %v1149_v45 = vpop.f32.mrf.mxu0  ;;  %v1282_v46 = vpop.f32.mrf.mxu1 }
 0x1ed   : > { %2605 = vrot.lane.b32.xlu0 %v7067_v2, %s6212_s3  ;;  %2251 = vrot.lane.b32.xlu2 %v7067_v2, %s6210_s18  ;;  %v1283_v35 = vadd.f32 %v6961_v57, %v1282_v46  ;;  %v1150_v8 = vadd.f32 %v6956_v16, %v1149_v45 }
 0x1ee   : > { %1897 = vrot.lane.b32.xlu1 %v7067_v2, %s6211_s12 }
 0x1ef   : > { %v1304_v0 = vpack.c.bf16 %v1283_v35, %v1283_v35  ;;  %v1171_v53 = vpack.c.bf16 %v1150_v8, %v1150_v8  ;;  %v1413_v35 = vadd.f32 %v7104_v7, %v1412_v42 }
 0x1f1   : > { %v1512_v58 = vunpack.c.l.b16 %v1304_v0  ;;  %v1472_v31 = vunpack.c.l.b16 %v1171_v53 }
 0x1f3   : > { %v1415_v19 = vpop.f32.mrf.mxu2 }
 0x1f4   : > { %v1151_v50 = vpop.f32.mrf.mxu0  ;;  %v1284_v48 = vpop.f32.mrf.mxu1  ;;  %v1416_v45 = vadd.f32 %v7104_v7, %v1415_v19  ;;  %v1411_v19 = vadd.f32 %v7104_v7, %v7060_v47  ;;  %v1403_v47 = vadd.f32 %v7104_v7, %v7031_v38 }
 0x1f5   : > { %v1285_v60 = vadd.f32 %v6961_v57, %v1284_v48  ;;  %2225 = vrot.lane.b32.xlu2 %v6969_v21, %s6210_s18  ;;  %v1152_v62 = vadd.f32 %v6956_v16, %v1151_v50 }
 0x1f6   : > { %1881 = vrot.lane.b32.xlu1 %v7076_v55, %s6211_s12  ;;  %v1437_v48 = vpack.c.bf16 %v1416_v45, %v1416_v45 }
 0x1f7   : > { %v1305_v29 = vpack.c.bf16 %v1285_v60, %v1285_v60  ;;  %v1172_v61 = vpack.c.bf16 %v1152_v62, %v1152_v62  ;;  %v1408_v62 = vadd.f32 %v7104_v7, %v7051_v32 }
 0x1f8   : > { %v7110_v6 = vpop.permute.xlu2 %1871 }
 0x1f9   : > { %v1513_v25 = vunpack.c.l.b16 %v1305_v29  ;;  %v1473_v14 = vunpack.c.l.b16 %v1172_v61  ;;  %v1436_v29 = vpack.c.bf16 %v1413_v35, %v1413_v35  ;;  %v1435_v61 = vpack.c.bf16 %v1411_v19, %v1411_v19 }
 0x1fa   : > { %v1386_v35 = vadd.f32 %v7104_v7, %v6965_v40 }
 0x1fb   : > { %v7085_v15 = vpack.c.b16 %v1513_v25, %v1512_v58  ;;  %v1417_v18 = vpop.f32.mrf.mxu2  ;;  %v7094_v37 = vpack.c.b16 %v1473_v14, %v1472_v31  ;;  %v1406_v25 = vadd.f32 %v7104_v7, %v7041_v34  ;;  %v1801_v53 = vunpack.c.l.b16 %v1436_v29 }
 0x1fc   : > { %v1287_v20 = vpop.f32.mrf.mxu1  ;;  %v1401_v34 = vadd.f32 %v7104_v7, %v7019_v33  ;;  %v1393_v33 = vadd.f32 %v7104_v7, %v6989_v10  ;;  %v1425_v40 = vpack.c.bf16 %v1386_v35, %v1386_v35 }
 0x1fd   : > { %2581 = vrot.lane.b32.xlu2 %v6997_v24, %s6212_s3  ;;  %1899 = vrot.lane.b32.xlu0 %v7085_v15, %s6211_s12  ;;  %v1288_v54 = vadd.f32 %v6961_v57, %v1287_v20  ;;  %v1568_v32 = vsel %vm1524_vm1, %v7085_v15, 0  ;;  %v1434_v20 = vpack.c.bf16 %v1408_v62, %v1408_v62  ;;  %v1433_v31 = vpack.c.bf16 %v1406_v25, %v1406_v25 }
 0x1fe   : > { %2579 = vrot.lane.b32.xlu1 %v6969_v21, %s6212_s3  ;;  %v1790_v29 = vunpack.c.l.b16 %v1425_v40 }
 0x1ff   : > { %v1306_v3 = vpack.c.bf16 %v1288_v54, %v1288_v54  ;;  %v1800_v54 = vunpack.c.l.b16 %v1435_v61  ;;  %v1799_v38 = vunpack.c.l.b16 %v1434_v20  ;;  %v1553_v20 = vsel %vm1524_vm1, %v6987_v1, 0 }
 0x200   : > { %v1550_v1 = vsel %vm1524_vm1, %v6971_v52, 0 }
 0x201   : > { %v1514_v28 = vunpack.c.l.b16 %v1306_v3  ;;  %v7153_v3 = vpack.c.b16 %v1801_v53, %v1800_v54 }
 0x203   : > { %v1420_v17 = vpop.f32.mrf.mxu2 }
 0x204   : > { %v1289_v27 = vpop.f32.mrf.mxu1  ;;  %v1421_v12 = vadd.f32 %v7104_v7, %v1420_v17  ;;  %v1398_v17 = vadd.f32 %v7104_v7, %v7009_v63  ;;  %v1565_v63 = vsel %vm1524_vm1, %v7067_v2, 0  ;;  %v1388_v2 = vadd.f32 %v7104_v7, %v6973_v56 }
 0x205   : > { %v1290_v51 = vadd.f32 %v6961_v57, %v1289_v27  ;;  %2595 = vrot.lane.b32.xlu0 %v6971_v52, %s6212_s3  ;;  %1883 = vrot.lane.b32.xlu2 %v7094_v37, %s6211_s12  ;;  %v1418_v57 = vadd.f32 %v7104_v7, %v1417_v18  ;;  %v1802_v18 = vunpack.c.l.b16 %v1437_v48  ;;  %v1432_v27 = vpack.c.bf16 %v1403_v47, %v1403_v47 }
 0x206   : > { %2229 = vrot.lane.b32.xlu1 %v7005_v41, %s6210_s18  ;;  %v1439_v46 = vpack.c.bf16 %v1421_v12, %v1421_v12  ;;  %v1431_v12 = vpack.c.bf16 %v1401_v34, %v1401_v34  ;;  %v1562_v56 = vsel %vm1524_vm1, %v7049_v44, 0  ;;  %v1559_v44 = vsel %vm1524_vm1, %v7029_v4, 0 }
 0x207   : > { %v1307_v49 = vpack.c.bf16 %v1290_v51, %v1290_v51  ;;  %v1438_v11 = vpack.c.bf16 %v1418_v57, %v1418_v57  ;;  %v7131_v42 = vpop.permute.xlu2 %2597  ;;  %v1797_v57 = vunpack.c.l.b16 %v1432_v27  ;;  %v1556_v4 = vsel %vm1524_vm1, %v7007_v9, 0 }
 0x208   : > { %v1804_v0 = vunpack.c.l.b16 %v1439_v46  ;;  %v1796_v46 = vunpack.c.l.b16 %v1431_v12 }
 0x209   : > { %v1515_v30 = vunpack.c.l.b16 %v1307_v49  ;;  %v1803_v8 = vunpack.c.l.b16 %v1438_v11  ;;  %v1396_v49 = vadd.f32 %v7104_v7, %v6999_v26  ;;  %v1391_v26 = vadd.f32 %v7104_v7, %v6982_v59 }
 0x20a   : > { %v1426_v59 = vpack.c.bf16 %v1388_v2, %v1388_v2 }
 0x20b   : > { %v7112_v39 = vpack.c.b16 %v1515_v30, %v1514_v28  ;;  %v1422_v43 = vpop.f32.mrf.mxu2  ;;  %v7144_v14 = vpack.c.b16 %v1803_v8, %v1802_v18  ;;  %v1798_v28 = vunpack.c.l.b16 %v1433_v31  ;;  %v1430_v30 = vpack.c.bf16 %v1398_v17, %v1398_v17  ;;  %v1154_v31 = vpop.f32.mrf.mxu0 }
 0x20c   : > { %v1423_v5 = vadd.f32 %v7104_v7, %v1422_v43  ;;  %v1429_v45 = vpack.c.bf16 %v1396_v49, %v1396_v49  ;;  %v1427_v11 = vpack.c.bf16 %v1391_v26, %v1391_v26 }
 0x20d   : > { %2227 = vrot.lane.b32.xlu0 %v6997_v24, %s6210_s18  ;;  %1901 = vrot.lane.b32.xlu2 %v7112_v39, %s6211_s12  ;;  %v1571_v23 = vsel %vm1524_vm1, %v7112_v39, 0  ;;  %v7168_v43 = vpack.c.b16 %v1799_v38, %v1798_v28  ;;  %v1795_v10 = vunpack.c.l.b16 %v1430_v30  ;;  %v1155_v28 = vadd.f32 %v6956_v16, %v1154_v31 }
 0x20e   : > { %v1440_v50 = vpack.c.bf16 %v1423_v5, %v1423_v5  ;;  %2233 = vrot.lane.b32.xlu1 %v7047_v22, %s6210_s18  ;;  %1573 = vmatpush.bf16.xpose.msra.mxu3 %v1571_v23  ;;  %v1428_v5 = vpack.c.bf16 %v1393_v33, %v1393_v33  ;;  %v7177_v23 = vpack.c.b16 %v1797_v57, %v1796_v46  ;;  %v1792_v7 = vunpack.c.l.b16 %v1427_v11 }
 0x20f   : > { %v7197_v8 = vpop.permute.xlu1 %2241  ;;  %v7210_v61 = vpop.permute.xlu0 %1887  ;;  %v1173_v33 = vpack.c.bf16 %v1155_v28, %v1155_v28 }
 0x210   : > { %v1805_v60 = vunpack.c.l.b16 %v1440_v50  ;;  %v1794_v50 = vunpack.c.l.b16 %v1429_v45  ;;  %v1793_v48 = vunpack.c.l.b16 %v1428_v5 }
 0x211   : > { %v1474_v57 = vunpack.c.l.b16 %v1173_v33 }
 0x212   : > { %v7129_v58 = vpack.c.b16 %v1805_v60, %v1804_v0  ;;  %v7190_v0 = vpack.c.b16 %v1795_v10, %v1794_v50  ;;  %v1791_v60 = vunpack.c.l.b16 %v1426_v59  ;;  %v7195_v62 = vpack.c.b16 %v1793_v48, %v1792_v7 }
 0x213   : > { %v1156_v38 = vpop.f32.mrf.mxu0 }
 0x214   : > { %1822 = vmatpush.bf16.msrb.mxu0 %v7129_v58  ;;  %v7206_v25 = vpack.c.b16 %v1791_v60, %v1790_v29  ;;  %v1157_v52 = vadd.f32 %v6956_v16, %v1156_v38 }
 0x215   : > { %2583 = vrot.lane.b32.xlu0 %v7005_v41, %s6212_s3  ;;  %2587 = vrot.lane.b32.xlu2 %v7047_v22, %s6212_s3 }
 0x216   : > { %2253 = vrot.lane.b32.xlu1 %v7085_v15, %s6210_s18  ;;  %1574 = vmatpush.bf16.xpose.msra.mxu3 %v1568_v32 }
 0x217   : > { %v7155_v51 = vpop.permute.xlu2 %1891 }
 0x218   : > { %1823 = vmatpush.bf16.msrb.mxu0 %v7144_v14 }
 0x21c   : > { %1824 = vmatpush.bf16.msrb.mxu0 %v7153_v3 }
 0x21d   : > { %2231 = vrot.lane.b32.xlu0 %v7027_v13, %s6210_s18  ;;  %2589 = vrot.lane.b32.xlu2 %v7076_v55, %s6212_s3 }
 0x21e   : > { %2162 = vrot.lane.b32.xlu1 %v7153_v3, %s6211_s12  ;;  %1575 = vmatpush.bf16.xpose.msra.mxu3 %v1565_v63  ;;  %v1174_v63 = vpack.c.bf16 %v1157_v52, %v1157_v52 }
 0x21f   : > { %v7182_v19 = vpop.permute.xlu2 %2599  ;;  %v7215_v32 = vpop.permute.xlu1 %1889 }
 0x220   : > { %1825 = vmatpush.bf16.msrb.mxu0 %v7168_v43 }
 0x224   : > { %1826 = vmatpush.bf16.msrb.mxu0 %v7177_v23 }
 0x225   : > { %2585 = vrot.lane.b32.xlu0 %v7027_v13, %s6212_s3  ;;  %2164 = vrot.lane.b32.xlu2 %v7144_v14, %s6211_s12 }
 0x226   : > { %2160 = vrot.lane.b32.xlu1 %v7168_v43, %s6211_s12  ;;  %1576 = vmatpush.bf16.xpose.msra.mxu3 %v1562_v56 }
 0x227   : > { %v7212_v18 = vpop.permute.xlu2 %1877  ;;  %v7235_v53 = vpop.permute.xlu1 %1873 }
 0x228   : > { %1827 = vmatpush.bf16.msrb.mxu0 %v7190_v0 }
 0x22c   : > { %1828 = vmatpush.bf16.msrb.mxu0 %v7195_v62 }
 0x22d   : > { %2607 = vrot.lane.b32.xlu0 %v7085_v15, %s6212_s3  ;;  %2237 = vrot.lane.b32.xlu2 %v7094_v37, %s6210_s18 }
 0x22e   : > { %2158 = vrot.lane.b32.xlu1 %v7177_v23, %s6211_s12  ;;  %1577 = vmatpush.bf16.xpose.msra.mxu3 %v1559_v44 }
 0x22f   : > { %v7253_v17 = vpop.permute.xlu1 %2243 }
 0x230   : > { %1829 = vmatpush.bf16.msrb.mxu0 %v7206_v25  ;;  %v7225_v15 = vpop.permute.xlu0 %1875 }
 0x235   : > { %2235 = vrot.lane.b32.xlu0 %v7076_v55, %s6210_s18  ;;  %2156 = vrot.lane.b32.xlu2 %v7190_v0, %s6211_s12 }
 0x236   : > { %2152 = vrot.lane.b32.xlu1 %v7206_v25, %s6211_s12  ;;  %1578 = vmatpush.bf16.xpose.msra.mxu3 %v1556_v4 }
 0x237   : > { %v7227_v47 = vpop.permute.xlu2 %1895 }
 0x238   : > { %v7241_v34 = vpop.permute.xlu0 %2245 }
 0x23d   : > { %2591 = vrot.lane.b32.xlu0 %v7094_v37, %s6212_s3  ;;  %2870 = vrot.lane.b32.xlu2 %v7153_v3, %s6212_s3 }
 0x23e   : > { %2518 = vrot.lane.b32.xlu1 %v7144_v14, %s6210_s18  ;;  %1579 = vmatpush.bf16.xpose.msra.mxu3 %v1553_v20 }
 0x23f   : > { %v7239_v9 = vpop.permute.xlu2 %2249  ;;  %v7264_v12 = vpop.permute.xlu1 %2601 }
 0x240   : > { %v1894_v27 = vpop.permute.xlu0 %1893 }
 0x241   : > { %v1937_v4 = vsel %vm1524_vm1, %v1894_v27, 0  ;;  %v1931_v27 = vsel %vm1524_vm1, %v7215_v32, 0 }
 0x245   : > { %2154 = vrot.lane.b32.xlu0 %v7195_v62, %s6211_s12  ;;  %2868 = vrot.lane.b32.xlu2 %v7168_v43, %s6212_s3 }
 0x246   : > { %2255 = vrot.lane.b32.xlu1 %v7112_v39, %s6210_s18  ;;  %1580 = vmatpush.bf16.xpose.msra.mxu3 %v1550_v1  ;;  %v1934_v1 = vsel %vm1524_vm1, %v7155_v51, 0  ;;  %v1928_v51 = vsel %vm1524_vm1, %v7210_v61, 0 }
 0x247   : > { %v7251_v54 = vpop.permute.xlu2 %2251 }
 0x248   : > { %v7267_v30 = vpop.permute.xlu0 %2247 }
 0x24d   : > { %2872 = vrot.lane.b32.xlu0 %v7144_v14, %s6212_s3  ;;  %2516 = vrot.lane.b32.xlu2 %v7153_v3, %s6210_s18  ;;  %v1475_v14 = vunpack.c.l.b16 %v1174_v63 }
 0x24e   : > { %4852 = vmatmul.msk.bf16.vlgmr.msra.gmra.mxu3 %vm1524_vm1, %v6969_v21 }
 0x24f   : > { %v7262_v49 = vpop.permute.xlu2 %2225  ;;  %v7275_v3 = vpop.permute.xlu1 %2603  ;;  %v7277_v26 = vpack.c.b16 %v1475_v14, %v1474_v57 }
 0x250   : > { %v7285_v16 = vpop.permute.xlu0 %1879 }
 0x255   : > { %2866 = vrot.lane.b32.xlu0 %v7177_v23, %s6212_s3  ;;  %2609 = vrot.lane.b32.xlu2 %v7112_v39, %s6212_s3 }
 0x257   : > { %v7273_v21 = vpop.permute.xlu2 %2581 }
 0x25d   : > { %2514 = vrot.lane.b32.xlu0 %v7168_v43, %s6210_s18  ;;  %2593 = vrot.lane.b32.xlu2 %v7277_v26, %s6212_s3 }
 0x25e   : > { %4853 = vmatmul.msk.bf16.gmra.mxu3 %vm1524_vm1, %v6997_v24 }
 0x25f   : > { %v7287_v39 = vpop.permute.xlu2 %1883  ;;  %v7293_v46 = vpop.permute.xlu0 %2605 }
 0x260   : > { %v1898_v45 = vpop.permute.xlu1 %1897 }
 0x261   : > { %v1943_v48 = vsel %vm1524_vm1, %v1898_v45, 0 }
 0x265   : > { %2166 = vrot.lane.b32.xlu2 %v7129_v58, %s6211_s12  ;;  %1885 = vrot.lane.b32.xlu0 %v7277_v26, %s6211_s12 }
 0x267   : > { %v1902_v43 = vpop.permute.xlu2 %1901 }
 0x268   : > { %v7295_v2 = vpop.permute.xlu1 %1881  ;;  %v1949_v5 = vsel %vm1524_vm1, %v1902_v43, 0 }
 0x269   : > { %1951 = vmatpush.bf16.xpose.msrb.mxu1 %v1949_v5 }
 0x26d   : > { %2874 = vrot.lane.b32.xlu2 %v7129_v58, %s6212_s3  ;;  %2239 = vrot.lane.b32.xlu0 %v7277_v26, %s6210_s18 }
 0x26e   : > { %4854 = vmatmul.msk.bf16.gmra.mxu3 %vm1524_vm1, %v7005_v41 }
 0x26f   : > { %v1900_v24 = vpop.permute.xlu0 %1899  ;;  %v7304_v10 = vpop.permute.xlu2 %2587 }
 0x270   : > { %v7306_v35 = vpop.permute.xlu1 %2579  ;;  %v1946_v11 = vsel %vm1524_vm1, %v1900_v24, 0 }
 0x271   : > { %1952 = vmatpush.bf16.xpose.msrb.mxu1 %v1946_v11 }
 0x275   : > { %2520 = vrot.lane.b32.xlu2 %v7129_v58, %s6210_s18  ;;  %v1940_v58 = vsel %vm1524_vm1, %v7227_v47, 0 }
 0x277   : > { %v7311_v50 = vpop.permute.xlu0 %2595  ;;  %v7313_v56 = vpop.permute.xlu2 %2589 }
 0x278   : > { %v7315_v59 = vpop.permute.xlu1 %2229 }
 0x279   : > { %1953 = vmatpush.bf16.xpose.msrb.mxu1 %v1943_v48  ;;  %v2651_v48 = vsel %vm1524_vm1, %v7293_v46, 0  ;;  %v7377_v46 = vld [vmem:[%s538_s26] ss:$0 sm:$0xff] }
 0x27e   : > { %4855 = vmatmul.msk.bf16.gmra.mxu3 %vm1524_vm1, %v7027_v13 }
 0x27f   : > { %v7320_v41 = vpop.permute.xlu0 %2227  ;;  %v2165_v40 = vpop.permute.xlu2 %2164 }
 0x280   : > { %v7322_v7 = vpop.permute.xlu1 %2233 }
 0x281   : > { %1954 = vmatpush.bf16.xpose.msrb.mxu1 %v1940_v58 }
 0x287   : > { %v7326_v60 = vpop.permute.xlu0 %2583  ;;  %v7328_v29 = vpop.permute.xlu2 %2237 }
 0x288   : > { %v2254_v44 = vpop.permute.xlu1 %2253 }
 0x289   : > { %1955 = vmatpush.bf16.xpose.msrb.mxu1 %v1937_v4  ;;  %v2300_v58 = vsel %vm1524_vm1, %v2254_v44, 0 }
 0x28e   : > { %4856 = vmatmul.msk.bf16.gmra.mxu3 %vm1524_vm1, %v7047_v22 }
 0x28f   : > { %v7333_v13 = vpop.permute.xlu0 %2231  ;;  %v2157_v20 = vpop.permute.xlu2 %2156 }
 0x290   : > { %v2163_v31 = vpop.permute.xlu1 %2162 }
 0x291   : > { %1956 = vmatpush.bf16.xpose.msrb.mxu1 %v1934_v1  ;;  %v2297_v1 = vsel %vm1524_vm1, %v7251_v54, 0 }
 0x297   : > { %v7337_v47 = vpop.permute.xlu0 %2585  ;;  %v7339_v38 = vpop.permute.xlu2 %2870 }
 0x298   : > { %v2161_v52 = vpop.permute.xlu1 %2160 }
 0x299   : > { %1957 = vmatpush.bf16.xpose.msrb.mxu1 %v1931_v27 }
 0x29e   : > { %4857 = vmatmul.msk.bf16.gmra.mxu3 %vm1524_vm1, %v7076_v55 }
 0x29f   : > { %v7345_v22 = vpop.permute.xlu2 %2868  ;;  %v2608_v28 = vpop.permute.xlu0 %2607 }
 0x2a0   : > { %v2159_v63 = vpop.permute.xlu1 %2158 }
 0x2a1   : > { %1958 = vmatpush.bf16.xpose.msrb.mxu1 %v1928_v51 }
 0x2a7   : > { %v2517_v33 = vpop.permute.xlu2 %2516  ;;  %v7351_v57 = vpop.permute.xlu0 %2235 }
 0x2a8   : > { %v2153_v14 = vpop.permute.xlu1 %2152  ;;  %4860 = vmatmul.msk.bf16.vlgmr.msrb.gmra.mxu1 %vm1524_vm1, %v7110_v6  ;;  %v2654_v6 = vsel %vm1524_vm1, %v2608_v28, 0 }
 0x2ae   : > { %4858 = vmatmul.msk.bf16.gmra.mxu3 %vm1524_vm1, %v7094_v37 }
 0x2af   : > { %v2610_v32 = vpop.permute.xlu2 %2609  ;;  %v7356_v43 = vpop.permute.xlu0 %2591 }
 0x2b0   : > { %v2657_v55 = vsel %vm1524_vm1, %v2610_v32, 0  ;;  %v2519_v45 = vpop.permute.xlu1 %2518 }
 0x2b1   : > { %2659 = vmatpush.bf16.xpose.msra.mxu1 %v2657_v55 }
 0x2b7   : > { %v7358_v5 = vpop.permute.xlu2 %2593  ;;  %v2155_v37 = vpop.permute.xlu0 %2154 }
 0x2b8   : > { %v2256_v61 = vpop.permute.xlu1 %2255  ;;  %4861 = vmatmul.msk.bf16.gmra.mxu1 %vm1524_vm1, %v7235_v53 }
 0x2b9   : > { %v2303_v24 = vsel %vm1524_vm1, %v2256_v61, 0  ;;  %2660 = vmatpush.bf16.xpose.msra.mxu1 %v2654_v6 }
 0x2ba   : > { %2305 = vmatpush.bf16.xpose.msrb.mxu3 %v2303_v24 }
 0x2be   : > { %4859 = vmatmul.msk.bf16.gmra.mxu3 %vm1524_vm1, %v7277_v26  ;;  %v2648_v26 = vsel %vm1524_vm1, %v7275_v3, 0 }
 0x2bf   : > { %v2167_v11 = vpop.permute.xlu2 %2166  ;;  %v2873_v4 = vpop.permute.xlu0 %2872 }
 0x2c0   : > { %2176 = vmatpush.bf16.msrb.mxu2 %v2167_v11 }
 0x2c1   : > { %2661 = vmatpush.bf16.xpose.msra.mxu1 %v2651_v48 }
 0x2c2   : > { %2306 = vmatpush.bf16.xpose.msrb.mxu3 %v2300_v58 }
 0x2c4   : > { %2177 = vmatpush.bf16.msrb.mxu2 %v2165_v40  ;;  %v2645_v40 = vsel %vm1524_vm1, %v7264_v12, 0  ;;  %v2642_v12 = vsel %vm1524_vm1, %v7182_v19, 0 }
 0x2c7   : > { %v2875_v53 = vpop.permute.xlu2 %2874  ;;  %v2867_v3 = vpop.permute.xlu0 %2866 }
 0x2c8   : > { %4862 = vmatmul.msk.bf16.gmra.mxu1 %vm1524_vm1, %v7225_v15  ;;  %2178 = vmatpush.bf16.msrb.mxu2 %v2163_v31  ;;  %v2294_v31 = vsel %vm1524_vm1, %v7239_v9, 0  ;;  %v2291_v9 = vsel %vm1524_vm1, %v7267_v30, 0 }
 0x2c9   : > { %2662 = vmatpush.bf16.xpose.msra.mxu1 %v2648_v26 }
 0x2ca   : > { %2307 = vmatpush.bf16.xpose.msrb.mxu3 %v2297_v1 }
 0x2cc   : > { %2179 = vmatpush.bf16.msrb.mxu2 %v2161_v52 }
 0x2cf   : > { %v2521_v44 = vpop.permute.xlu2 %2520  ;;  %v2515_v28 = vpop.permute.xlu0 %2514 }
 0x2d0   : > { %2180 = vmatpush.bf16.msrb.mxu2 %v2159_v63  ;;  %2530 = vmatpush.bf16.msra.mxu0 %v2521_v44 }
 0x2d1   : > { %v1582_v15 = vpop.f32.mrf.mxu3  ;;  %2663 = vmatpush.bf16.xpose.msra.mxu1 %v2645_v40 }
 0x2d2   : > { %v7384_v54 = vadd.f32 %v7377_v46, %v1582_v15  ;;  %2308 = vmatpush.bf16.xpose.msrb.mxu3 %v2294_v31 }
 0x2d4   : > { %1622 = vmax.xlane.f32.xlu0 %v7384_v54  ;;  %2181 = vmatpush.bf16.msrb.mxu2 %v2157_v20  ;;  %v2288_v20 = vsel %vm1524_vm1, %v7241_v34, 0  ;;  %v2285_v34 = vsel %vm1524_vm1, %v7253_v17, 0 }
 0x2d5   : > { %2531 = vmatpush.bf16.msra.mxu0 %v2519_v45 }
 0x2d7   : > { %v1886_v55 = vpop.permute.xlu0 %1885 }
 0x2d8   : > { %4863 = vmatmul.msk.bf16.gmra.mxu1 %vm1524_vm1, %v7212_v18  ;;  %2182 = vmatpush.bf16.msrb.mxu2 %v2155_v37  ;;  %v2639_v18 = vsel %vm1524_vm1, %v7131_v42, 0  ;;  %v2636_v42 = vsel %vm1524_vm1, %v7311_v50, 0 }
 0x2d9   : > { %v1584_v52 = vpop.f32.mrf.mxu3  ;;  %2532 = vmatpush.bf16.msra.mxu0 %v2517_v33  ;;  %2664 = vmatpush.bf16.xpose.msra.mxu1 %v2642_v12 }
 0x2da   : > { %2309 = vmatpush.bf16.xpose.msrb.mxu3 %v2291_v9  ;;  %v7394_v27 = vadd.f32 %v7377_v46, %v1584_v52 }
 0x2dc   : > { %1624 = vmax.xlane.f32.xlu2 %v7394_v27  ;;  %2183 = vmatpush.bf16.msrb.mxu2 %v2153_v14 }
 0x2dd   : > { %2533 = vmatpush.bf16.msra.mxu0 %v2515_v28 }
 0x2df   : > { %v2240_v1 = vpop.permute.xlu0 %2239 }
 0x2e0   : > { %2884 = vmatpush.bf16.msra.mxu2 %v2875_v53 }
 0x2e1   : > { %v1587_v19 = vpop.f32.mrf.mxu3  ;;  %2665 = vmatpush.bf16.xpose.msra.mxu1 %v2639_v18 }
 0x2e2   : > { %v7402_v30 = vadd.f32 %v7377_v46, %v1587_v19  ;;  %2310 = vmatpush.bf16.xpose.msrb.mxu3 %v2288_v20 }
 0x2e4   : > { %2885 = vmatpush.bf16.msra.mxu2 %v2873_v4  ;;  %1626 = vmax.xlane.f32.xlu0 %v7402_v30 }
 0x2e8   : > { %2886 = vmatpush.bf16.msra.mxu2 %v7339_v38  ;;  %4864 = vmatmul.msk.bf16.gmra.mxu1 %vm1524_vm1, %v7285_v16  ;;  %v2282_v16 = vsel %vm1524_vm1, %v7197_v8, 0 }
 0x2e9   : > { %v1589_v63 = vpop.f32.mrf.mxu3  ;;  %2666 = vmatpush.bf16.xpose.msra.mxu1 %v2636_v42 }
 0x2ea   : > { %2311 = vmatpush.bf16.xpose.msrb.mxu3 %v2285_v34  ;;  %v7414_v51 = vadd.f32 %v7377_v46, %v1589_v63 }
 0x2ec   : > { %2887 = vmatpush.bf16.msra.mxu2 %v7345_v22  ;;  %1628 = vmax.xlane.f32.xlu0 %v7414_v51 }
 0x2f0   : > { %2888 = vmatpush.bf16.msra.mxu2 %v2867_v3 }
 0x2f1   : > { %v1592_v38 = vpop.f32.mrf.mxu3 }
 0x2f2   : > { %v7420_v50 = vadd.f32 %v7377_v46, %v1592_v38  ;;  %2312 = vmatpush.bf16.xpose.msrb.mxu3 %v2282_v16 }
 0x2f4   : > { %1630 = vmax.xlane.f32.xlu2 %v7420_v50 }
 0x2f8   : > { %4865 = vmatmul.msk.bf16.gmra.mxu1 %vm1524_vm1, %v7295_v2 }
 0x2f9   : > { %v1594_v17 = vpop.f32.mrf.mxu3  ;;  %4868 = vmatmul.msk.bf16.vlgmr.msrb.gmra.mxu3 %vm1524_vm1, %v7262_v49 }
 0x2fa   : > { %v7428_v22 = vadd.f32 %v7377_v46, %v1594_v17 }
 0x2fc   : > { %1632 = vmax.xlane.f32.xlu0 %v7428_v22 }
 0x301   : > { %v1597_v33 = vpop.f32.mrf.mxu3 }
 0x302   : > { %v7432_v8 = vadd.f32 %v7377_v46, %v1597_v33 }
 0x304   : > { %1634 = vmax.xlane.f32.xlu2 %v7432_v8 }
 0x308   : > { %4866 = vmatmul.msk.bf16.gmra.mxu1 %vm1524_vm1, %v7287_v39 }
 0x309   : > { %v1599_v14 = vpop.f32.mrf.mxu3  ;;  %4869 = vmatmul.msk.bf16.gmra.mxu3 %vm1524_vm1, %v7320_v41 }
 0x30a   : > { %v7440_v49 = vadd.f32 %v7377_v46, %v1599_v14 }
 0x30c   : > { %1636 = vmax.xlane.f32.xlu1 %v7440_v49 }
 0x311   : > { %v1602_v2 = vpop.f32.mrf.mxu3 }
 0x312   : > { %v7444_v32 = vadd.f32 %v7377_v46, %v1602_v2 }
 0x314   : > { %1638 = vmax.xlane.f32.xlu2 %v7444_v32 }
 0x318   : > { %4867 = vmatmul.msk.bf16.gmra.mxu1 %vm1524_vm1, %v1886_v55 }
 0x319   : > { %v1604_v45 = vpop.f32.mrf.mxu3  ;;  %4870 = vmatmul.msk.bf16.gmra.mxu3 %vm1524_vm1, %v7315_v59 }
 0x31a   : > { %v7451_v39 = vadd.f32 %v7377_v46, %v1604_v45 }
 0x31c   : > { %1640 = vmax.xlane.f32.xlu0 %v7451_v39 }
 0x321   : > { %v1607_v41 = vpop.f32.mrf.mxu3 }
 0x322   : > { %v7455_v61 = vadd.f32 %v7377_v46, %v1607_v41 }
 0x324   : > { %1642 = vmax.xlane.f32.xlu0 %v7455_v61 }
 0x325   : > { %v1960_v6 = vpop.f32.mrf.mxu1 }
 0x328   : > { %4876 = vmatmul.msk.bf16.vlgmr.msra.gmra.mxu1 %vm1524_vm1, %v7306_v35 }
 0x329   : > { %v1609_v24 = vpop.f32.mrf.mxu3  ;;  %4871 = vmatmul.msk.bf16.gmra.mxu3 %vm1524_vm1, %v7333_v13  ;;  %v7475_v13 = vadd.f32 %v7377_v46, %v1960_v6 }
 0x32a   : > { %v7463_v59 = vadd.f32 %v7377_v46, %v1609_v24 }
 0x32c   : > { %1644 = vmax.xlane.f32.xlu1 %v7463_v59 }
 0x32d   : > { %v1962_v37 = vpop.f32.mrf.mxu1 }
 0x32e   : > { %v7491_v15 = vadd.f32 %v7377_v46, %v1962_v37 }
 0x331   : > { %v1612_v11 = vpop.f32.mrf.mxu3 }
 0x332   : > { %v7467_v48 = vadd.f32 %v7377_v46, %v1612_v11 }
 0x334   : > { %1646 = vmax.xlane.f32.xlu2 %v7467_v48 }
 0x335   : > { %v1965_v58 = vpop.f32.mrf.mxu1 }
 0x338   : > { %4877 = vmatmul.msk.bf16.gmra.mxu1 %vm1524_vm1, %v7273_v21 }
 0x339   : > { %v1614_v35 = vpop.f32.mrf.mxu3  ;;  %4872 = vmatmul.msk.bf16.gmra.mxu3 %vm1524_vm1, %v7322_v7 }
 0x33a   : > { %v7478_v53 = vadd.f32 %v7377_v46, %v1614_v35 }
 0x33c   : > { %1648 = vmax.xlane.f32.xlu0 %v7478_v53  ;;  %2000 = vmax.xlane.f32.xlu2 %v7475_v13 }
 0x33d   : > { %v1967_v4 = vpop.f32.mrf.mxu1 }
 0x341   : > { %v1617_v26 = vpop.f32.mrf.mxu3 }
 0x342   : > { %v7483_v44 = vadd.f32 %v7377_v46, %v1617_v26 }
 0x344   : > { %1650 = vmax.xlane.f32.xlu1 %v7483_v44 }
 0x345   : > { %v1970_v21 = vpop.f32.mrf.mxu1 }
 0x346   : > { %v7546_v41 = vadd.f32 %v7377_v46, %v1970_v21 }
 0x347   : > { %v1623_v40 = vpop.xlane.xlu0 %1622 }
 0x348   : > { %4878 = vmatmul.msk.bf16.gmra.mxu1 %vm1524_vm1, %v7326_v60  ;;  %v1654_v3 = vsub.f32 %v7384_v54, %v1623_v40  ;;  %v7500_v60 = vadd.f32 %v7377_v46, %v1965_v58 }
 0x349   : > { %v1619_v7 = vpop.f32.mrf.mxu3  ;;  %4873 = vmatmul.msk.bf16.gmra.mxu3 %vm1524_vm1, %v7351_v57  ;;  %v7503_v57 = vadd.f32 %v7377_v46, %v1967_v4 }
 0x34a   : > { %v7494_v31 = vadd.f32 %v7377_v46, %v1619_v7  ;;  %v1670_v52 = vmul.f32 1.442695, %v1654_v3 }
 0x34c   : > { %2002 = vmax.xlane.f32.xlu1 %v7491_v15  ;;  %1652 = vmax.xlane.f32.xlu2 %v7494_v31  ;;  %5498 = vpow2.f32 %v1670_v52 }
 0x34d   : > { %v1972_v12 = vpop.f32.mrf.mxu1 }
 0x34e   : > { %v7536_v2 = vadd.f32 %v7377_v46, %v1972_v12 }
 0x34f   : > { %v1625_v9 = vpop.xlane.xlu2 %1624 }
 0x350   : > { %v1655_v28 = vsub.f32 %v7394_v27, %v1625_v9 }
 0x352   : > { %v1672_v54 = vmul.f32 1.442695, %v1655_v28  ;;  %v7512_v19 = vpop.eup %5498 }
 0x354   : > { %2004 = vmax.xlane.f32.xlu1 %v7500_v60  ;;  %2006 = vmax.xlane.f32.xlu2 %v7503_v57  ;;  %5500 = vpow2.f32 %v1672_v54 }
 0x355   : > { %v1975_v18 = vpop.f32.mrf.mxu1 }
 0x356   : > { %v7560_v35 = vadd.f32 %v7377_v46, %v1975_v18 }
 0x357   : > { %v1627_v27 = vpop.xlane.xlu0 %1626 }
 0x358   : > { %4879 = vmatmul.msk.bf16.gmra.mxu1 %vm1524_vm1, %v7337_v47 }
 0x359   : > { %4874 = vmatmul.msk.bf16.gmra.mxu3 %vm1524_vm1, %v7328_v29 }
 0x35a   : > { %v7515_v42 = vpop.eup %5500 }
 0x35c   : > { %1702 = vadd.xlane.f32.xlu1 %v7512_v19 }
 0x35d   : > { %v1977_v20 = vpop.f32.mrf.mxu1 }
 0x35e   : > { %v7581_v28 = vadd.f32 %v7377_v46, %v1977_v20 }
 0x35f   : > { %v1629_v38 = vpop.xlane.xlu0 %1628 }
 0x364   : > { %1704 = vadd.xlane.f32.xlu1 %v7515_v42 }
 0x365   : > { %v1980_v47 = vpop.f32.mrf.mxu1 }
 0x367   : > { %v1631_v6 = vpop.xlane.xlu2 %1630 }
 0x368   : > { %4880 = vmatmul.msk.bf16.gmra.mxu1 %vm1524_vm1, %v7304_v10  ;;  %v1657_v10 = vsub.f32 %v7414_v51, %v1629_v38 }
 0x369   : > { %4875 = vmatmul.msk.bf16.gmra.mxu3 %vm1524_vm1, %v2240_v1 }
 0x36a   : > { %v1676_v33 = vmul.f32 1.442695, %v1657_v10 }
 0x36c   : > { %5502 = vpow2.f32 %v1676_v33 }
 0x36d   : > { %v7521_v63 = vpop.f32.mrf.mxu1 }
 0x36f   : > { %v1633_v1 = vpop.xlane.xlu0 %1632 }
 0x372   : > { %v7551_v37 = vpop.eup %5502 }
 0x375   : > { %v7529_v16 = vpop.f32.mrf.mxu1 }
 0x377   : > { %v1635_v21 = vpop.xlane.xlu2 %1634 }
 0x378   : > { %4881 = vmatmul.msk.bf16.gmra.mxu1 %vm1524_vm1, %v7313_v56  ;;  %v1656_v56 = vsub.f32 %v7402_v30, %v1627_v27 }
 0x37a   : > { %v1674_v51 = vmul.f32 1.442695, %v1656_v56  ;;  %v7602_v56 = vadd.f32 %v7377_v46, %v7521_v63 }
 0x37c   : > { %v2314_v29 = vpop.f32.mrf.mxu3  ;;  %5504 = vpow2.f32 %v1674_v51 }
 0x37d   : > { %v7526_v34 = vadd.f32 %v7377_v46, %v2314_v29  ;;  %v7543_v55 = vpop.f32.mrf.mxu1  ;;  %v7589_v29 = vadd.f32 %v7377_v46, %v1980_v47 }
 0x37f   : > { %2354 = vmax.xlane.f32.xlu0 %v7526_v34  ;;  %v1637_v38 = vpop.xlane.xlu1 %1636 }
 0x382   : > { %v7565_v26 = vpop.eup %5504 }
 0x384   : > { %v2316_v17 = vpop.f32.mrf.mxu3 }
 0x385   : > { %v7533_v14 = vadd.f32 %v7377_v46, %v2316_v17  ;;  %v7557_v11 = vpop.f32.mrf.mxu1 }
 0x387   : > { %2356 = vmax.xlane.f32.xlu1 %v7533_v14  ;;  %2010 = vmax.xlane.f32.xlu0 %v7536_v2  ;;  %v1639_v52 = vpop.xlane.xlu2 %1638 }
 0x388   : > { %4882 = vmatmul.msk.bf16.gmra.mxu1 %vm1524_vm1, %v7356_v43  ;;  %v1658_v43 = vsub.f32 %v7420_v50, %v1631_v6  ;;  %v1659_v50 = vsub.f32 %v7428_v22, %v1633_v1  ;;  %v1662_v22 = vsub.f32 %v7444_v32, %v1639_v52 }
 0x38a   : > { %v1678_v30 = vmul.f32 1.442695, %v1658_v43  ;;  %v1680_v40 = vmul.f32 1.442695, %v1659_v50  ;;  %v1686_v20 = vmul.f32 1.442695, %v1662_v22 }
 0x38c   : > { %v2319_v45 = vpop.f32.mrf.mxu3  ;;  %5506 = vpow2.f32 %v1678_v30 }
 0x38d   : > { %v7549_v24 = vadd.f32 %v7377_v46, %v2319_v45  ;;  %v7578_v9 = vpop.f32.mrf.mxu1  ;;  %5508 = vpow2.f32 %v1680_v40 }
 0x38f   : > { %2358 = vmax.xlane.f32.xlu2 %v7549_v24  ;;  %2008 = vmax.xlane.f32.xlu1 %v7546_v41  ;;  %v1641_v18 = vpop.xlane.xlu0 %1640 }
 0x390   : > { %1708 = vadd.xlane.f32.xlu0 %v7551_v37  ;;  %v1663_v43 = vsub.f32 %v7451_v39, %v1641_v18 }
 0x392   : > { %v7576_v12 = vpop.eup %5506 }
 0x393   : > { %v7594_v17 = vpop.eup %5508 }
 0x394   : > { %v2321_v58 = vpop.f32.mrf.mxu3 }
 0x395   : > { %v7563_v4 = vadd.f32 %v7377_v46, %v2321_v58  ;;  %v1995_v32 = vpop.f32.mrf.mxu1  ;;  %v1688_v58 = vmul.f32 1.442695, %v1663_v43 }
 0x397   : > { %2012 = vmax.xlane.f32.xlu2 %v7560_v35  ;;  %1706 = vadd.xlane.f32.xlu1 %v7565_v26  ;;  %v1643_v33 = vpop.xlane.xlu0 %1642 }
 0x398   : > { %2360 = vmax.xlane.f32.xlu0 %v7563_v4  ;;  %4883 = vmatmul.msk.bf16.gmra.mxu1 %vm1524_vm1, %v7358_v5  ;;  %v1660_v5 = vsub.f32 %v7432_v8, %v1635_v21  ;;  %v1661_v8 = vsub.f32 %v7440_v49, %v1637_v38  ;;  %v1664_v49 = vsub.f32 %v7455_v61, %v1643_v33 }
 0x399   : > { %v7616_v21 = vadd.f32 %v7377_v46, %v7529_v16  ;;  %v7648_v33 = vadd.f32 %v7377_v46, %v1995_v32 }
 0x39a   : > { %v1682_v54 = vmul.f32 1.442695, %v1660_v5  ;;  %v1684_v47 = vmul.f32 1.442695, %v1661_v8  ;;  %v1690_v1 = vmul.f32 1.442695, %v1664_v49  ;;  %v7641_v8 = vadd.f32 %v7377_v46, %v7557_v11 }
 0x39c   : > { %v2324_v7 = vpop.f32.mrf.mxu3  ;;  %5510 = vpow2.f32 %v1682_v54 }
 0x39d   : > { %v7574_v3 = vadd.f32 %v7377_v46, %v2324_v7  ;;  %5512 = vpow2.f32 %v1686_v20  ;;  %v1997_v63 = vpop.f32.mrf.mxu1  ;;  %v7622_v7 = vadd.f32 %v7377_v46, %v7543_v55 }
 0x39e   : > { %5514 = vpow2.f32 %v1684_v47 }
 0x39f   : > { %9014 = vst [vmem:[#allocation29_spill] sm:$0xff] %v7574_v3  ;;  %1710 = vadd.xlane.f32.xlu2 %v7576_v12  ;;  %2362 = vmax.xlane.f32.xlu1 %v7574_v3  ;;  %v1645_v45 = vpop.xlane.xlu1 %1644  ;;  %5516 = vpow2.f32 %v1688_v58 }
 0x3a0   : > { %2014 = vmax.xlane.f32.xlu0 %v7581_v28  ;;  %v1665_v30 = vsub.f32 %v7463_v59, %v1645_v45  ;;  %5518 = vpow2.f32 %v1690_v1 }
 0x3a2   : > { %v7604_v51 = vpop.eup %5510  ;;  %v1692_v50 = vmul.f32 1.442695, %v1665_v30 }
 0x3a3   : > { %v7606_v6 = vpop.eup %5512 }
 0x3a4   : > { %v2326_v27 = vpop.f32.mrf.mxu3  ;;  %v7618_v39 = vpop.eup %5514  ;;  %5520 = vpow2.f32 %v1692_v50 }
 0x3a5   : > { %v7592_v10 = vadd.f32 %v7377_v46, %v2326_v27  ;;  %v2668_v59 = vpop.f32.mrf.mxu1  ;;  %v7627_v40 = vpop.eup %5516 }
 0x3a6   : > { %v7629_v5 = vpop.eup %5518  ;;  %v7665_v50 = vadd.f32 %v7377_v46, %v2668_v59 }
 0x3a7   : > { %2016 = vmax.xlane.f32.xlu2 %v7589_v29  ;;  %2364 = vmax.xlane.f32.xlu1 %v7592_v10  ;;  %v1647_v16 = vpop.xlane.xlu2 %1646 }
 0x3a8   : > { %1712 = vadd.xlane.f32.xlu0 %v7594_v17  ;;  %v1666_v55 = vsub.f32 %v7467_v48, %v1647_v16  ;;  %v7645_v48 = vadd.f32 %v7377_v46, %v7578_v9  ;;  %v7668_v16 = vadd.f32 %v7377_v46, %v1997_v63 }
 0x3aa   : > { %v7631_v22 = vpop.eup %5520  ;;  %v1694_v38 = vmul.f32 1.442695, %v1666_v55 }
 0x3ac   : > { %5522 = vpow2.f32 %v1694_v38 }
 0x3ad   : > { %v2670_v45 = vpop.f32.mrf.mxu1 }
 0x3af   : > { %2018 = vmax.xlane.f32.xlu2 %v7602_v56  ;;  %1714 = vadd.xlane.f32.xlu1 %v7604_v51  ;;  %v1649_v52 = vpop.xlane.xlu0 %1648  ;;  %v2001_v11 = vpop.xlane.xlu2 %2000 }
 0x3b0   : > { %1718 = vadd.xlane.f32.xlu0 %v7606_v6  ;;  %v1667_v54 = vsub.f32 %v7478_v53, %v1649_v52  ;;  %v2032_v30 = vsub.f32 %v7475_v13, %v2001_v11 }
 0x3b2   : > { %v1696_v20 = vmul.f32 1.442695, %v1667_v54  ;;  %v7654_v9 = vpop.eup %5522 }
 0x3b4   : > { %5524 = vpow2.f32 %v1696_v20 }
 0x3b5   : > { %v2673_v1 = vpop.f32.mrf.mxu1 }
 0x3b7   : > { %2020 = vmax.xlane.f32.xlu1 %v7616_v21  ;;  %1716 = vadd.xlane.f32.xlu2 %v7618_v39  ;;  %v1651_v61 = vpop.xlane.xlu1 %1650 }
 0x3b8   : > { %2022 = vmax.xlane.f32.xlu0 %v7622_v7  ;;  %v1668_v27 = vsub.f32 %v7483_v44, %v1651_v61 }
 0x3ba   : > { %v1698_v47 = vmul.f32 1.442695, %v1668_v27  ;;  %v7656_v49 = vpop.eup %5524 }
 0x3bc   : > { %5526 = vpow2.f32 %v1698_v47 }
 0x3bf   : > { %1720 = vadd.xlane.f32.xlu1 %v7627_v40  ;;  %1722 = vadd.xlane.f32.xlu2 %v7629_v5  ;;  %v2003_v18 = vpop.xlane.xlu1 %2002  ;;  %v1653_v61 = vpop.xlane.xlu2 %1652 }
 0x3c0   : > { %1724 = vadd.xlane.f32.xlu0 %v7631_v22  ;;  %v2033_v44 = vsub.f32 %v7491_v15, %v2003_v18  ;;  %v2048_v15 = vmul.f32 1.442695, %v2032_v30  ;;  %v1669_v55 = vsub.f32 %v7494_v31, %v1653_v61  ;;  %v2675_v18 = vpop.f32.mrf.mxu1 }
 0x3c1   : > { %v7680_v38 = vadd.f32 %v7377_v46, %v2675_v18 }
 0x3c2   : > { %v2050_v43 = vmul.f32 1.442695, %v2033_v44  ;;  %v7658_v32 = vpop.eup %5526  ;;  %v1700_v63 = vmul.f32 1.442695, %v1669_v55  ;;  %v7683_v44 = vadd.f32 %v7377_v46, %v2670_v45 }
 0x3c3   : > { %9015 = vst [vmem:[#allocation30_spill] sm:$0xff] %v7680_v38 }
 0x3c4   : > { %5528 = vpow2.f32 %v2050_v43 }
 0x3c7   : > { %2024 = vmax.xlane.f32.xlu1 %v7641_v8  ;;  %2026 = vmax.xlane.f32.xlu2 %v7645_v48  ;;  %v2005_v53 = vpop.xlane.xlu1 %2004  ;;  %v2007_v11 = vpop.xlane.xlu2 %2006 }
 0x3c8   : > { %2028 = vmax.xlane.f32.xlu0 %v7648_v33  ;;  %v2034_v59 = vsub.f32 %v7500_v60, %v2005_v53  ;;  %v2035_v45 = vsub.f32 %v7503_v57, %v2007_v11 }
 0x3ca   : > { %v7670_v52 = vpop.eup %5528  ;;  %v2052_v20 = vmul.f32 1.442695, %v2034_v59 }
 0x3cf   : > { %1726 = vadd.xlane.f32.xlu1 %v7654_v9  ;;  %1728 = vadd.xlane.f32.xlu2 %v7656_v49  ;;  %v1703_v58 = vpop.xlane.xlu1 %1702 }
 0x3d0   : > { %1730 = vadd.xlane.f32.xlu0 %v7658_v32  ;;  %5530 = vrcp.f32 %v1703_v58  ;;  %v2054_v58 = vmul.f32 1.442695, %v2035_v45 }
 0x3d1   : > { %5532 = vpow2.f32 %v2048_v15 }
 0x3d6   : > { %v5531_v54 = vpop.eup %5530 }
 0x3d7   : > { %2030 = vmax.xlane.f32.xlu1 %v7668_v16  ;;  %2708 = vmax.xlane.f32.xlu2 %v7665_v50  ;;  %v1705_v13 = vpop.xlane.xlu1 %1704  ;;  %v7677_v27 = vpop.eup %5532  ;;  %v1750_v31 = vmul.f32 %v5531_v54, %v7512_v19 }
 0x3d8   : > { %2082 = vadd.xlane.f32.xlu0 %v7670_v52  ;;  %5534 = vrcp.f32 %v1705_v13  ;;  %v2678_v19 = vpop.f32.mrf.mxu1 }
 0x3d9   : > { %5536 = vpow2.f32 %v1700_v63  ;;  %v7701_v15 = vadd.f32 %v7377_v46, %v2678_v19 }
 0x3da   : > { %5538 = vpow2.f32 %v2052_v20 }
 0x3db   : > { %5540 = vpow2.f32 %v2054_v58 }
 0x3de   : > { %v5535_v47 = vpop.eup %5534 }
 0x3df   : > { %2080 = vadd.xlane.f32.xlu1 %v7677_v27  ;;  %2714 = vmax.xlane.f32.xlu2 %v7680_v38  ;;  %v1751_v60 = vmul.f32 %v5535_v47, %v7515_v42  ;;  %v7690_v43 = vpop.eup %5536  ;;  %v7698_v42 = vadd.f32 %v7377_v46, %v2673_v1 }
 0x3e0   : > { %2710 = vmax.xlane.f32.xlu0 %v7683_v44  ;;  %v7692_v30 = vpop.eup %5538 }
 0x3e1   : > { %v1766_v53 = vpack.c.bf16 %v1751_v60, %v1750_v31  ;;  %v7707_v13 = vpop.eup %5540 }
 0x3e3   : > { %1830 = vmatmul.bf16.vlgmr.msrb.gmra.mxu0 %v1766_v53 }
 0x3e7   : > { %1732 = vadd.xlane.f32.xlu1 %v7690_v43 }
 0x3e8   : > { %2084 = vadd.xlane.f32.xlu0 %v7692_v30 }
 0x3ef   : > { %2712 = vmax.xlane.f32.xlu1 %v7698_v42 }
 0x3f0   : > { %2716 = vmax.xlane.f32.xlu0 %v7701_v15 }
 0x3f2   : > { %v7705_v61 = vpop.xlane.xlu0 %2354 }
 0x3f7   : > { %2086 = vadd.xlane.f32.xlu1 %v7707_v13 }
 0x3fa   : > { %v2011_v57 = vpop.xlane.xlu0 %2010  ;;  %v2357_v55 = vpop.xlane.xlu1 %2356 }
 0x3fb   : > { %v2037_v59 = vsub.f32 %v7536_v2, %v2011_v57  ;;  %v2329_v57 = vpop.f32.mrf.mxu3 }
 0x3fd   : > { %v2058_v1 = vmul.f32 1.442695, %v2037_v59 }
 0x3ff   : > { %5542 = vpow2.f32 %v2058_v1 }
 0x402   : > { %v7711_v18 = vpop.xlane.xlu2 %2358  ;;  %v2009_v54 = vpop.xlane.xlu1 %2008 }
 0x403   : > { %v1709_v63 = vpop.xlane.xlu0 %1708  ;;  %v2036_v20 = vsub.f32 %v7546_v41, %v2009_v54  ;;  %v2387_v41 = vsub.f32 %v7533_v14, %v2357_v55  ;;  %v2331_v14 = vpop.f32.mrf.mxu3 }
 0x405   : > { %v7714_v47 = vpop.eup %5542  ;;  %v2056_v31 = vmul.f32 1.442695, %v2036_v20  ;;  %v2404_v20 = vmul.f32 1.442695, %v2387_v41 }
 0x406   : > { %2090 = vadd.xlane.f32.xlu2 %v7714_v47 }
 0x407   : > { %5544 = vpow2.f32 %v2056_v31 }
 0x408   : > { %5546 = vrcp.f32 %v1709_v63 }
 0x40a   : > { %v2013_v60 = vpop.xlane.xlu2 %2012  ;;  %v1707_v53 = vpop.xlane.xlu1 %1706 }
 0x40b   : > { %v2038_v11 = vsub.f32 %v7560_v35, %v2013_v60  ;;  %v7718_v2 = vpop.xlane.xlu0 %2360  ;;  %5548 = vrcp.f32 %v1707_v53 }
 0x40d   : > { %v2060_v45 = vmul.f32 1.442695, %v2038_v11  ;;  %v7720_v19 = vpop.eup %5544  ;;  %v7733_v11 = vadd.f32 %v7377_v46, %v2329_v57 }
 0x40e   : > { %v5547_v58 = vpop.eup %5546  ;;  %2088 = vadd.xlane.f32.xlu1 %v7720_v19 }
 0x40f   : > { %5550 = vpow2.f32 %v2060_v45  ;;  %v1753_v35 = vmul.f32 %v5547_v58, %v7551_v37  ;;  %v7742_v58 = vadd.f32 %v7377_v46, %v2331_v14 }
 0x410   : > { %5552 = vpow2.f32 %v2404_v20 }
 0x411   : > { %v5549_v59 = vpop.eup %5548  ;;  %9017 = vst [vmem:[#allocation32_spill] sm:$0xff] %v7742_v58 }
 0x412   : > { %v1711_v1 = vpop.xlane.xlu2 %1710  ;;  %v7724_v54 = vpop.xlane.xlu1 %2362  ;;  %v1752_v63 = vmul.f32 %v5549_v59, %v7565_v26 }
 0x413   : > { %9016 = vst [vmem:[#allocation31_spill] sm:$0xff] %v7724_v54  ;;  %v7728_v31 = vpop.xlane.xlu0 %2014  ;;  %5554 = vrcp.f32 %v1711_v1 }
 0x414   : > { %v1767_v60 = vpack.c.bf16 %v1753_v35, %v1752_v63 }
 0x415   : > { %v7730_v53 = vpop.eup %5550 }
 0x416   : > { %2092 = vadd.xlane.f32.xlu0 %v7730_v53  ;;  %1835 = vmatmul.bf16.gmra.mxu0 %v1767_v60  ;;  %v7739_v45 = vpop.eup %5552 }
 0x417   : > { %2366 = vmax.xlane.f32.xlu1 %v7733_v11 }
 0x419   : > { %v5555_v57 = vpop.eup %5554 }
 0x41a   : > { %v2017_v26 = vpop.xlane.xlu2 %2016  ;;  %v7737_v55 = vpop.xlane.xlu1 %2364  ;;  %v1754_v20 = vmul.f32 %v5555_v57, %v7576_v12 }
 0x41b   : > { %v1713_v37 = vpop.xlane.xlu0 %1712 }
 0x41c   : > { %5556 = vrcp.f32 %v1713_v37 }
 0x41e   : > { %2864 = vrot.lane.b32.xlu2 %v7190_v0, %s6212_s3  ;;  %2436 = vadd.xlane.f32.xlu0 %v7739_v45 }
 0x41f   : > { %2368 = vmax.xlane.f32.xlu1 %v7742_v58 }
 0x422   : > { %v5557_v41 = vpop.eup %5556  ;;  %v2019_v59 = vpop.xlane.xlu2 %2018 }
 0x423   : > { %v1715_v1 = vpop.xlane.xlu1 %1714  ;;  %v2041_v63 = vsub.f32 %v7602_v56, %v2019_v59  ;;  %v1719_v35 = vpop.xlane.xlu0 %1718  ;;  %v1755_v60 = vmul.f32 %v5557_v41, %v7594_v17 }
 0x425   : > { %v2066_v14 = vmul.f32 1.442695, %v2041_v63  ;;  %v1768_v37 = vpack.c.bf16 %v1755_v60, %v1754_v20 }
 0x427   : > { %5558 = vpow2.f32 %v2066_v14  ;;  %1840 = vmatmul.bf16.gmra.mxu0 %v1768_v37 }
 0x428   : > { %5560 = vrcp.f32 %v1715_v1  ;;  %v7758_v1 = vpop.f32.mrf.mxu1 }
 0x42a   : > { %v1717_v36 = vpop.xlane.xlu2 %1716 }
 0x42b   : > { %v7751_v3 = vpop.xlane.xlu1 %2020  ;;  %v2023_v58 = vpop.xlane.xlu0 %2022  ;;  %5562 = vrcp.f32 %v1717_v36 }
 0x42d   : > { %v7753_v54 = vpop.eup %5558 }
 0x42e   : > { %2098 = vadd.xlane.f32.xlu0 %v7753_v54  ;;  %v5561_v56 = vpop.eup %5560 }
 0x42f   : > { %v1756_v12 = vmul.f32 %v5561_v56, %v7604_v51  ;;  %v2040_v51 = vsub.f32 %v7589_v29, %v2017_v26  ;;  %v2386_v29 = vsub.f32 %v7526_v34, %v7705_v61 }
 0x431   : > { %v5563_v59 = vpop.eup %5562 }
 0x432   : > { %v1757_v17 = vmul.f32 %v5563_v59, %v7618_v39  ;;  %v1723_v37 = vpop.xlane.xlu2 %1722  ;;  %v2683_v59 = vpop.f32.mrf.mxu1 }
 0x433   : > { %v1721_v38 = vpop.xlane.xlu1 %1720  ;;  %v1725_v57 = vpop.xlane.xlu0 %1724 }
 0x434   : > { %v1769_v41 = vpack.c.bf16 %v1757_v17, %v1756_v12  ;;  %5564 = vrcp.f32 %v1721_v38  ;;  %v2064_v38 = vmul.f32 1.442695, %v2040_v51  ;;  %v7771_v17 = vadd.f32 %v7377_v46, %v2683_v59 }
 0x435   : > { %5566 = vrcp.f32 %v1719_v35 }
 0x437   : > { %1845 = vmatmul.bf16.gmra.mxu0 %v1769_v41 }
 0x438   : > { %2512 = vrot.lane.b32.xlu1 %v7177_v23, %s6210_s18 }
 0x43a   : > { %v5565_v14 = vpop.eup %5564 }
 0x43b   : > { %v2025_v36 = vpop.xlane.xlu1 %2024  ;;  %v7762_v63 = vpop.xlane.xlu0 %2028  ;;  %v1759_v56 = vmul.f32 %v5565_v14, %v7627_v40  ;;  %v2043_v14 = vsub.f32 %v7622_v7, %v2023_v58 }
 0x43c   : > { %v2044_v20 = vsub.f32 %v7641_v8, %v2025_v36  ;;  %v5567_v39 = vpop.eup %5566  ;;  %v2402_v36 = vmul.f32 1.442695, %v2386_v29  ;;  %v2685_v7 = vpop.f32.mrf.mxu1 }
 0x43d   : > { %v1758_v23 = vmul.f32 %v5567_v39, %v7606_v6  ;;  %v7779_v6 = vpop.xlane.xlu2 %2026 }
 0x43e   : > { %v2072_v60 = vmul.f32 1.442695, %v2044_v20 }
 0x43f   : > { %v1770_v8 = vpack.c.bf16 %v1759_v56, %v1758_v23 }
 0x440   : > { %5568 = vpow2.f32 %v2072_v60 }
 0x441   : > { %5570 = vpow2.f32 %v2064_v38 }
 0x442   : > { %5572 = vrcp.f32 %v1723_v37 }
 0x443   : > { %v1727_v12 = vpop.xlane.xlu1 %1726  ;;  %v7768_v35 = vpop.xlane.xlu0 %1730  ;;  %5574 = vrcp.f32 %v1725_v57  ;;  %v2070_v57 = vmul.f32 1.442695, %v2043_v14 }
 0x444   : > { %5576 = vpow2.f32 %v2402_v36 }
 0x445   : > { %v1729_v37 = vpop.xlane.xlu2 %1728 }
 0x446   : > { %v7773_v41 = vpop.eup %5568 }
 0x447   : > { %1850 = vmatmul.bf16.gmra.mxu0 %v1770_v8  ;;  %2720 = vmax.xlane.f32.xlu2 %v7771_v17  ;;  %v7783_v26 = vpop.eup %5570  ;;  %v2039_v8 = vsub.f32 %v7581_v28, %v7728_v31  ;;  %v2688_v31 = vpop.f32.mrf.mxu1 }
 0x448   : > { %2104 = vadd.xlane.f32.xlu0 %v7773_v41  ;;  %v5573_v20 = vpop.eup %5572 }
 0x449   : > { %v5575_v60 = vpop.eup %5574  ;;  %v1760_v34 = vmul.f32 %v5573_v20, %v7629_v5 }
 0x44a   : > { %v1761_v61 = vmul.f32 %v5575_v60, %v7631_v22  ;;  %v7789_v59 = vpop.eup %5576 }
 0x44b   : > { %v7781_v40 = vpop.xlane.xlu1 %2030  ;;  %v2083_v51 = vpop.xlane.xlu0 %2082 }
 0x44c   : > { %5578 = vrcp.f32 %v2083_v51  ;;  %v1771_v56 = vpack.c.bf16 %v1761_v61, %v1760_v34 }
 0x44f   : > { %2096 = vadd.xlane.f32.xlu2 %v7783_v26 }
 0x452   : > { %v5579_v38 = vpop.eup %5578 }
 0x453   : > { %v2081_v39 = vpop.xlane.xlu1 %2080  ;;  %v2129_v22 = vmul.f32 %v5579_v38, %v7670_v52  ;;  %v7798_v36 = vpop.xlane.xlu0 %2710  ;;  %v7805_v52 = vadd.f32 %v7377_v46, %v7758_v1 }
 0x454   : > { %5580 = vrcp.f32 %v2081_v39  ;;  %v2334_v1 = vpop.f32.mrf.mxu3 }
 0x455   : > { %5582 = vpow2.f32 %v2070_v57  ;;  %v2709_v57 = vpop.xlane.xlu2 %2708  ;;  %v7821_v39 = vadd.f32 %v7377_v46, %v2334_v1  ;;  %v2741_v1 = vsub.f32 %v7683_v44, %v7798_v36 }
 0x456   : > { %5584 = vrcp.f32 %v1729_v37 }
 0x457   : > { %1855 = vmatmul.bf16.gmra.mxu0 %v1771_v56  ;;  %2434 = vadd.xlane.f32.xlu2 %v7789_v59  ;;  %5586 = vrcp.f32 %v1727_v12  ;;  %v2062_v12 = vmul.f32 1.442695, %v2039_v8 }
 0x459   : > { %5588 = vpow2.f32 %v2062_v12 }
 0x45a   : > { %v5581_v58 = vpop.eup %5580 }
 0x45b   : > { %v1733_v23 = vpop.xlane.xlu1 %1732  ;;  %v2128_v5 = vmul.f32 %v5581_v58, %v7677_v27  ;;  %v7796_v29 = vpop.eup %5582  ;;  %v7825_v58 = vadd.f32 %v7377_v46, %v2685_v7 }
 0x45c   : > { %2510 = vrot.lane.b32.xlu0 %v7190_v0, %s6210_s18  ;;  %v5585_v60 = vpop.eup %5584  ;;  %v7813_v0 = vadd.f32 %v7377_v46, %v2688_v31  ;;  %v2085_v61 = vpop.xlane.xlu0 %2084  ;;  %5590 = vrcp.f32 %v1733_v23  ;;  %v2388_v23 = vsub.f32 %v7549_v24, %v7711_v18  ;;  %v2046_v18 = vsub.f32 %v7648_v33, %v7762_v63 }
 0x45d   : > { %v2144_v20 = vpack.c.bf16 %v2129_v22, %v2128_v5  ;;  %v5587_v14 = vpop.eup %5586  ;;  %v1763_v27 = vmul.f32 %v5585_v60, %v7656_v49  ;;  %5592 = vrcp.f32 %v2085_v61  ;;  %v2336_v8 = vpop.f32.mrf.mxu3 }
 0x45e   : > { %v1762_v28 = vmul.f32 %v5587_v14, %v7654_v9  ;;  %5594 = vrcp.f32 %v7768_v35  ;;  %v7829_v35 = vpop.xlane.xlu2 %2714  ;;  %v2406_v12 = vmul.f32 1.442695, %v2388_v23  ;;  %v2690_v31 = vpop.f32.mrf.mxu1 }
 0x45f   : > { %2184 = vmatmul.bf16.vlgmr.msrb.gmra.mxu2 %v2144_v20  ;;  %2102 = vadd.xlane.f32.xlu2 %v7796_v29  ;;  %v7816_v9 = vpop.eup %5588 }
 0x460   : > { %v1772_v34 = vpack.c.bf16 %v1763_v27, %v1762_v28  ;;  %v7837_v28 = vadd.f32 %v7377_v46, %v2336_v8  ;;  %v2740_v46 = vsub.f32 %v7665_v50, %v2709_v57 }
 0x462   : > { %2718 = vmax.xlane.f32.xlu1 %v7805_v52  ;;  %v5591_v37 = vpop.eup %5590 }
 0x463   : > { %v7810_v51 = vpop.xlane.xlu1 %2712  ;;  %v5593_v56 = vpop.eup %5592  ;;  %v1765_v22 = vmul.f32 %v5591_v37, %v7690_v43  ;;  %v2389_v43 = vsub.f32 %v7563_v4, %v7718_v2 }
 0x464   : > { %v5595_v38 = vpop.eup %5594  ;;  %v2130_v20 = vmul.f32 %v5593_v56, %v7692_v30  ;;  %v2758_v56 = vmul.f32 1.442695, %v2741_v1 }
 0x465   : > { %v1764_v14 = vmul.f32 %v5595_v38, %v7658_v32  ;;  %v2408_v32 = vmul.f32 1.442695, %v2389_v43  ;;  %v7862_v38 = vld [vmem:[%s538_s26] ss:$0 sm:$0xff]  ;;  %v2717_v43 = vpop.xlane.xlu0 %2716  ;;  %s9023_s26 = sld [smem:[#allocation39_spill]] }
 0x466   : > { %v2693_v50 = vpop.f32.mrf.mxu1  ;;  %v7865_v23 = vadd.f32 %v7862_v38, %v2690_v31 }
 0x467   : > { %1860 = vmatmul.bf16.gmra.mxu0 %v1772_v34  ;;  %2724 = vmax.xlane.f32.xlu2 %v7813_v0  ;;  %v1773_v24 = vpack.c.bf16 %v1765_v22, %v1764_v14  ;;  %v2756_v34 = vmul.f32 1.442695, %v2740_v46  ;;  %v7881_v14 = vadd.f32 %v7862_v38, %v2693_v50 }
 0x46a   : > { %2094 = vadd.xlane.f32.xlu1 %v7816_v9 }
 0x46b   : > { %v2087_v49 = vpop.xlane.xlu1 %2086 }
 0x46c   : > { %5596 = vrcp.f32 %v2087_v49 }
 0x46d   : > { %5598 = vpow2.f32 %v2406_v12 }
 0x46f   : > { %2370 = vmax.xlane.f32.xlu2 %v7821_v39 }
 0x472   : > { %v5597_v5 = vpop.eup %5596  ;;  %2722 = vmax.xlane.f32.xlu1 %v7825_v58 }
 0x473   : > { %v2131_v60 = vmul.f32 %v5597_v5, %v7707_v13  ;;  %v2076_v13 = vmul.f32 1.442695, %v2046_v18  ;;  %v7844_v27 = vpop.eup %5598  ;;  %v2339_v5 = vpop.f32.mrf.mxu3 }
 0x475   : > { %v2145_v7 = vpack.c.bf16 %v2131_v60, %v2130_v20  ;;  %5600 = vpow2.f32 %v2076_v13  ;;  %v2042_v13 = vsub.f32 %v7616_v21, %v7751_v3 }
 0x476   : > { %5602 = vpow2.f32 %v2408_v32  ;;  %v2744_v32 = vsub.f32 %v7701_v15, %v2717_v43 }
 0x477   : > { %2189 = vmatmul.bf16.gmra.mxu2 %v2145_v7  ;;  %1865 = vmatmul.bf16.gmra.mxu0 %v1773_v24  ;;  %v2068_v31 = vmul.f32 1.442695, %v2042_v13 }
 0x478   : > { %2372 = vmax.xlane.f32.xlu2 %v7837_v28 }
 0x479   : > { %v2091_v30 = vpop.xlane.xlu2 %2090 }
 0x47a   : > { %5604 = vrcp.f32 %v2091_v30  ;;  %v7895_v30 = vadd.f32 %v7862_v38, %v2339_v5 }
 0x47b   : > { %v7848_v4 = vpop.eup %5600 }
 0x47c   : > { %v7850_v2 = vpop.eup %5602 }
 0x480   : > { %2438 = vadd.xlane.f32.xlu2 %v7844_v27  ;;  %v5605_v61 = vpop.eup %5604 }
 0x481   : > { %v2865_v33 = vpop.permute.xlu2 %2864  ;;  %v2089_v63 = vpop.xlane.xlu1 %2088  ;;  %v2133_v37 = vmul.f32 %v5605_v61, %v7714_v47  ;;  %v2742_v47 = vsub.f32 %v7698_v42, %v7810_v51  ;;  %v2391_v51 = vsub.f32 %v7592_v10, %v7737_v55 }
 0x482   : > { %2889 = vmatpush.bf16.msra.mxu2 %v2865_v33  ;;  %5606 = vrcp.f32 %v2089_v63  ;;  %v2341_v42 = vpop.f32.mrf.mxu3  ;;  %v2764_v33 = vmul.f32 1.442695, %v2744_v32 }
 0x483   : > { %5608 = vpow2.f32 %v2756_v34  ;;  %v2760_v22 = vmul.f32 1.442695, %v2742_v47  ;;  %v7892_v24 = vadd.f32 %v7862_v38, %v2341_v42  ;;  %v2412_v18 = vmul.f32 1.442695, %v2391_v51 }
 0x484   : > { %5610 = vpow2.f32 %v2758_v56 }
 0x485   : > { %5612 = vpow2.f32 %v2760_v22 }
 0x486   : > { %2108 = vadd.xlane.f32.xlu0 %v7848_v4  ;;  %5614 = vpow2.f32 %v2412_v18 }
 0x487   : > { %5616 = vpow2.f32 %v2068_v31 }
 0x488   : > { %2440 = vadd.xlane.f32.xlu2 %v7850_v2  ;;  %v5607_v57 = vpop.eup %5606  ;;  %5618 = vpow2.f32 %v2764_v33 }
 0x489   : > { %v2132_v49 = vmul.f32 %v5607_v57, %v7720_v19  ;;  %v7867_v36 = vpop.eup %5608  ;;  %v2695_v19 = vpop.f32.mrf.mxu1 }
 0x48a   : > { %v7873_v8 = vpop.eup %5610  ;;  %v7876_v20 = vadd.f32 %v7862_v38, %v2695_v19  ;;  %v2367_v60 = vpop.xlane.xlu1 %2366 }
 0x48b   : > { %2862 = vrot.lane.b32.xlu1 %v7195_v62, %s6212_s3  ;;  %v2146_v44 = vpack.c.bf16 %v2133_v37, %v2132_v49  ;;  %v7883_v12 = vpop.eup %5612  ;;  %v7902_v10 = vpop.f32.mrf.mxu3  ;;  %v2392_v3 = vsub.f32 %v7733_v11, %v2367_v60 }
 0x48c   : > { %v2093_v34 = vpop.xlane.xlu0 %2092  ;;  %v7907_v61 = vpop.eup %5614 }
 0x48d   : > { %2194 = vmatmul.bf16.gmra.mxu2 %v2146_v44  ;;  %v2414_v15 = vmul.f32 1.442695, %v2392_v3  ;;  %v7912_v1 = vpop.eup %5616 }
 0x48e   : > { %2726 = vmax.xlane.f32.xlu0 %v7865_v23  ;;  %v7914_v50 = vpop.eup %5618 }
 0x48f   : > { %5620 = vpow2.f32 %v2414_v15 }
 0x490   : > { %2788 = vadd.xlane.f32.xlu2 %v7867_v36 }
 0x491   : > { %v2698_v55 = vpop.f32.mrf.mxu1 }
 0x492   : > { %v7889_v7 = vpop.xlane.xlu1 %2368  ;;  %v7905_v63 = vadd.f32 %v7862_v38, %v2698_v55 }
 0x493   : > { %v2346_v21 = vpop.f32.mrf.mxu3 }
 0x494   : > { %v7917_v57 = vadd.f32 %v7862_v38, %v2346_v21  ;;  %v2437_v49 = vpop.xlane.xlu0 %2436 }
 0x495   : > { %v7923_v56 = vpop.eup %5620 }
 0x496   : > { %2790 = vadd.xlane.f32.xlu0 %v7873_v8 }
 0x498   : > { %2730 = vmax.xlane.f32.xlu2 %v7876_v20 }
 0x499   : > { %v7926_v19 = vpop.f32.mrf.mxu1 }
 0x49e   : > { %2728 = vmax.xlane.f32.xlu0 %v7881_v14 }
 0x4a0   : > { %2792 = vadd.xlane.f32.xlu2 %v7883_v12 }
 0x4a1   : > { %v2099_v47 = vpop.xlane.xlu0 %2098  ;;  %v2703_v42 = vpop.f32.mrf.mxu1 }
 0x4a6   : > { %2376 = vmax.xlane.f32.xlu0 %v7892_v24 }
 0x4a8   : > { %2374 = vmax.xlane.f32.xlu2 %v7895_v30 }
 0x4aa   : > { %v2513_v46 = vpop.permute.xlu1 %2512 }
 0x4ab   : > { %2534 = vmatpush.bf16.msra.mxu0 %v2513_v46 }
 0x4ae   : > { %2732 = vmax.xlane.f32.xlu0 %v7905_v63 }
 0x4b0   : > { %2444 = vadd.xlane.f32.xlu2 %v7907_v61 }
 0x4b5   : > { %2100 = vadd.xlane.f32.xlu1 %v7912_v1 }
 0x4b6   : > { %2796 = vadd.xlane.f32.xlu0 %v7914_v50 }
 0x4b8   : > { %2380 = vmax.xlane.f32.xlu2 %v7917_v57 }
 0x4ba   : > { %v2721_v11 = vpop.xlane.xlu2 %2720 }
 0x4bb   : > { %v2746_v37 = vsub.f32 %v7771_v17, %v2721_v11  ;;  %v7930_v60 = vpop.xlane.xlu0 %2104  ;;  %v7934_v17 = vadd.f32 %v7862_v38, %v2703_v42 }
 0x4bd   : > { %v2768_v44 = vmul.f32 1.442695, %v2746_v37 }
 0x4be   : > { %2446 = vadd.xlane.f32.xlu0 %v7923_v56 }
 0x4bf   : > { %5622 = vpow2.f32 %v2768_v44 }
 0x4c0   : > { %5624 = vrcp.f32 %v2437_v49 }
 0x4c2   : > { %v2097_v5 = vpop.xlane.xlu2 %2096 }
 0x4c5   : > { %v7928_v22 = vpop.eup %5622 }
 0x4c6   : > { %2800 = vadd.xlane.f32.xlu2 %v7928_v22  ;;  %v5625_v43 = vpop.eup %5624 }
 0x4c7   : > { %v7940_v32 = vmul.f32 %v5625_v43, %v7739_v45  ;;  %v2045_v43 = vsub.f32 %v7645_v48, %v7779_v6 }
 0x4ca   : > { %v2435_v51 = vpop.xlane.xlu2 %2434 }
 0x4cb   : > { %5626 = vrcp.f32 %v2435_v51 }
 0x4cc   : > { %5628 = vrcp.f32 %v2093_v34 }
 0x4ce   : > { %v2511_v18 = vpop.permute.xlu0 %2510  ;;  %2860 = vrot.lane.b32.xlu1 %v7206_v25, %s6212_s3  ;;  %2736 = vmax.xlane.f32.xlu2 %v7934_v17 }
 0x4cf   : > { %2535 = vmatpush.bf16.msra.mxu0 %v2511_v18 }
 0x4d1   : > { %v5627_v13 = vpop.eup %5626 }
 0x4d2   : > { %v7943_v55 = vmul.f32 %v5627_v13, %v7789_v59  ;;  %v7945_v31 = vpop.xlane.xlu2 %2102  ;;  %v5629_v45 = vpop.eup %5628 }
 0x4d3   : > { %v2134_v11 = vmul.f32 %v5629_v45, %v7730_v53 }
 0x4d4   : > { %v2498_v46 = vpack.c.bf16 %v7940_v32, %v7943_v55 }
 0x4d5   : > { %v7949_v33 = vpop.xlane.xlu1 %2718 }
 0x4d6   : > { %2508 = vrot.lane.b32.xlu1 %v7195_v62, %s6210_s18 }
 0x4da   : > { %v7953_v3 = vpop.xlane.xlu2 %2724 }
 0x4dd   : > { %v2095_v21 = vpop.xlane.xlu1 %2094 }
 0x4de   : > { %5630 = vrcp.f32 %v2095_v21  ;;  %v2074_v21 = vmul.f32 1.442695, %v2045_v43 }
 0x4df   : > { %5632 = vrcp.f32 %v2097_v5 }
 0x4e2   : > { %v2371_v15 = vpop.xlane.xlu2 %2370 }
 0x4e4   : > { %v5631_v49 = vpop.eup %5630 }
 0x4e5   : > { %v2723_v59 = vpop.xlane.xlu1 %2722  ;;  %v2135_v37 = vmul.f32 %v5631_v49, %v7816_v9  ;;  %v5633_v34 = vpop.eup %5632  ;;  %v2047_v49 = vsub.f32 %v7668_v16, %v7781_v40 }
 0x4e6   : > { %v2747_v44 = vsub.f32 %v7825_v58, %v2723_v59  ;;  %v2136_v9 = vmul.f32 %v5633_v34, %v7783_v26  ;;  %v2705_v58 = vpop.f32.mrf.mxu1  ;;  %v2349_v59 = vpop.f32.mrf.mxu3 }
 0x4e7   : > { %v2147_v42 = vpack.c.bf16 %v2135_v37, %v2134_v11  ;;  %v7966_v45 = vadd.f32 %v7862_v38, %v2705_v58  ;;  %v7977_v16 = vadd.f32 %v7862_v38, %v2349_v59 }
 0x4e8   : > { %v2770_v51 = vmul.f32 1.442695, %v2747_v44 }
 0x4e9   : > { %2199 = vmatmul.bf16.gmra.mxu2 %v2147_v42 }
 0x4ea   : > { %5634 = vpow2.f32 %v2770_v51 }
 0x4eb   : > { %v2373_v62 = vpop.xlane.xlu2 %2372  ;;  %5636 = vrcp.f32 %v2099_v47 }
 0x4ec   : > { %5638 = vpow2.f32 %v2074_v21  ;;  %v2395_v6 = vsub.f32 %v7837_v28, %v2373_v62 }
 0x4ee   : > { %v2420_v44 = vmul.f32 1.442695, %v2395_v6 }
 0x4f0   : > { %v7958_v18 = vpop.eup %5634 }
 0x4f1   : > { %2802 = vadd.xlane.f32.xlu0 %v7958_v18  ;;  %v5637_v53 = vpop.eup %5636 }
 0x4f2   : > { %v2137_v5 = vmul.f32 %v5637_v53, %v7753_v54  ;;  %v2078_v54 = vmul.f32 1.442695, %v2047_v49  ;;  %v7974_v37 = vpop.eup %5638 }
 0x4f3   : > { %v2439_v13 = vpop.xlane.xlu2 %2438 }
 0x4f4   : > { %v2148_v47 = vpack.c.bf16 %v2137_v5, %v2136_v9  ;;  %5640 = vrcp.f32 %v2439_v13  ;;  %v2394_v9 = vsub.f32 %v7821_v39, %v2371_v15 }
 0x4f9   : > { %v7970_v48 = vpop.xlane.xlu0 %2108  ;;  %2204 = vmatmul.bf16.gmra.mxu2 %v2148_v47  ;;  %2738 = vmax.xlane.f32.xlu0 %v7966_v45 }
 0x4fa   : > { %v5641_v42 = vpop.eup %5640 }
 0x4fb   : > { %v2441_v26 = vpop.xlane.xlu2 %2440  ;;  %v7983_v34 = vmul.f32 %v5641_v42, %v7844_v27  ;;  %v2418_v27 = vmul.f32 1.442695, %v2394_v9 }
 0x4fc   : > { %5642 = vrcp.f32 %v2441_v26 }
 0x4fd   : > { %v2863_v11 = vpop.permute.xlu1 %2862  ;;  %5644 = vpow2.f32 %v2078_v54 }
 0x4fe   : > { %2890 = vmatpush.bf16.msra.mxu2 %v2863_v11  ;;  %5646 = vpow2.f32 %v2420_v44 }
 0x500   : > { %2106 = vadd.xlane.f32.xlu1 %v7974_v37 }
 0x501   : > { %v2727_v51 = vpop.xlane.xlu0 %2726  ;;  %2382 = vmax.xlane.f32.xlu0 %v7977_v16 }
 0x502   : > { %v5643_v40 = vpop.eup %5642  ;;  %v2749_v28 = vsub.f32 %v7865_v23, %v2727_v51 }
 0x503   : > { %v2789_v62 = vpop.xlane.xlu2 %2788  ;;  %v7986_v43 = vmul.f32 %v5643_v40, %v7850_v2  ;;  %v7991_v58 = vpop.eup %5644 }
 0x504   : > { %v2774_v53 = vmul.f32 1.442695, %v2749_v28  ;;  %v7993_v21 = vpop.eup %5646 }
 0x505   : > { %v2499_v13 = vpack.c.bf16 %v7986_v43, %v7983_v34 }
 0x506   : > { %5648 = vpow2.f32 %v2774_v53 }
 0x507   : > { %5650 = vrcp.f32 %v2789_v62 }
 0x508   : > { %2110 = vadd.xlane.f32.xlu1 %v7991_v58 }
 0x509   : > { %v2791_v23 = vpop.xlane.xlu0 %2790  ;;  %2452 = vadd.xlane.f32.xlu0 %v7993_v21 }
 0x50a   : > { %5652 = vrcp.f32 %v2791_v23 }
 0x50b   : > { %v2731_v2 = vpop.xlane.xlu2 %2730  ;;  %5654 = vpow2.f32 %v2418_v27 }
 0x50c   : > { %v7997_v5 = vpop.eup %5648  ;;  %v2751_v39 = vsub.f32 %v7876_v20, %v2731_v2 }
 0x50d   : > { %2806 = vadd.xlane.f32.xlu2 %v7997_v5  ;;  %v5651_v47 = vpop.eup %5650 }
 0x50e   : > { %v8002_v49 = vmul.f32 %v5651_v47, %v7867_v36  ;;  %v2778_v59 = vmul.f32 1.442695, %v2751_v39 }
 0x510   : > { %v5653_v15 = vpop.eup %5652  ;;  %5656 = vpow2.f32 %v2778_v59 }
 0x511   : > { %v8005_v6 = vmul.f32 %v5653_v15, %v7873_v8  ;;  %v8007_v26 = vpop.xlane.xlu0 %2728  ;;  %v8013_v44 = vpop.eup %5654 }
 0x513   : > { %v8009_v54 = vpop.xlane.xlu2 %2792  ;;  %v2852_v11 = vpack.c.bf16 %v8005_v6, %v8002_v49 }
 0x515   : > { %2450 = vadd.xlane.f32.xlu2 %v8013_v44 }
 0x516   : > { %v8019_v8 = vpop.eup %5656 }
 0x519   : > { %v8016_v20 = vpop.xlane.xlu0 %2376 }
 0x51b   : > { %v2375_v36 = vpop.xlane.xlu2 %2374 }
 0x51c   : > { %v2396_v42 = vsub.f32 %v7895_v30, %v2375_v36 }
 0x51d   : > { %2810 = vadd.xlane.f32.xlu2 %v8019_v8 }
 0x51e   : > { %v2422_v40 = vmul.f32 1.442695, %v2396_v42 }
 0x520   : > { %5658 = vpow2.f32 %v2422_v40 }
 0x521   : > { %v2733_v51 = vpop.xlane.xlu0 %2732  ;;  %2506 = vrot.lane.b32.xlu1 %v7206_v25, %s6210_s18 }
 0x522   : > { %v2752_v28 = vsub.f32 %v7905_v63, %v2733_v51  ;;  %v9019_v51 = vld [vmem:[#allocation31_spill] sm:$0xff] }
 0x523   : > { %v8025_v62 = vpop.xlane.xlu2 %2444 }
 0x524   : > { %v2780_v53 = vmul.f32 1.442695, %v2752_v28  ;;  %v9020_v28 = vld [vmem:[#allocation29_spill] sm:$0xff] }
 0x526   : > { %v8027_v9 = vpop.eup %5658  ;;  %5660 = vpow2.f32 %v2780_v53  ;;  %v2390_v53 = vsub.f32 %v9020_v28, %v9019_v51  ;;  %v8082_v28 = vpop.f32.mrf.mxu0 }
 0x527   : > { %2454 = vadd.xlane.f32.xlu0 %v8027_v9  ;;  %5662 = vrcp.f32 %v7945_v31 }
 0x528   : > { %v2101_v30 = vpop.xlane.xlu1 %2100 }
 0x529   : > { %5664 = vrcp.f32 %v2101_v30  ;;  %v2410_v30 = vmul.f32 1.442695, %v2390_v53 }
 0x52b   : > { %v2381_v23 = vpop.xlane.xlu2 %2380 }
 0x52c   : > { %v2399_v27 = vsub.f32 %v7917_v57, %v2381_v23  ;;  %v8032_v2 = vpop.eup %5660  ;;  %v9018_v57 = vld [vmem:[#allocation30_spill] sm:$0xff]  ;;  %v2745_v23 = vsub.f32 %v7805_v52, %v7949_v33  ;;  %v9021_v52 = vld [vmem:[#allocation32_spill] sm:$0xff] }
 0x52d   : > { %v5663_v25 = vpop.eup %5662  ;;  %2812 = vadd.xlane.f32.xlu2 %v8032_v2  ;;  %v2743_v36 = vsub.f32 %v9018_v57, %v7829_v35  ;;  %v2393_v33 = vsub.f32 %v9021_v52, %v7889_v7  ;;  %v8070_v57 = vadd.f32 %v7862_v38, %v7902_v10 }
 0x52e   : > { %v2428_v47 = vmul.f32 1.442695, %v2399_v27  ;;  %v2139_v15 = vmul.f32 %v5663_v25, %v7796_v29  ;;  %v2766_v27 = vmul.f32 1.442695, %v2745_v23  ;;  %v8051_v25 = vpop.xlane.xlu0 %2796  ;;  %v2750_v23 = vsub.f32 %v7881_v14, %v8007_v26 }
 0x52f   : > { %v5665_v63 = vpop.eup %5664  ;;  %v2762_v42 = vmul.f32 1.442695, %v2743_v36  ;;  %v2748_v36 = vsub.f32 %v7813_v0, %v7953_v3 }
 0x530   : > { %5666 = vpow2.f32 %v2428_v47  ;;  %v2138_v39 = vmul.f32 %v5665_v63, %v7912_v1 }
 0x531   : > { %5668 = vpow2.f32 %v2762_v42  ;;  %v2772_v42 = vmul.f32 1.442695, %v2748_v36 }
 0x532   : > { %v2149_v59 = vpack.c.bf16 %v2139_v15, %v2138_v39  ;;  %5670 = vpow2.f32 %v2410_v30  ;;  %v8061_v39 = vadd.f32 %v7862_v38, %v7926_v19 }
 0x533   : > { %5672 = vpow2.f32 %v2766_v27 }
 0x534   : > { %2209 = vmatmul.bf16.gmra.mxu2 %v2149_v59  ;;  %v2416_v59 = vmul.f32 1.442695, %v2393_v33 }
 0x536   : > { %v8037_v31 = vpop.eup %5666  ;;  %v8057_v63 = vpop.xlane.xlu0 %2446  ;;  %5674 = vpow2.f32 %v2416_v59  ;;  %v2776_v59 = vmul.f32 1.442695, %v2750_v23 }
 0x537   : > { %2460 = vadd.xlane.f32.xlu2 %v8037_v31  ;;  %v8044_v29 = vpop.eup %5668  ;;  %5676 = vrcp.f32 %v7930_v60 }
 0x538   : > { %v8049_v35 = vpop.eup %5670  ;;  %5678 = vpow2.f32 %v2772_v42  ;;  %v8097_v42 = vpop.f32.mrf.mxu0 }
 0x539   : > { %v8054_v47 = vpop.eup %5672 }
 0x540   : > { %v2861_v40 = vpop.permute.xlu1 %2860 }
 0x541   : > { %2891 = vmatpush.bf16.msra.mxu2 %v2861_v40  ;;  %v8077_v40 = vpop.eup %5674 }
 0x542   : > { %v5677_v3 = vpop.eup %5676 }
 0x543   : > { %v8084_v53 = vpop.eup %5678  ;;  %v2140_v60 = vmul.f32 %v5677_v3, %v7773_v41  ;;  %v2397_v41 = vsub.f32 %v7892_v24, %v8016_v20  ;;  %v8115_v20 = vpop.f32.mrf.mxu2 }
 0x545   : > { %v2424_v26 = vmul.f32 1.442695, %v2397_v41  ;;  %v2801_v41 = vpop.xlane.xlu2 %2800 }
 0x548   : > { %v2509_v1 = vpop.permute.xlu1 %2508 }
 0x549   : > { %2536 = vmatpush.bf16.msra.mxu0 %v2509_v1 }
 0x54b   : > { %2794 = vadd.xlane.f32.xlu1 %v8044_v29 }
 0x553   : > { %2442 = vadd.xlane.f32.xlu1 %v8049_v35 }
 0x55b   : > { %2798 = vadd.xlane.f32.xlu1 %v8054_v47 }
 0x563   : > { %2734 = vmax.xlane.f32.xlu1 %v8061_v39 }
 0x564   : > { %v8066_v15 = vpop.xlane.xlu0 %2802 }
 0x56b   : > { %2378 = vmax.xlane.f32.xlu1 %v8070_v57 }
 0x56c   : > { %v8075_v19 = vpop.xlane.xlu0 %2738 }
 0x573   : > { %2448 = vadd.xlane.f32.xlu1 %v8077_v40  ;;  %v2107_v7 = vpop.xlane.xlu1 %2106 }
 0x574   : > { %5680 = vrcp.f32 %v2107_v7  ;;  %v2383_v10 = vpop.xlane.xlu0 %2382  ;;  %v8103_v7 = vpop.f32.mrf.mxu0 }
 0x575   : > { %v2400_v51 = vsub.f32 %v7977_v16, %v2383_v10  ;;  %v2351_v16 = vpop.f32.mrf.mxu3 }
 0x576   : > { %v8095_v36 = vadd.f32 %v7862_v38, %v2351_v16 }
 0x577   : > { %v2430_v0 = vmul.f32 1.442695, %v2400_v51 }
 0x579   : > { %5682 = vpow2.f32 %v2430_v0 }
 0x57a   : > { %v5681_v30 = vpop.eup %5680 }
 0x57b   : > { %2804 = vadd.xlane.f32.xlu1 %v8084_v53  ;;  %v2141_v1 = vmul.f32 %v5681_v30, %v7974_v37  ;;  %v2111_v27 = vpop.xlane.xlu1 %2110 }
 0x57c   : > { %5684 = vrcp.f32 %v2111_v27  ;;  %v8112_v3 = vpop.f32.mrf.mxu0 }
 0x57d   : > { %v2150_v52 = vpack.c.bf16 %v2141_v1, %v2140_v60  ;;  %5686 = vrcp.f32 %v7970_v48 }
 0x57e   : > { %5688 = vpow2.f32 %v2776_v59 }
 0x57f   : > { %v8091_v33 = vpop.eup %5682  ;;  %2214 = vmatmul.bf16.gmra.mxu2 %v2150_v52  ;;  %5690 = vpow2.f32 %v2424_v26 }
 0x580   : > { %2462 = vadd.xlane.f32.xlu2 %v8091_v33  ;;  %5692 = vrcp.f32 %v8009_v54 }
 0x582   : > { %v5685_v14 = vpop.eup %5684 }
 0x583   : > { %2384 = vmax.xlane.f32.xlu1 %v8095_v36  ;;  %v5687_v37 = vpop.eup %5686  ;;  %v2143_v10 = vmul.f32 %v5685_v14, %v7991_v58 }
 0x584   : > { %v8106_v51 = vpop.eup %5688  ;;  %v2142_v38 = vmul.f32 %v5687_v37, %v7848_v4  ;;  %v8120_v58 = vpop.f32.mrf.mxu0 }
 0x585   : > { %v8110_v0 = vpop.eup %5690  ;;  %v8122_v4 = vpop.f32.mrf.mxu2 }
 0x586   : > { %v2151_v48 = vpack.c.bf16 %v2143_v10, %v2142_v38 }
 0x58b   : > { %2808 = vadd.xlane.f32.xlu1 %v8106_v51 }
 0x58c   : > { %v8129_v60 = vpop.f32.mrf.mxu0 }
 0x58d   : > { %v8127_v30 = vpop.f32.mrf.mxu2 }
 0x58f   : > { %2219 = vmatmul.bf16.gmra.mxu2 %v2151_v48 }
 0x593   : > { %2456 = vadd.xlane.f32.xlu1 %v8110_v0  ;;  %v2507_v24 = vpop.permute.xlu1 %2506 }
 0x594   : > { %2537 = vmatpush.bf16.msra.mxu0 %v2507_v24  ;;  %v8136_v32 = vpop.f32.mrf.mxu0 }
 0x595   : > { %v8134_v1 = vpop.f32.mrf.mxu2 }
 0x597   : > { %2538 = vmatmul.bf16.vlgmr.msra.gmra.mxu0 %v2498_v46 }
 0x59c   : > { %v8140_v46 = vpop.f32.mrf.mxu0 }
 0x59d   : > { %v8138_v55 = vpop.f32.mrf.mxu2 }
 0x59f   : > { %2892 = vmatmul.bf16.vlgmr.msra.gmra.mxu2 %v2852_v11  ;;  %v5693_v11 = vpop.eup %5692 }
 0x5a0   : > { %v2838_v43 = vmul.f32 %v5693_v11, %v7883_v12 }
 0x5a4   : > { %v8145_v27 = vpop.f32.mrf.mxu0 }
 0x5a5   : > { %v8143_v6 = vpop.f32.mrf.mxu2 }
 0x5a7   : > { %2543 = vmatmul.bf16.gmra.mxu0 %v2499_v13 }
 0x5ac   : > { %v8155_v26 = vpop.f32.mrf.mxu0 }
 0x5ad   : > { %v8150_v16 = vpop.f32.mrf.mxu2 }
 0x5b5   : > { %v8157_v10 = vpop.f32.mrf.mxu2 }
 0x5be   : > { %v2795_v49 = vpop.xlane.xlu1 %2794 }
 0x5bf   : > { %5694 = vrcp.f32 %v2795_v49  ;;  %v2737_v49 = vpop.xlane.xlu2 %2736 }
 0x5c0   : > { %5696 = vrcp.f32 %v8025_v62 }
 0x5c5   : > { %v5695_v23 = vpop.eup %5694 }
 0x5c6   : > { %v2443_v34 = vpop.xlane.xlu1 %2442  ;;  %v2839_v13 = vmul.f32 %v5695_v23, %v8044_v29  ;;  %v5697_v54 = vpop.eup %5696 }
 0x5c7   : > { %5698 = vrcp.f32 %v2443_v34  ;;  %v2487_v62 = vmul.f32 %v5697_v54, %v7907_v61  ;;  %v8162_v23 = vpop.f32.mrf.mxu0  ;;  %v2754_v34 = vsub.f32 %v7934_v17, %v2737_v49 }
 0x5c8   : > { %v2853_v52 = vpack.c.bf16 %v2839_v13, %v2838_v43  ;;  %5700 = vrcp.f32 %v8051_v25  ;;  %v8166_v13 = vpop.f32.mrf.mxu2 }
 0x5c9   : > { %v2784_v43 = vmul.f32 1.442695, %v2754_v34 }
 0x5ca   : > { %2897 = vmatmul.bf16.gmra.mxu2 %v2853_v52 }
 0x5cd   : > { %v5699_v59 = vpop.eup %5698 }
 0x5ce   : > { %v2799_v14 = vpop.xlane.xlu1 %2798  ;;  %v2486_v37 = vmul.f32 %v5699_v59, %v8049_v35  ;;  %v5701_v29 = vpop.eup %5700 }
 0x5cf   : > { %5702 = vrcp.f32 %v2799_v14  ;;  %v2840_v24 = vmul.f32 %v5701_v29, %v7914_v50  ;;  %v8172_v17 = vpop.f32.mrf.mxu0  ;;  %v2807_v14 = vpop.xlane.xlu2 %2806 }
 0x5d0   : > { %v2500_v12 = vpack.c.bf16 %v2487_v62, %v2486_v37  ;;  %5704 = vrcp.f32 %v8066_v15  ;;  %v2755_v15 = vsub.f32 %v7966_v45, %v8075_v19  ;;  %v8181_v29 = vpop.f32.mrf.mxu2 }
 0x5d2   : > { %2548 = vmatmul.bf16.gmra.mxu0 %v2500_v12  ;;  %v2786_v12 = vmul.f32 1.442695, %v2755_v15 }
 0x5d5   : > { %v5703_v38 = vpop.eup %5702 }
 0x5d6   : > { %v2735_v48 = vpop.xlane.xlu1 %2734  ;;  %v2841_v25 = vmul.f32 %v5703_v38, %v8054_v47  ;;  %v5705_v52 = vpop.eup %5704 }
 0x5d7   : > { %v2753_v11 = vsub.f32 %v8061_v39, %v2735_v48 }
 0x5d8   : > { %v2854_v35 = vpack.c.bf16 %v2841_v25, %v2840_v24  ;;  %v2451_v25 = vpop.xlane.xlu2 %2450  ;;  %v8191_v49 = vpop.f32.mrf.mxu2 }
 0x5d9   : > { %v2782_v61 = vmul.f32 1.442695, %v2753_v11 }
 0x5da   : > { %2902 = vmatmul.bf16.gmra.mxu2 %v2854_v35 }
 0x5db   : > { %5706 = vpow2.f32 %v2782_v61  ;;  %v2453_v61 = vpop.xlane.xlu0 %2452 }
 0x5dc   : > { %5708 = vrcp.f32 %v2801_v41  ;;  %v2843_v41 = vmul.f32 %v5705_v52, %v7958_v18 }
 0x5dd   : > { %5710 = vpow2.f32 %v2784_v43 }
 0x5de   : > { %v2379_v50 = vpop.xlane.xlu1 %2378 }
 0x5df   : > { %v2398_v47 = vsub.f32 %v8070_v57, %v2379_v50 }
 0x5e1   : > { %v8169_v54 = vpop.eup %5706  ;;  %v2426_v39 = vmul.f32 1.442695, %v2398_v47 }
 0x5e2   : > { %2814 = vadd.xlane.f32.xlu0 %v8169_v54  ;;  %v5709_v59 = vpop.eup %5708 }
 0x5e3   : > { %5712 = vpow2.f32 %v2426_v39  ;;  %v2842_v37 = vmul.f32 %v5709_v59, %v7928_v22  ;;  %v8179_v62 = vpop.eup %5710 }
 0x5e4   : > { %5714 = vrcp.f32 %v8057_v63  ;;  %v8187_v63 = vpop.f32.mrf.mxu0 }
 0x5e5   : > { %v2855_v38 = vpack.c.bf16 %v2843_v41, %v2842_v37  ;;  %v2811_v41 = vpop.xlane.xlu2 %2810 }
 0x5e6   : > { %v2449_v57 = vpop.xlane.xlu1 %2448 }
 0x5e7   : > { %5716 = vrcp.f32 %v2449_v57 }
 0x5e8   : > { %5718 = vpow2.f32 %v2786_v12 }
 0x5e9   : > { %v8183_v48 = vpop.eup %5712  ;;  %5720 = vrcp.f32 %v2807_v14  ;;  %v2212_v14 = vpop.f32.mrf.mxu2 }
 0x5ea   : > { %2907 = vmatmul.bf16.gmra.mxu2 %v2855_v38  ;;  %2816 = vadd.xlane.f32.xlu0 %v8179_v62  ;;  %v5715_v45 = vpop.eup %5714 }
 0x5eb   : > { %2458 = vadd.xlane.f32.xlu1 %v8183_v48  ;;  %v2488_v19 = vmul.f32 %v5715_v45, %v7923_v56 }
 0x5ec   : > { %v8198_v47 = vpop.f32.mrf.mxu0 }
 0x5ed   : > { %v5717_v18 = vpop.eup %5716 }
 0x5ee   : > { %v2805_v22 = vpop.xlane.xlu1 %2804  ;;  %v2489_v24 = vmul.f32 %v5717_v18, %v8077_v40  ;;  %v8193_v35 = vpop.eup %5718 }
 0x5ef   : > { %5722 = vrcp.f32 %v2805_v22  ;;  %v5721_v34 = vpop.eup %5720 }
 0x5f0   : > { %v2501_v11 = vpack.c.bf16 %v2489_v24, %v2488_v19  ;;  %5724 = vrcp.f32 %v2451_v25  ;;  %v2845_v40 = vmul.f32 %v5721_v34, %v7997_v5 }
 0x5f1   : > { %5726 = vrcp.f32 %v2453_v61 }
 0x5f2   : > { %2553 = vmatmul.bf16.gmra.mxu0 %v2501_v11  ;;  %v5334_v11 = vpack.i.bf16 %v8122_v4, %v8115_v20  ;;  %v5364_v4 = vpack.i.bf16 %v8143_v6, %v8138_v55  ;;  %v5409_v6 = vpack.i.bf16 %v2212_v14, %v8191_v49 }
 0x5f3   : > { %2818 = vadd.xlane.f32.xlu1 %v8193_v35 }
 0x5f4   : > { %v8205_v45 = vpop.f32.mrf.mxu0 }
 0x5f5   : > { %v5723_v43 = vpop.eup %5722 }
 0x5f6   : > { %v2385_v50 = vpop.xlane.xlu1 %2384  ;;  %v2844_v56 = vmul.f32 %v5723_v43, %v8084_v53  ;;  %v5725_v59 = vpop.eup %5724 }
 0x5f7   : > { %v2401_v52 = vsub.f32 %v8095_v36, %v2385_v50  ;;  %v5727_v57 = vpop.eup %5726  ;;  %v2490_v37 = vmul.f32 %v5725_v59, %v8013_v44  ;;  %v2455_v36 = vpop.xlane.xlu0 %2454 }
 0x5f8   : > { %v2856_v39 = vpack.c.bf16 %v2845_v40, %v2844_v56  ;;  %v2491_v53 = vmul.f32 %v5727_v57, %v7993_v21 }
 0x5f9   : > { %v2432_v15 = vmul.f32 1.442695, %v2401_v52 }
 0x5fa   : > { %2912 = vmatmul.bf16.gmra.mxu2 %v2856_v39  ;;  %v2502_v5 = vpack.c.bf16 %v2491_v53, %v2490_v37 }
 0x5fb   : > { %5728 = vpow2.f32 %v2432_v15 }
 0x5fc   : > { %5730 = vrcp.f32 %v2811_v41  ;;  %v8212_v43 = vpop.f32.mrf.mxu0 }
 0x5fe   : > { %v2809_v12 = vpop.xlane.xlu1 %2808 }
 0x5ff   : > { %5732 = vrcp.f32 %v2809_v12  ;;  %v2813_v12 = vpop.xlane.xlu2 %2812 }
 0x600   : > { %5734 = vrcp.f32 %v2455_v36 }
 0x601   : > { %v8203_v38 = vpop.eup %5728 }
 0x602   : > { %v2215_v18 = vpop.f32.mrf.mxu2  ;;  %2558 = vmatmul.bf16.gmra.mxu0 %v2502_v5  ;;  %2464 = vadd.xlane.f32.xlu0 %v8203_v38  ;;  %v5731_v22 = vpop.eup %5730 }
 0x603   : > { %v2847_v25 = vmul.f32 %v5731_v22, %v8019_v8  ;;  %v5349_v8 = vpack.i.bf16 %v8134_v1, %v8127_v30  ;;  %v5394_v1 = vpack.i.bf16 %v8181_v29, %v8166_v13 }
 0x605   : > { %v5733_v19 = vpop.eup %5732 }
 0x606   : > { %v2457_v24 = vpop.xlane.xlu1 %2456  ;;  %v2846_v44 = vmul.f32 %v5733_v19, %v8106_v51  ;;  %v5735_v34 = vpop.eup %5734 }
 0x607   : > { %5736 = vrcp.f32 %v2457_v24  ;;  %v2492_v56 = vmul.f32 %v5735_v34, %v8027_v9  ;;  %v5379_v9 = vpack.i.bf16 %v8157_v10, %v8150_v16  ;;  %v2461_v19 = vpop.xlane.xlu2 %2460 }
 0x608   : > { %v2857_v21 = vpack.c.bf16 %v2847_v25, %v2846_v44  ;;  %5738 = vrcp.f32 %v2813_v12 }
 0x60a   : > { %v2217_v61 = vpop.f32.mrf.mxu2  ;;  %2917 = vmatmul.bf16.gmra.mxu2 %v2857_v21 }
 0x60b   : > { %v5424_v16 = vpack.i.bf16 %v2217_v61, %v2215_v18 }
 0x60c   : > { %5335 = vrot.lane.b32.xlu1 %v5334_v11, %s6212_s3 }
 0x60d   : > { %v5737_v50 = vpop.eup %5736 }
 0x60e   : > { %v2493_v40 = vmul.f32 %v5737_v50, %v8110_v0  ;;  %v5739_v22 = vpop.eup %5738 }
 0x60f   : > { %v2848_v44 = vmul.f32 %v5739_v22, %v8032_v2 }
 0x610   : > { %v2503_v51 = vpack.c.bf16 %v2493_v40, %v2492_v56 }
 0x612   : > { %v2220_v52 = vpop.f32.mrf.mxu2  ;;  %2563 = vmatmul.bf16.gmra.mxu0 %v2503_v51 }
 0x614   : > { %5350 = vrot.lane.b32.xlu1 %v5349_v8, %s6212_s3  ;;  %v2539_v20 = vpop.f32.mrf.mxu0 }
 0x61a   : > { %v2222_v39 = vpop.f32.mrf.mxu2 }
 0x61b   : > { %v5439_v10 = vpack.i.bf16 %v2222_v39, %v2220_v52 }
 0x61c   : > { %5365 = vrot.lane.b32.xlu1 %v5364_v4, %s6212_s3  ;;  %v2541_v59 = vpop.f32.mrf.mxu0 }
 0x61d   : > { %v5339_v15 = vpack.i.bf16 %v2541_v59, %v2539_v20 }
 0x61f   : > { %5340 = vrot.lane.b32.xlu2 %v5339_v15, %s6210_s18  ;;  %v5121_v15 = vld [vmem:[#allocation12 + $0x38] sm:$0xff] }
 0x620   : > { %3339 = vmatpush.bf16.msra.mxu3 %v5121_v15 }
 0x622   : > { %v2893_v0 = vpop.f32.mrf.mxu2 }
 0x624   : > { %5380 = vrot.lane.b32.xlu1 %v5379_v9, %s6212_s3  ;;  %v2544_v30 = vpop.f32.mrf.mxu0 }
 0x62a   : > { %v2895_v41 = vpop.f32.mrf.mxu2 }
 0x62b   : > { %v5344_v57 = vpack.i.bf16 %v2895_v41, %v2893_v0 }
 0x62c   : > { %5395 = vrot.lane.b32.xlu1 %v5394_v1, %s6212_s3  ;;  %v2546_v55 = vpop.f32.mrf.mxu0 }
 0x62d   : > { %5345 = vrot.lane.b32.xlu0 %v5344_v57, %s6211_s12  ;;  %v5354_v37 = vpack.i.bf16 %v2546_v55, %v2544_v30  ;;  %v2463_v30 = vpop.xlane.xlu2 %2462  ;;  %v5119_v57 = vld [vmem:[#allocation12 + $0x28] sm:$0xff] }
 0x634   : > { %5410 = vrot.lane.b32.xlu1 %v5409_v6, %s6212_s3 }
 0x635   : > { %5355 = vrot.lane.b32.xlu0 %v5354_v37, %s6210_s18 }
 0x63c   : > { %5425 = vrot.lane.b32.xlu1 %v5424_v16, %s6212_s3 }
 0x644   : > { %5440 = vrot.lane.b32.xlu1 %v5439_v10, %s6212_s3  ;;  %s9028_s3 = sld [smem:[#allocation41_spill]] }
 0x64d   : > { %v2898_v13 = vpop.f32.mrf.mxu2 }
 0x64f   : > { %v2549_v29 = vpop.f32.mrf.mxu0 }
 0x655   : > { %v2900_v53 = vpop.f32.mrf.mxu2  ;;  %v2815_v5 = vpop.xlane.xlu0 %2814 }
 0x656   : > { %v5359_v36 = vpack.i.bf16 %v2900_v53, %v2898_v13  ;;  %5740 = vrcp.f32 %v2815_v5  ;;  %v5116_v5 = vld [vmem:[#allocation12 + $0x10] sm:$0xff] }
 0x657   : > { %v2551_v49 = vpop.f32.mrf.mxu0  ;;  %5742 = vrcp.f32 %v2461_v19 }
 0x658   : > { %v5369_v14 = vpack.i.bf16 %v2551_v49, %v2549_v29  ;;  %5360 = vrot.lane.b32.xlu2 %v5359_v36, %s6211_s12  ;;  %v5117_v29 = vld [vmem:[#allocation12 + $0x18] sm:$0xff] }
 0x65a   : > { %5370 = vrot.lane.b32.xlu0 %v5369_v14, %s6210_s18  ;;  %v5115_v14 = vld [vmem:[#allocation12 + $0x8] sm:$0xff] }
 0x65c   : > { %v5741_v18 = vpop.eup %5740 }
 0x65d   : > { %v2903_v24 = vpop.f32.mrf.mxu2  ;;  %v2849_v25 = vmul.f32 %v5741_v18, %v8169_v54  ;;  %v2817_v61 = vpop.xlane.xlu0 %2816 }
 0x65e   : > { %v2459_v21 = vpop.xlane.xlu1 %2458  ;;  %v5743_v34 = vpop.eup %5742 }
 0x65f   : > { %5744 = vrcp.f32 %v2459_v21  ;;  %v2858_v11 = vpack.c.bf16 %v2849_v25, %v2848_v44  ;;  %v2495_v52 = vmul.f32 %v5743_v34, %v8037_v31 }
 0x660   : > { %5746 = vrcp.f32 %v2817_v61 }
 0x661   : > { %2922 = vmatmul.bf16.gmra.mxu2 %v2858_v11 }
 0x665   : > { %v5745_v50 = vpop.eup %5744  ;;  %v2905_v56 = vpop.f32.mrf.mxu2 }
 0x666   : > { %v5374_v40 = vpack.i.bf16 %v2905_v56, %v2903_v24  ;;  %v2819_v51 = vpop.xlane.xlu1 %2818  ;;  %v2494_v8 = vmul.f32 %v5745_v50, %v8183_v48  ;;  %v5747_v54 = vpop.eup %5746  ;;  %v5120_v48 = vld [vmem:[#allocation12 + $0x30] sm:$0xff] }
 0x667   : > { %5748 = vrcp.f32 %v2819_v51  ;;  %v2850_v39 = vmul.f32 %v5747_v54, %v8179_v62  ;;  %3340 = vmatpush.bf16.msra.mxu3 %v5120_v48 }
 0x668   : > { %5375 = vrot.lane.b32.xlu2 %v5374_v40, %s6211_s12  ;;  %v2504_v2 = vpack.c.bf16 %v2495_v52, %v2494_v8  ;;  %5750 = vrcp.f32 %v2463_v30 }
 0x66a   : > { %2568 = vmatmul.bf16.gmra.mxu0 %v2504_v2 }
 0x66b   : > { %3341 = vmatpush.bf16.msra.mxu3 %v5119_v57 }
 0x66d   : > { %v5749_v20 = vpop.eup %5748  ;;  %v2908_v4 = vpop.f32.mrf.mxu2 }
 0x66e   : > { %v2851_v59 = vmul.f32 %v5749_v20, %v8193_v35  ;;  %v5751_v62 = vpop.eup %5750  ;;  %v5118_v35 = vld [vmem:[#allocation12 + $0x20] sm:$0xff] }
 0x66f   : > { %v2554_v9 = vpop.f32.mrf.mxu0  ;;  %3342 = vmatpush.bf16.msra.mxu3 %v5118_v35  ;;  %v2496_v10 = vmul.f32 %v5751_v62, %v8091_v33  ;;  %v5114_v33 = vld [vmem:[#allocation12] sm:$0xff] }
 0x670   : > { %v2859_v0 = vpack.c.bf16 %v2851_v59, %v2850_v39 }
 0x672   : > { %2927 = vmatmul.bf16.gmra.mxu2 %v2859_v0 }
 0x673   : > { %3343 = vmatpush.bf16.msra.mxu3 %v5117_v29 }
 0x675   : > { %v2910_v31 = vpop.f32.mrf.mxu2  ;;  %v2465_v1 = vpop.xlane.xlu0 %2464 }
 0x676   : > { %v5389_v41 = vpack.i.bf16 %v2910_v31, %v2908_v4  ;;  %5752 = vrcp.f32 %v2465_v1 }
 0x677   : > { %v2556_v55 = vpop.f32.mrf.mxu0  ;;  %3344 = vmatpush.bf16.msra.mxu3 %v5116_v5 }
 0x678   : > { %v5384_v6 = vpack.i.bf16 %v2556_v55, %v2554_v9  ;;  %5390 = vrot.lane.b32.xlu2 %v5389_v41, %s6211_s12 }
 0x679   : > { %v5341_v50 = vpop.permute.xlu2 %5340 }
 0x67a   : > { %5385 = vrot.lane.b32.xlu0 %v5384_v6, %s6210_s18  ;;  %v5343_v51 = vunpack.i.h.bf16 %v5341_v50  ;;  %v5342_v8 = vunpack.i.l.bf16 %v5341_v50 }
 0x67b   : > { %3345 = vmatpush.bf16.msra.mxu3 %v5115_v14 }
 0x67c   : > { %v5753_v37 = vpop.eup %5752 }
 0x67d   : > { %v2913_v16 = vpop.f32.mrf.mxu2  ;;  %v2497_v13 = vmul.f32 %v5753_v37, %v8203_v38 }
 0x67e   : > { %v5336_v25 = vpop.permute.xlu1 %5335 }
 0x67f   : > { %v2559_v12 = vpop.f32.mrf.mxu0  ;;  %v2505_v53 = vpack.c.bf16 %v2497_v13, %v2496_v10  ;;  %3346 = vmatpush.bf16.msra.mxu3 %v5114_v33  ;;  %v5338_v61 = vunpack.i.h.bf16 %v5336_v25  ;;  %v5337_v34 = vunpack.i.l.bf16 %v5336_v25 }
 0x681   : > { %2573 = vmatmul.bf16.gmra.mxu0 %v2505_v53  ;;  %v3126_v56 = vsel %vm1524_vm1, %v8097_v42, %v5338_v61  ;;  %v3125_v40 = vsel %vm1524_vm1, %v8082_v28, %v5337_v34 }
 0x682   : > { %v3142_v20 = vsel %vm3141_vm2, %v3125_v40, %v5342_v8  ;;  %v3143_v4 = vsel %vm3141_vm2, %v3126_v56, %v5343_v51 }
 0x685   : > { %v2915_v36 = vpop.f32.mrf.mxu2 }
 0x686   : > { %v5404_v49 = vpack.i.bf16 %v2915_v36, %v2913_v16  ;;  %v5351_v42 = vpop.permute.xlu1 %5350 }
 0x687   : > { %v2561_v22 = vpop.f32.mrf.mxu0  ;;  %v5353_v0 = vunpack.i.h.bf16 %v5351_v42  ;;  %v5352_v30 = vunpack.i.l.bf16 %v5351_v42 }
 0x688   : > { %v5399_v19 = vpack.i.bf16 %v2561_v22, %v2559_v12  ;;  %5405 = vrot.lane.b32.xlu2 %v5404_v49, %s6211_s12 }
 0x689   : > { %v3128_v41 = vsel %vm1524_vm1, %v8112_v3, %v5353_v0  ;;  %v3127_v57 = vsel %vm1524_vm1, %v8103_v7, %v5352_v30 }
 0x68a   : > { %5400 = vrot.lane.b32.xlu0 %v5399_v19, %s6210_s18 }
 0x68d   : > { %v2918_v38 = vpop.f32.mrf.mxu2 }
 0x68e   : > { %v5366_v29 = vpop.permute.xlu1 %5365 }
 0x68f   : > { %v2564_v18 = vpop.f32.mrf.mxu0  ;;  %v5368_v12 = vunpack.i.h.bf16 %v5366_v29  ;;  %v5367_v3 = vunpack.i.l.bf16 %v5366_v29 }
 0x691   : > { %v3130_v49 = vsel %vm1524_vm1, %v8129_v60, %v5368_v12  ;;  %v3129_v14 = vsel %vm1524_vm1, %v8120_v58, %v5367_v3 }
 0x695   : > { %v2920_v24 = vpop.f32.mrf.mxu2 }
 0x696   : > { %v5419_v44 = vpack.i.bf16 %v2920_v24, %v2918_v38 }
 0x697   : > { %v2566_v21 = vpop.f32.mrf.mxu0 }
 0x698   : > { %v5414_v11 = vpack.i.bf16 %v2566_v21, %v2564_v18  ;;  %5420 = vrot.lane.b32.xlu2 %v5419_v44, %s6211_s12 }
 0x69a   : > { %5415 = vrot.lane.b32.xlu0 %v5414_v11, %s6210_s18  ;;  %v5381_v11 = vpop.permute.xlu1 %5380 }
 0x69b   : > { %v5383_v61 = vunpack.i.h.bf16 %v5381_v11  ;;  %v5382_v34 = vunpack.i.l.bf16 %v5381_v11 }
 0x69f   : > { %v5346_v52 = vpop.permute.xlu0 %5345 }
 0x6a0   : > { %v5348_v2 = vunpack.i.h.bf16 %v5346_v52  ;;  %v5347_v54 = vunpack.i.l.bf16 %v5346_v52  ;;  %v3132_v52 = vsel %vm1524_vm1, %v8140_v46, %v5383_v61 }
 0x6a2   : > { %v3159_v39 = vsel %vm3158_vm3, %v3142_v20, %v5347_v54  ;;  %v3160_v59 = vsel %vm3158_vm3, %v3143_v4, %v5348_v2  ;;  %v3131_v2 = vsel %vm1524_vm1, %v8136_v32, %v5382_v34  ;;  %v5396_v32 = vpop.permute.xlu1 %5395 }
 0x6a3   : > { %v5158_v15 = vpack.c.bf16 %v3160_v59, %v3159_v39  ;;  %v5398_v0 = vunpack.i.h.bf16 %v5396_v32  ;;  %v5397_v30 = vunpack.i.l.bf16 %v5396_v32 }
 0x6a5   : > { %5159 = vst [vmem:[#allocation2 + $0x30] sm:$0xff] %v5158_v15  }
 0x6a7   : > { %v5356_v28 = vpop.permute.xlu0 %5355 }
 0x6a8   : > { %v5358_v48 = vunpack.i.h.bf16 %v5356_v28  ;;  %v5357_v31 = vunpack.i.l.bf16 %v5356_v28 }
 0x6aa   : > { %v3144_v62 = vsel %vm3141_vm2, %v3127_v57, %v5357_v31  ;;  %v3145_v35 = vsel %vm3141_vm2, %v3128_v41, %v5358_v48  ;;  %v3134_v41 = vsel %vm1524_vm1, %v8155_v26, %v5398_v0 }
 0x6ac   : > { %v5106_v9 = vld [vmem:[#allocation2 + $0x30] sm:$0xff] }
 0x6ad   : > { %3347 = vmatmul.bf16.vlgmr.msra.gmra.mxu3 %v5106_v9 }
 0x6b2   : > { %v5361_v1 = vpop.permute.xlu2 %5360 }
 0x6b3   : > { %v5363_v55 = vunpack.i.h.bf16 %v5361_v1  ;;  %v5362_v6 = vunpack.i.l.bf16 %v5361_v1 }
 0x6b5   : > { %v3161_v37 = vsel %vm3158_vm3, %v3144_v62, %v5362_v6  ;;  %v3162_v16 = vsel %vm3158_vm3, %v3145_v35, %v5363_v55  ;;  %v3133_v62 = vsel %vm1524_vm1, %v8145_v27, %v5397_v30 }
 0x6b6   : > { %v5163_v10 = vpack.c.bf16 %v3162_v16, %v3161_v37 }
 0x6b8   : > { %5195 = vst [vmem:[#allocation2] sm:$0xff] %v5163_v10  }
 0x6bf   : > { %v5107_v13 = vld [vmem:[#allocation2] sm:$0xff] }
 0x6c0   : > { %3352 = vmatmul.bf16.gmra.mxu3 %v5107_v13 }
 0x6c2   : > { %v5376_v53 = vpop.permute.xlu2 %5375 }
 0x6c3   : > { %v5378_v22 = vunpack.i.h.bf16 %v5376_v53  ;;  %v5377_v19 = vunpack.i.l.bf16 %v5376_v53 }
 0x6cc   : > { %v5371_v5 = vpop.permute.xlu0 %5370 }
 0x6cd   : > { %v5373_v7 = vunpack.i.h.bf16 %v5371_v5  ;;  %v5372_v36 = vunpack.i.l.bf16 %v5371_v5  ;;  %v5411_v5 = vpop.permute.xlu1 %5410 }
 0x6ce   : > { %v5413_v27 = vunpack.i.h.bf16 %v5411_v5 }
 0x6cf   : > { %v3146_v33 = vsel %vm3141_vm2, %v3129_v14, %v5372_v36  ;;  %v3147_v38 = vsel %vm3141_vm2, %v3130_v49, %v5373_v7  ;;  %v5412_v36 = vunpack.i.l.bf16 %v5411_v5 }
 0x6d0   : > { %v3163_v18 = vsel %vm3158_vm3, %v3146_v33, %v5377_v19  ;;  %v3164_v24 = vsel %vm3158_vm3, %v3147_v38, %v5378_v22  ;;  %v3136_v38 = vsel %vm1524_vm1, %v8172_v17, %v5413_v27  ;;  %v8308_v17 = vld [vmem:[%s8947_s7] ss:$0 sm:$0xff] }
 0x6d1   : > { %v5168_v44 = vpack.c.bf16 %v3164_v24, %v3163_v18  ;;  %v3135_v18 = vsel %vm1524_vm1, %v8162_v23, %v5412_v36  ;;  %v5856_v36 = vld [vmem:[%s6454_s27 + $0x28] sm:$0xff] }
 0x6d2   : > { %v5391_v58 = vpop.permute.xlu2 %5390 }
 0x6d3   : > { %5196 = vst [vmem:[#allocation2 + $0x18] sm:$0xff] %v5168_v44   ;;  %v5393_v54 = vunpack.i.h.bf16 %v5391_v58  ;;  %v5392_v20 = vunpack.i.l.bf16 %v5391_v58 }
 0x6d5   : > { %v5426_v0 = vpop.permute.xlu1 %5425 }
 0x6da   : > { %v5108_v25 = vld [vmem:[#allocation2 + $0x18] sm:$0xff] }
 0x6db   : > { %3357 = vmatmul.bf16.gmra.mxu3 %v5108_v25 }
 0x6e2   : > { %v5406_v31 = vpop.permute.xlu2 %5405 }
 0x6e3   : > { %v5408_v35 = vunpack.i.h.bf16 %v5406_v31  ;;  %v5407_v37 = vunpack.i.l.bf16 %v5406_v31  ;;  %v5428_v31 = vunpack.i.h.bf16 %v5426_v0 }
 0x6e4   : > { %v2923_v21 = vpop.f32.mrf.mxu2 }
 0x6e7   : > { %v2569_v60 = vpop.f32.mrf.mxu0 }
 0x6ec   : > { %v5386_v50 = vpop.permute.xlu0 %5385  ;;  %v2925_v56 = vpop.f32.mrf.mxu2 }
 0x6ed   : > { %v5388_v40 = vunpack.i.h.bf16 %v5386_v50  ;;  %v5387_v51 = vunpack.i.l.bf16 %v5386_v50  ;;  %v5434_v8 = vpack.i.bf16 %v2925_v56, %v2923_v21  ;;  %v5851_v50 = vld [vmem:[%s6454_s27] sm:$0xff] }
 0x6ef   : > { %v3148_v4 = vsel %vm3141_vm2, %v3131_v2, %v5387_v51  ;;  %v3149_v39 = vsel %vm3141_vm2, %v3132_v52, %v5388_v40  ;;  %v2571_v59 = vpop.f32.mrf.mxu0  ;;  %5435 = vrot.lane.b32.xlu2 %v5434_v8, %s6211_s12  ;;  %v5852_v52 = vld [vmem:[%s6454_s27 + $0x8] sm:$0xff] }
 0x6f0   : > { %v3165_v15 = vsel %vm3158_vm3, %v3148_v4, %v5392_v20  ;;  %v3166_v42 = vsel %vm3158_vm3, %v3149_v39, %v5393_v54  ;;  %v5429_v9 = vpack.i.bf16 %v2571_v59, %v2569_v60  ;;  %v5853_v39 = vld [vmem:[%s6454_s27 + $0x10] sm:$0xff] }
 0x6f1   : > { %v5173_v28 = vpack.c.bf16 %v3166_v42, %v3165_v15 }
 0x6f2   : > { %5430 = vrot.lane.b32.xlu0 %v5429_v9, %s6210_s18  ;;  %v5421_v14 = vpop.permute.xlu2 %5420 }
 0x6f3   : > { %5197 = vst [vmem:[#allocation2 + $0x10] sm:$0xff] %v5173_v28   ;;  %v5423_v24 = vunpack.i.h.bf16 %v5421_v14  ;;  %v5422_v44 = vunpack.i.l.bf16 %v5421_v14  ;;  %v5854_v28 = vld [vmem:[%s6454_s27 + $0x18] sm:$0xff]  ;;  %v5441_v14 = vpop.permute.xlu1 %5440 }
 0x6f5   : > { %v2928_v46 = vpop.f32.mrf.mxu2 }
 0x6fa   : > { %v5109_v48 = vld [vmem:[#allocation2 + $0x10] sm:$0xff] }
 0x6fb   : > { %3362 = vmatmul.bf16.gmra.mxu3 %v5109_v48 }
 0x6fc   : > { %v5401_v1 = vpop.permute.xlu0 %5400 }
 0x6fd   : > { %v5403_v57 = vunpack.i.h.bf16 %v5401_v1  ;;  %v5402_v55 = vunpack.i.l.bf16 %v5401_v1  ;;  %v2930_v6 = vpop.f32.mrf.mxu2  ;;  %v5427_v1 = vunpack.i.l.bf16 %v5426_v0  ;;  %v5137_v0 = vld [vmem:[#allocation14 + $0x74] sm:$0xf0] }
 0x6fe   : > { %v5449_v16 = vpack.i.bf16 %v2930_v6, %v2928_v46  ;;  %v2574_v10 = vpop.f32.mrf.mxu0 }
 0x6ff   : > { %v3150_v13 = vsel %vm3141_vm2, %v3133_v62, %v5402_v55  ;;  %v3151_v29 = vsel %vm3141_vm2, %v3134_v41, %v5403_v57  ;;  %v5855_v41 = vld [vmem:[%s6454_s27 + $0x20] sm:$0xff] }
 0x700   : > { %v3167_v12 = vsel %vm3158_vm3, %v3150_v13, %v5407_v37  ;;  %v3168_v3 = vsel %vm3158_vm3, %v3151_v29, %v5408_v35  ;;  %5450 = vrot.lane.b32.xlu2 %v5449_v16, %s6211_s12  ;;  %v3138_v16 = vsel %vm1524_vm1, %v8198_v47, %v5428_v31 }
 0x701   : > { %v5178_v26 = vpack.c.bf16 %v3168_v3, %v3167_v12 }
 0x703   : > { %5198 = vst [vmem:[#allocation2 + $0x8] sm:$0xff] %v5178_v26  }
 0x706   : > { %v2576_v53 = vpop.f32.mrf.mxu0 }
 0x707   : > { %v5444_v7 = vpack.i.bf16 %v2576_v53, %v2574_v10  ;;  %v3137_v10 = vsel %vm1524_vm1, %v8187_v63, %v5427_v1  ;;  %v5008_v1 = vld [vmem:[#allocation14 + $0x78] sm:$0xf0] }
 0x709   : > { %5445 = vrot.lane.b32.xlu0 %v5444_v7, %s6210_s18 }
 0x70a   : > { %v5110_v49 = vld [vmem:[#allocation2 + $0x8] sm:$0xff] }
 0x70b   : > { %3367 = vmatmul.bf16.gmra.mxu3 %v5110_v49 }
 0x70c   : > { %v5416_v22 = vpop.permute.xlu0 %5415 }
 0x70d   : > { %v5418_v19 = vunpack.i.h.bf16 %v5416_v22  ;;  %v5417_v33 = vunpack.i.l.bf16 %v5416_v22  ;;  %v5443_v22 = vunpack.i.h.bf16 %v5441_v14 }
 0x70f   : > { %v3152_v25 = vsel %vm3141_vm2, %v3135_v18, %v5417_v33  ;;  %v3153_v21 = vsel %vm3141_vm2, %v3136_v38, %v5418_v19  ;;  %v5442_v19 = vunpack.i.l.bf16 %v5441_v14  ;;  %v5131_v14 = vld [vmem:[#allocation14 + $0x44] sm:$0xf0] }
 0x710   : > { %v3169_v11 = vsel %vm3158_vm3, %v3152_v25, %v5422_v44  ;;  %v3170_v60 = vsel %vm3158_vm3, %v3153_v21, %v5423_v24  ;;  %v3140_v44 = vsel %vm1524_vm1, %v8212_v43, %v5443_v22  ;;  %v5857_v43 = vld [vmem:[%s6454_s27 + $0x30] sm:$0xff]  ;;  %v5130_v22 = vld [vmem:[#allocation14 + $0x44] sm:$0xf] }
 0x711   : > { %v5183_v61 = vpack.c.bf16 %v3170_v60, %v3169_v11  ;;  %v3139_v25 = vsel %vm1524_vm1, %v8205_v45, %v5442_v19 }
 0x713   : > { %5199 = vst [vmem:[#allocation2 + $0x20] sm:$0xff] %v5183_v61  }
 0x71a   : > { %v5111_v34 = vld [vmem:[#allocation2 + $0x20] sm:$0xff] }
 0x71b   : > { %3372 = vmatmul.bf16.gmra.mxu3 %v5111_v34 }
 0x730   : > { %v3348_v23 = vpop.f32.mrf.mxu3 }
 0x731   : > { %v3349_v58 = vadd.f32 %v8308_v17, %v3348_v23 }
 0x733   : > { %v8312_v56 = vadd.f32 %v5851_v50, %v3349_v58 }
 0x735   : > { %3404 = vadd.xlane.f32.xlu1 %v8312_v56  ;;  %v3452_v40 = vmul.f32 %v8312_v56, %v8312_v56 }
 0x737   : > { %3468 = vadd.xlane.f32.xlu2 %v3452_v40 }
 0x738   : > { %v3350_v51 = vpop.f32.mrf.mxu3 }
 0x739   : > { %v3351_v8 = vadd.f32 %v8308_v17, %v3350_v51 }
 0x73b   : > { %v8319_v2 = vadd.f32 %v5852_v52, %v3351_v8 }
 0x73d   : > { %3406 = vadd.xlane.f32.xlu0 %v8319_v2  ;;  %v3453_v54 = vmul.f32 %v8319_v2, %v8319_v2 }
 0x73f   : > { %3470 = vadd.xlane.f32.xlu1 %v3453_v54 }
 0x743   : > { %v3353_v20 = vpop.f32.mrf.mxu3 }
 0x744   : > { %v3354_v4 = vadd.f32 %v8308_v17, %v3353_v20  ;;  %v5858_v20 = vld [vmem:[%s6454_s27 + $0x38] sm:$0xff] }
 0x746   : > { %v8326_v59 = vadd.f32 %v5853_v39, %v3354_v4 }
 0x748   : > { %3408 = vadd.xlane.f32.xlu2 %v8326_v59  ;;  %v3454_v15 = vmul.f32 %v8326_v59, %v8326_v59 }
 0x749   : > { %v5436_v55 = vpop.permute.xlu2 %5435 }
 0x74a   : > { %3472 = vadd.xlane.f32.xlu1 %v3454_v15  ;;  %v5438_v13 = vunpack.i.h.bf16 %v5436_v55  ;;  %v5437_v29 = vunpack.i.l.bf16 %v5436_v55 }
 0x74b   : > { %v3355_v42 = vpop.f32.mrf.mxu3 }
 0x74c   : > { %v3356_v9 = vadd.f32 %v8308_v17, %v3355_v42 }
 0x74e   : > { %v8333_v46 = vadd.f32 %v5854_v28, %v3356_v9  ;;  %v5859_v9 = vld [vmem:[%s6454_s27 + $0x40] sm:$0xff] }
 0x750   : > { %3410 = vadd.xlane.f32.xlu0 %v8333_v46  ;;  %v3455_v32 = vmul.f32 %v8333_v46, %v8333_v46 }
 0x752   : > { %3474 = vadd.xlane.f32.xlu2 %v3455_v32  ;;  %v5006_v32 = vld [vmem:[#allocation14 + $0x70] sm:$0xf] }
 0x753   : > { %v5007_v31 = vor.u32 %v5137_v0, %v5006_v32  ;;  %v4958_v0 = vld [vmem:[#allocation14 + $0x10] sm:$0xf] }
 0x755   : > { %3906 = vmatpush.bf16.msrb.mxu0 %v5007_v31 }
 0x75a   : > { %v5451_v33 = vpop.permute.xlu2 %5450 }
 0x75b   : > { %v5453_v21 = vunpack.i.h.bf16 %v5451_v33  ;;  %v5452_v11 = vunpack.i.l.bf16 %v5451_v33 }
 0x75e   : > { %v3358_v30 = vpop.f32.mrf.mxu3 }
 0x75f   : > { %v3359_v48 = vadd.f32 %v8308_v17, %v3358_v30  ;;  %v5136_v30 = vld [vmem:[#allocation14 + $0x74] sm:$0xf] }
 0x761   : > { %v8340_v57 = vadd.f32 %v5855_v41, %v3359_v48  ;;  %v5011_v41 = vor.u32 %v5136_v30, %v5008_v1  ;;  %v5125_v30 = vld [vmem:[#allocation14 + $0x14] sm:$0xf0] }
 0x763   : > { %3412 = vadd.xlane.f32.xlu0 %v8340_v57  ;;  %v3456_v62 = vmul.f32 %v8340_v57, %v8340_v57  ;;  %3955 = vmatpush.bf16.msrb.mxu1 %v5011_v41 }
 0x764   : > { %v5431_v6 = vpop.permute.xlu0 %5430 }
 0x765   : > { %v5433_v35 = vunpack.i.h.bf16 %v5431_v6  ;;  %v5432_v37 = vunpack.i.l.bf16 %v5431_v6  ;;  %3476 = vadd.xlane.f32.xlu2 %v3456_v62  ;;  %v4998_v6 = vld [vmem:[#allocation14 + $0x60] sm:$0xf]  ;;  %v5135_v62 = vld [vmem:[#allocation14 + $0x64] sm:$0xf0] }
 0x766   : > { %v3360_v26 = vpop.f32.mrf.mxu3 }
 0x767   : > { %v3154_v12 = vsel %vm3141_vm2, %v3137_v10, %v5432_v37  ;;  %v3155_v3 = vsel %vm3141_vm2, %v3138_v16, %v5433_v35  ;;  %v3361_v7 = vadd.f32 %v8308_v17, %v3360_v26  ;;  %v5134_v35 = vld [vmem:[#allocation14 + $0x64] sm:$0xf]  ;;  %v4999_v16 = vor.u32 %v5135_v62, %v4998_v6  ;;  %v5000_v10 = vld [vmem:[#allocation14 + $0x68] sm:$0xf0]  ;;  %v5133_v26 = vld [vmem:[#allocation14 + $0x54] sm:$0xf0] }
 0x768   : > { %v3171_v53 = vsel %vm3158_vm3, %v3154_v12, %v5437_v29  ;;  %v3172_v5 = vsel %vm3158_vm3, %v3155_v3, %v5438_v13  ;;  %v5003_v13 = vor.u32 %v5134_v35, %v5000_v10  ;;  %v5860_v29 = vld [vmem:[%s6454_s27 + $0x48] sm:$0xff]  ;;  %v4990_v3 = vld [vmem:[#allocation14 + $0x50] sm:$0xf]  ;;  %v4959_v6 = vor.u32 %v5125_v30, %v4958_v0  ;;  %v8431_v0 = vld [vmem:[%s8948_s8] ss:$0 sm:$0xff] }
 0x769   : > { %v5188_v27 = vpack.c.bf16 %v3172_v5, %v3171_v53  ;;  %v8355_v47 = vadd.f32 %v5856_v36, %v3361_v7  ;;  %3907 = vmatpush.bf16.msrb.mxu0 %v4999_v16  ;;  %v5132_v53 = vld [vmem:[#allocation14 + $0x54] sm:$0xf]  ;;  %v4991_v7 = vor.u32 %v5133_v26, %v4990_v3  ;;  %v5123_v16 = vld [vmem:[#allocation14 + $0x4] sm:$0xf0]  ;;  %v5122_v10 = vld [vmem:[#allocation14 + $0x4] sm:$0xf] }
 0x76a   : > { %3956 = vmatpush.bf16.msrb.mxu1 %v5003_v13  ;;  %v4952_v3 = vld [vmem:[#allocation14 + $0x8] sm:$0xf0] }
 0x76b   : > { %5200 = vst [vmem:[#allocation2 + $0x28] sm:$0xff] %v5188_v27   ;;  %3414 = vadd.xlane.f32.xlu1 %v8355_v47  ;;  %v3457_v63 = vmul.f32 %v8355_v47, %v8355_v47  ;;  %v4992_v27 = vld [vmem:[#allocation14 + $0x58] sm:$0xf0] }
 0x76c   : > { %v4995_v36 = vor.u32 %v5132_v53, %v4992_v27  ;;  %v4955_v53 = vor.u32 %v5122_v10, %v4952_v3 }
 0x76d   : > { %3478 = vadd.xlane.f32.xlu0 %v3457_v63  ;;  %3908 = vmatpush.bf16.msrb.mxu0 %v4991_v7 }
 0x76e   : > { %3957 = vmatpush.bf16.msrb.mxu1 %v4995_v36 }
 0x772   : > { %v5112_v49 = vld [vmem:[#allocation2 + $0x28] sm:$0xff] }
 0x773   : > { %3377 = vmatmul.bf16.gmra.mxu3 %v5112_v49  ;;  %v4982_v49 = vld [vmem:[#allocation14 + $0x40] sm:$0xf] }
 0x774   : > { %v4983_v33 = vor.u32 %v5131_v14, %v4982_v49 }
 0x776   : > { %3909 = vmatpush.bf16.msrb.mxu0 %v4983_v33 }
 0x77b   : > { %v5446_v38 = vpop.permute.xlu0 %5445 }
 0x77c   : > { %v5448_v18 = vunpack.i.h.bf16 %v5446_v38  ;;  %v5447_v24 = vunpack.i.l.bf16 %v5446_v38  ;;  %v4984_v38 = vld [vmem:[#allocation14 + $0x48] sm:$0xf0] }
 0x77e   : > { %v3156_v60 = vsel %vm3141_vm2, %v3139_v25, %v5447_v24  ;;  %v3157_v61 = vsel %vm3141_vm2, %v3140_v44, %v5448_v18  ;;  %v3363_v58 = vpop.f32.mrf.mxu3  ;;  %v4987_v18 = vor.u32 %v5130_v22, %v4984_v38  ;;  %v5861_v24 = vld [vmem:[%s6454_s27 + $0x50] sm:$0xff] }
 0x77f   : > { %v3173_v34 = vsel %vm3158_vm3, %v3156_v60, %v5452_v11  ;;  %v3174_v23 = vsel %vm3158_vm3, %v3157_v61, %v5453_v21  ;;  %v3364_v40 = vadd.f32 %v8308_v17, %v3363_v58  ;;  %v4974_v25 = vld [vmem:[#allocation14 + $0x30] sm:$0xf]  ;;  %v5129_v21 = vld [vmem:[#allocation14 + $0x34] sm:$0xf0]  ;;  %v5128_v11 = vld [vmem:[#allocation14 + $0x34] sm:$0xf] }
 0x780   : > { %v5193_v50 = vpack.c.bf16 %v3174_v23, %v3173_v34  ;;  %3958 = vmatpush.bf16.msrb.mxu1 %v4987_v18  ;;  %v4975_v61 = vor.u32 %v5129_v21, %v4974_v25  ;;  %v4976_v34 = vld [vmem:[#allocation14 + $0x38] sm:$0xf0] }
 0x781   : > { %v8370_v51 = vadd.f32 %v5857_v43, %v3364_v40  ;;  %v4979_v23 = vor.u32 %v5128_v11, %v4976_v34  ;;  %v5127_v40 = vld [vmem:[#allocation14 + $0x24] sm:$0xf0]  ;;  %v5126_v43 = vld [vmem:[#allocation14 + $0x24] sm:$0xf] }
 0x782   : > { %5201 = vst [vmem:[#allocation2 + $0x38] sm:$0xff] %v5193_v50   ;;  %3910 = vmatpush.bf16.msrb.mxu0 %v4975_v61  ;;  %v4966_v50 = vld [vmem:[#allocation14 + $0x20] sm:$0xf] }
 0x783   : > { %3416 = vadd.xlane.f32.xlu1 %v8370_v51  ;;  %v3458_v45 = vmul.f32 %v8370_v51, %v8370_v51 }
 0x784   : > { %3959 = vmatpush.bf16.msrb.mxu1 %v4979_v23 }
 0x785   : > { %3480 = vadd.xlane.f32.xlu0 %v3458_v45 }
 0x786   : > { %v3365_v8 = vpop.f32.mrf.mxu3 }
 0x787   : > { %v3366_v52 = vadd.f32 %v8308_v17, %v3365_v8  ;;  %v4967_v8 = vor.u32 %v5127_v40, %v4966_v50 }
 0x789   : > { %v5113_v54 = vld [vmem:[#allocation2 + $0x38] sm:$0xff]  ;;  %v8377_v4 = vadd.f32 %v5858_v20, %v3366_v52  ;;  %v4968_v52 = vld [vmem:[#allocation14 + $0x28] sm:$0xf0]  ;;  %3911 = vmatpush.bf16.msrb.mxu0 %v4967_v8 }
 0x78a   : > { %3382 = vmatmul.bf16.gmra.mxu3 %v5113_v54  ;;  %v4971_v20 = vor.u32 %v5126_v43, %v4968_v52 }
 0x78b   : > { %3418 = vadd.xlane.f32.xlu2 %v8377_v4  ;;  %v3459_v39 = vmul.f32 %v8377_v4, %v8377_v4 }
 0x78c   : > { %3960 = vmatpush.bf16.msrb.mxu1 %v4971_v20 }
 0x78d   : > { %3482 = vadd.xlane.f32.xlu1 %v3459_v39  ;;  %v5862_v39 = vld [vmem:[%s6454_s27 + $0x58] sm:$0xff]  ;;  %3912 = vmatpush.bf16.msrb.mxu0 %v4959_v6 }
 0x78e   : > { %v3368_v15 = vpop.f32.mrf.mxu3 }
 0x78f   : > { %v3369_v42 = vadd.f32 %v8308_v17, %v3368_v15 }
 0x791   : > { %v8384_v28 = vadd.f32 %v5859_v9, %v3369_v42  ;;  %v9022_v42 = vld [vmem:[#allocation28_spill] sm:$0xff] }
 0x793   : > { %3420 = vadd.xlane.f32.xlu2 %v8384_v28  ;;  %v3460_v48 = vmul.f32 %v8384_v28, %v8384_v28 }
 0x795   : > { %3484 = vadd.xlane.f32.xlu1 %v3460_v48  ;;  %v5124_v48 = vld [vmem:[#allocation14 + $0x14] sm:$0xf] }
 0x796   : > { %v3370_v55 = vpop.f32.mrf.mxu3 }
 0x797   : > { %v3371_v37 = vadd.f32 %v8308_v17, %v3370_v55  ;;  %v4960_v55 = vld [vmem:[#allocation14 + $0x18] sm:$0xf0] }
 0x798   : > { %v4963_v62 = vor.u32 %v5124_v48, %v4960_v55 }
 0x799   : > { %v8391_v12 = vadd.f32 %v5860_v29, %v3371_v37  ;;  %v4950_v37 = vld [vmem:[#allocation14] sm:$0xf] }
 0x79a   : > { %3961 = vmatpush.bf16.msrb.mxu1 %v4963_v62  ;;  %v4951_v29 = vor.u32 %v5123_v16, %v4950_v37  ;;  %v8438_v37 = vld [vmem:[%s8949_s9] ss:$0 sm:$0xff] }
 0x79b   : > { %3422 = vadd.xlane.f32.xlu0 %v8391_v12  ;;  %v3461_v5 = vmul.f32 %v8391_v12, %v8391_v12 }
 0x79c   : > { %3913 = vmatpush.bf16.msrb.mxu0 %v4951_v29 }
 0x79d   : > { %3486 = vadd.xlane.f32.xlu2 %v3461_v5 }
 0x79e   : > { %v3373_v63 = vpop.f32.mrf.mxu3  ;;  %3962 = vmatpush.bf16.msrb.mxu1 %v4955_v53 }
 0x79f   : > { %v3374_v19 = vadd.f32 %v8308_v17, %v3373_v63 }
 0x7a1   : > { %v8398_v44 = vadd.f32 %v5861_v24, %v3374_v19 }
 0x7a3   : > { %3424 = vadd.xlane.f32.xlu0 %v8398_v44  ;;  %v3462_v60 = vmul.f32 %v8398_v44, %v8398_v44 }
 0x7a5   : > { %3488 = vadd.xlane.f32.xlu2 %v3462_v60 }
 0x7a6   : > { %v3375_v58 = vpop.f32.mrf.mxu3 }
 0x7a7   : > { %v3376_v45 = vadd.f32 %v8308_v17, %v3375_v58 }
 0x7a8   : > { %v3405_v54 = vpop.xlane.xlu1 %3404 }
 0x7a9   : > { %v8405_v15 = vadd.f32 %v5862_v39, %v3376_v45  ;;  %v8408_v9 = vmul.f32 %v3405_v54, %v9022_v42 }
 0x7aa   : > { %v3469_v32 = vpop.xlane.xlu2 %3468 }
 0x7ab   : > { %v3516_v31 = vmul.f32 %v8408_v9, %v8408_v9  ;;  %v3500_v1 = vmul.f32 %v3469_v32, %v9022_v42  ;;  %3426 = vadd.xlane.f32.xlu1 %v8405_v15  ;;  %v3463_v41 = vmul.f32 %v8405_v15, %v8405_v15  ;;  %v3548_v52 = vsub.f32 %v8312_v56, %v8408_v9 }
 0x7ad   : > { %v3532_v35 = vsub.f32 %v3500_v1, %v3516_v31  ;;  %3490 = vadd.xlane.f32.xlu0 %v3463_v41 }
 0x7af   : > { %v3564_v13 = vadd.f32 1e-05, %v3532_v35 }
 0x7b0   : > { %v3407_v26 = vpop.xlane.xlu0 %3406 }
 0x7b1   : > { %5754 = vrsqrt.f32 %v3564_v13  ;;  %v3437_v5 = vmul.f32 %v3407_v26, %v9022_v42  ;;  %vm3586_vm5 = vweird.f32 %v3564_v13 }
 0x7b2   : > { %v3471_v7 = vpop.xlane.xlu1 %3470 }
 0x7b3   : > { %v3517_v27 = vmul.f32 %v3437_v5, %v3437_v5  ;;  %v3501_v36 = vmul.f32 %v3471_v7, %v9022_v42  ;;  %v3549_v1 = vsub.f32 %v8319_v2, %v3437_v5 }
 0x7b5   : > { %v3533_v63 = vsub.f32 %v3501_v36, %v3517_v27 }
 0x7b7   : > { %v5755_v49 = vpop.eup %5754  ;;  %v3565_v14 = vadd.f32 1e-05, %v3533_v63 }
 0x7b8   : > { %v3581_v22 = vmul.f32 %v5755_v49, %v3564_v13  ;;  %vm3587_vm4 = vweird.f32 %v5755_v49 }
 0x7b9   : > { %5756 = vrsqrt.f32 %v3565_v14  ;;  %vm3588_vm6 = vmor %vm3586_vm5, %vm3587_vm4  ;;  %vm3596_vm8 = vweird.f32 %v3565_v14 }
 0x7ba   : > { %v3582_v19 = vmul.f32 %v5755_v49, %v3581_v22 }
 0x7bb   : > { %v3409_v33 = vpop.xlane.xlu2 %3408 }
 0x7bc   : > { %v3583_v38 = vmul.f32 0.5, %v3582_v19  ;;  %v8419_v18 = vmul.f32 %v3409_v33, %v9022_v42 }
 0x7bd   : > { %v3473_v24 = vpop.xlane.xlu1 %3472 }
 0x7be   : > { %v3584_v25 = vsub.f32 1.5, %v3583_v38  ;;  %v3518_v21 = vmul.f32 %v8419_v18, %v8419_v18  ;;  %v3502_v11 = vmul.f32 %v3473_v24, %v9022_v42  ;;  %v3550_v19 = vsub.f32 %v8326_v59, %v8419_v18 }
 0x7bf   : > { %v5757_v60 = vpop.eup %5756 }
 0x7c0   : > { %v3585_v61 = vmul.f32 %v5755_v49, %v3584_v25  ;;  %v3591_v34 = vmul.f32 %v5757_v60, %v3565_v14  ;;  %v3534_v23 = vsub.f32 %v3502_v11, %v3518_v21  ;;  %vm3597_vm7 = vweird.f32 %v5757_v60 }
 0x7c1   : > { %vm3598_vm9 = vmor %vm3596_vm8, %vm3597_vm7 }
 0x7c2   : > { %v3592_v58 = vmul.f32 %v5757_v60, %v3591_v34  ;;  %v3566_v50 = vadd.f32 1e-05, %v3534_v23  ;;  %v3589_v43 = vsel %vm3588_vm6, %v5755_v49, %v3585_v61 }
 0x7c3   : > { %v3411_v40 = vpop.xlane.xlu0 %3410  ;;  %v3740_v30 = vmul.f32 %v3589_v43, %v3548_v52 }
 0x7c4   : > { %v3593_v45 = vmul.f32 0.5, %v3592_v58  ;;  %5758 = vrsqrt.f32 %v3566_v50  ;;  %v3439_v8 = vmul.f32 %v3411_v40, %v9022_v42  ;;  %vm3606_vm11 = vweird.f32 %v3566_v50 }
 0x7c5   : > { %v3475_v54 = vpop.xlane.xlu2 %3474  ;;  %v3760_v6 = vmul.f32 %v8431_v0, %v3740_v30 }
 0x7c6   : > { %v3594_v20 = vsub.f32 1.5, %v3593_v45  ;;  %v3519_v39 = vmul.f32 %v3439_v8, %v3439_v8  ;;  %v3503_v32 = vmul.f32 %v3475_v54, %v9022_v42  ;;  %v3551_v61 = vsub.f32 %v8333_v46, %v3439_v8 }
 0x7c7   : > { %v3780_v29 = vadd.f32 %v8438_v37, %v3760_v6 }
 0x7c8   : > { %v3595_v48 = vmul.f32 %v5757_v60, %v3594_v20  ;;  %v3535_v31 = vsub.f32 %v3503_v32, %v3519_v39 }
 0x7ca   : > { %v5759_v41 = vpop.eup %5758  ;;  %v3599_v9 = vsel %vm3598_vm9, %v5757_v60, %v3595_v48  ;;  %v3567_v55 = vadd.f32 1e-05, %v3535_v31 }
 0x7cb   : > { %v3741_v62 = vmul.f32 %v3599_v9, %v3549_v1  ;;  %v3601_v35 = vmul.f32 %v5759_v41, %v3566_v50  ;;  %vm3607_vm10 = vweird.f32 %v5759_v41 }
 0x7cc   : > { %5760 = vrsqrt.f32 %v3567_v55  ;;  %vm3608_vm12 = vmor %vm3606_vm11, %vm3607_vm10  ;;  %vm3616_vm14 = vweird.f32 %v3567_v55 }
 0x7cd   : > { %v3761_v16 = vmul.f32 %v8431_v0, %v3741_v62  ;;  %v3602_v10 = vmul.f32 %v5759_v41, %v3601_v35 }
 0x7cf   : > { %v3603_v13 = vmul.f32 0.5, %v3602_v10  ;;  %v3781_v3 = vadd.f32 %v8438_v37, %v3761_v16 }
 0x7d1   : > { %v3604_v26 = vsub.f32 1.5, %v3603_v13  ;;  %v3796_v53 = vpack.c.bf16 %v3781_v3, %v3780_v29 }
 0x7d2   : > { %v5761_v5 = vpop.eup %5760 }
 0x7d3   : > { %v3605_v7 = vmul.f32 %v5759_v41, %v3604_v26  ;;  %v3611_v27 = vmul.f32 %v5761_v5, %v3567_v55  ;;  %3914 = vmatmul.bf16.vlgmr.msrb.gmra.mxu0 %v3796_v53  ;;  %3963 = vmatmul.bf16.vlgmr.msrb.gmra.mxu1 %v3796_v53  ;;  %vm3617_vm13 = vweird.f32 %v5761_v5 }
 0x7d4   : > { %vm3618_vm15 = vmor %vm3616_vm14, %vm3617_vm13 }
 0x7d5   : > { %v3612_v36 = vmul.f32 %v5761_v5, %v3611_v27  ;;  %v3609_v49 = vsel %vm3608_vm12, %v5759_v41, %v3605_v7 }
 0x7d6   : > { %v3413_v63 = vpop.xlane.xlu0 %3412  ;;  %v3742_v21 = vmul.f32 %v3609_v49, %v3550_v19 }
 0x7d7   : > { %v3613_v14 = vmul.f32 0.5, %v3612_v36  ;;  %v3440_v22 = vmul.f32 %v3413_v63, %v9022_v42 }
 0x7d8   : > { %v3477_v33 = vpop.xlane.xlu2 %3476  ;;  %v3762_v40 = vmul.f32 %v8431_v0, %v3742_v21 }
 0x7d9   : > { %v3614_v38 = vsub.f32 1.5, %v3613_v14  ;;  %v3520_v24 = vmul.f32 %v3440_v22, %v3440_v22  ;;  %v3504_v25 = vmul.f32 %v3477_v33, %v9022_v42  ;;  %v3552_v13 = vsub.f32 %v8340_v57, %v3440_v22  ;;  %v5863_v14 = vld [vmem:[%s6454_s27 + $0x60] sm:$0xff] }
 0x7da   : > { %v3782_v20 = vadd.f32 %v8438_v37, %v3762_v40 }
 0x7db   : > { %v3615_v11 = vmul.f32 %v5761_v5, %v3614_v38  ;;  %v3536_v60 = vsub.f32 %v3504_v25, %v3520_v24 }
 0x7dd   : > { %v3619_v34 = vsel %vm3618_vm15, %v5761_v5, %v3615_v11  ;;  %v3568_v23 = vadd.f32 1e-05, %v3536_v60 }
 0x7de   : > { %v3415_v58 = vpop.xlane.xlu1 %3414  ;;  %v3743_v50 = vmul.f32 %v3619_v34, %v3551_v61 }
 0x7df   : > { %5762 = vrsqrt.f32 %v3568_v23  ;;  %v3441_v18 = vmul.f32 %v3415_v58, %v9022_v42  ;;  %vm3626_vm1 = vweird.f32 %v3568_v23 }
 0x7e0   : > { %v3479_v43 = vpop.xlane.xlu0 %3478  ;;  %v3763_v45 = vmul.f32 %v8431_v0, %v3743_v50 }
 0x7e1   : > { %v3521_v52 = vmul.f32 %v3441_v18, %v3441_v18  ;;  %v3505_v54 = vmul.f32 %v3479_v43, %v9022_v42  ;;  %v3553_v36 = vsub.f32 %v8355_v47, %v3441_v18 }
 0x7e2   : > { %v3783_v8 = vadd.f32 %v8438_v37, %v3763_v45  ;;  %v5864_v45 = vld [vmem:[%s6454_s27 + $0x68] sm:$0xff] }
 0x7e3   : > { %v3537_v39 = vsub.f32 %v3505_v54, %v3521_v52 }
 0x7e4   : > { %v3797_v32 = vpack.c.bf16 %v3783_v8, %v3782_v20 }
 0x7e5   : > { %v5763_v30 = vpop.eup %5762  ;;  %v3569_v48 = vadd.f32 1e-05, %v3537_v39 }
 0x7e6   : > { %v3621_v31 = vmul.f32 %v5763_v30, %v3568_v23  ;;  %3919 = vmatmul.bf16.gmra.mxu0 %v3797_v32  ;;  %3968 = vmatmul.bf16.gmra.mxu1 %v3797_v32  ;;  %vm3627_vm0 = vweird.f32 %v5763_v30 }
 0x7e7   : > { %5764 = vrsqrt.f32 %v3569_v48  ;;  %vm3628_vm2 = vmor %vm3626_vm1, %vm3627_vm0  ;;  %vm3636_vm4 = vweird.f32 %v3569_v48 }
 0x7e8   : > { %v3622_v1 = vmul.f32 %v5763_v30, %v3621_v31 }
 0x7ea   : > { %v3623_v41 = vmul.f32 0.5, %v3622_v1 }
 0x7ec   : > { %v3624_v9 = vsub.f32 1.5, %v3623_v41 }
 0x7ed   : > { %v5765_v55 = vpop.eup %5764 }
 0x7ee   : > { %v3631_v6 = vmul.f32 %v5765_v55, %v3569_v48  ;;  %v3625_v62 = vmul.f32 %v5763_v30, %v3624_v9  ;;  %vm3637_vm3 = vweird.f32 %v5765_v55 }
 0x7ef   : > { %vm3638_vm5 = vmor %vm3636_vm4, %vm3637_vm3 }
 0x7f0   : > { %v3632_v35 = vmul.f32 %v5765_v55, %v3631_v6  ;;  %v3629_v10 = vsel %vm3628_vm2, %v5763_v30, %v3625_v62 }
 0x7f1   : > { %v3744_v5 = vmul.f32 %v3629_v10, %v3552_v13 }
 0x7f2   : > { %v3633_v16 = vmul.f32 0.5, %v3632_v35 }
 0x7f3   : > { %v3764_v24 = vmul.f32 %v8431_v0, %v3744_v5 }
 0x7f4   : > { %v3634_v29 = vsub.f32 1.5, %v3633_v16 }
 0x7f5   : > { %v3784_v23 = vadd.f32 %v8438_v37, %v3764_v24 }
 0x7f6   : > { %v3635_v3 = vmul.f32 %v5765_v55, %v3634_v29  ;;  %v3378_v26 = vpop.f32.mrf.mxu3  ;;  %v3417_v53 = vpop.xlane.xlu1 %3416 }
 0x7f7   : > { %v3379_v7 = vadd.f32 %v8308_v17, %v3378_v26  ;;  %v8457_v27 = vmul.f32 %v3417_v53, %v9022_v42 }
 0x7f8   : > { %v3639_v63 = vsel %vm3638_vm5, %v5765_v55, %v3635_v3  ;;  %v3481_v49 = vpop.xlane.xlu0 %3480 }
 0x7f9   : > { %v8461_v19 = vadd.f32 %v5863_v14, %v3379_v7  ;;  %v3522_v22 = vmul.f32 %v8457_v27, %v8457_v27  ;;  %v3506_v33 = vmul.f32 %v3481_v49, %v9022_v42  ;;  %v3745_v38 = vmul.f32 %v3639_v63, %v3553_v36  ;;  %v5865_v63 = vld [vmem:[%s6454_s27 + $0x70] sm:$0xff] }
 0x7fb   : > { %v3538_v25 = vsub.f32 %v3506_v33, %v3522_v22  ;;  %3428 = vadd.xlane.f32.xlu1 %v8461_v19  ;;  %v3464_v21 = vmul.f32 %v8461_v19, %v8461_v19  ;;  %v3765_v11 = vmul.f32 %v8431_v0, %v3745_v38 }
 0x7fd   : > { %v3570_v60 = vadd.f32 1e-05, %v3538_v25  ;;  %3492 = vadd.xlane.f32.xlu0 %v3464_v21  ;;  %v3785_v58 = vadd.f32 %v8438_v37, %v3765_v11  ;;  %v3554_v21 = vsub.f32 %v8370_v51, %v8457_v27 }
 0x7fe   : > { %v3380_v61 = vpop.f32.mrf.mxu3  ;;  %v3419_v34 = vpop.xlane.xlu2 %3418 }
 0x7ff   : > { %5766 = vrsqrt.f32 %v3570_v60  ;;  %v3381_v50 = vadd.f32 %v8308_v17, %v3380_v61  ;;  %v8475_v40 = vmul.f32 %v3419_v34, %v9022_v42  ;;  %v3798_v43 = vpack.c.bf16 %v3785_v58, %v3784_v23 }
 0x800   : > { %v3483_v18 = vpop.xlane.xlu1 %3482  ;;  %vm3646_vm7 = vweird.f32 %v3570_v60 }
 0x801   : > { %v8478_v52 = vadd.f32 %v5864_v45, %v3381_v50  ;;  %v3523_v54 = vmul.f32 %v8475_v40, %v8475_v40  ;;  %v3507_v20 = vmul.f32 %v3483_v18, %v9022_v42  ;;  %3924 = vmatmul.bf16.gmra.mxu0 %v3798_v43  ;;  %3973 = vmatmul.bf16.gmra.mxu1 %v3798_v43 }
 0x803   : > { %v3539_v8 = vsub.f32 %v3507_v20, %v3523_v54  ;;  %3430 = vadd.xlane.f32.xlu2 %v8478_v52  ;;  %v3465_v39 = vmul.f32 %v8478_v52, %v8478_v52  ;;  %v3555_v54 = vsub.f32 %v8377_v4, %v8475_v40 }
 0x805   : > { %v5767_v32 = vpop.eup %5766  ;;  %v3571_v30 = vadd.f32 1e-05, %v3539_v8  ;;  %3494 = vadd.xlane.f32.xlu1 %v3465_v39  ;;  %v5866_v39 = vld [vmem:[%s6454_s27 + $0x78] sm:$0xff]  ;;  %s6125_s27 = scalar_lea.hbm %s6124_s21, 128 }
 0x806   : > { %v3641_v48 = vmul.f32 %v5767_v32, %v3570_v60  ;;  %v3421_v31 = vpop.xlane.xlu2 %3420  ;;  %vm3647_vm6 = vweird.f32 %v5767_v32  ;;  %p6126_p1 = scmp.ne.s32.totalorder %s6124_s21, %s6125_s27  ;;  %p6131_p9 = scmp.lt.s32.totalorder %s6129_s11, %s6125_s27 }
 0x807   : > { %5768 = vrsqrt.f32 %v3571_v30  ;;  %v8487_v1 = vmul.f32 %v3421_v31, %v9022_v42  ;;  %vm3648_vm8 = vmor %vm3646_vm7, %vm3647_vm6  ;;  %vm3656_vm10 = vweird.f32 %v3571_v30 }
 0x808   : > { %v3642_v41 = vmul.f32 %v5767_v32, %v3641_v48  ;;  %v3485_v9 = vpop.xlane.xlu1 %3484  ;;  %p6127_p3 = pnand %p6126_p1, %p6392_p5  ;;  %p6132_p4 = por %p6131_p9, %p6130_p7 }
 0x809   : > { %v3524_v55 = vmul.f32 %v8487_v1, %v8487_v1  ;;  %v3508_v6 = vmul.f32 %v3485_v9, %v9022_v42 }
 0x80a   : > { %v3643_v62 = vmul.f32 0.5, %v3642_v41  ;;  %p6128_p12 = pneg %p6127_p3 }
 0x80b   : > { %v3540_v35 = vsub.f32 %v3508_v6, %v3524_v55 }
 0x80c   : > { %v3644_v16 = vsub.f32 1.5, %v3643_v62  ;;  %p6133_p8 = pnand %p6132_p4, %p6128_p12 }
 0x80d   : > { %v5769_v10 = vpop.eup %5768  ;;  %v8492_v13 = vadd.f32 1e-05, %v3540_v35  ;;  %v3383_v29 = vpop.f32.mrf.mxu3 }
 0x80e   : > { %v3645_v3 = vmul.f32 %v5767_v32, %v3644_v16  ;;  %v3651_v26 = vmul.f32 %v5769_v10, %v3571_v30  ;;  %v3384_v53 = vadd.f32 %v8308_v17, %v3383_v29  ;;  %v3423_v5 = vpop.xlane.xlu0 %3422  ;;  %vm3657_vm9 = vweird.f32 %v5769_v10 }
 0x80f   : > { %5770 = vrsqrt.f32 %v8492_v13  ;;  %v8497_v7 = vmul.f32 %v3423_v5, %v9022_v42  ;;  %vm3658_vm11 = vmor %vm3656_vm10, %vm3657_vm9  ;;  %vm3666_vm13 = vweird.f32 %v8492_v13 }
 0x810   : > { %v3652_v36 = vmul.f32 %v5769_v10, %v3651_v26  ;;  %v8500_v49 = vadd.f32 %v5865_v63, %v3384_v53  ;;  %v3487_v14 = vpop.xlane.xlu2 %3486  ;;  %v3649_v38 = vsel %vm3648_vm8, %v5767_v32, %v3645_v3 }
 0x811   : > { %v3525_v22 = vmul.f32 %v8497_v7, %v8497_v7  ;;  %v3509_v33 = vmul.f32 %v3487_v14, %v9022_v42  ;;  %v3746_v58 = vmul.f32 %v3649_v38, %v3554_v21 }
 0x812   : > { %v3653_v24 = vmul.f32 0.5, %v3652_v36  ;;  %3432 = vadd.xlane.f32.xlu2 %v8500_v49  ;;  %v3466_v25 = vmul.f32 %v8500_v49, %v8500_v49 }
 0x813   : > { %v3541_v11 = vsub.f32 %v3509_v33, %v3525_v22  ;;  %v3766_v41 = vmul.f32 %v8431_v0, %v3746_v58 }
 0x814   : > { %v3654_v60 = vsub.f32 1.5, %v3653_v24  ;;  %3496 = vadd.xlane.f32.xlu1 %v3466_v25  ;;  %v3556_v25 = vsub.f32 %v8384_v28, %v8487_v1 }
 0x815   : > { %v5771_v61 = vpop.eup %5770  ;;  %v3573_v34 = vadd.f32 1e-05, %v3541_v11  ;;  %v3385_v23 = vpop.f32.mrf.mxu3 }
 0x816   : > { %v3655_v50 = vmul.f32 %v5769_v10, %v3654_v60  ;;  %v3661_v18 = vmul.f32 %v5771_v61, %v8492_v13  ;;  %v3386_v43 = vadd.f32 %v8308_v17, %v3385_v23  ;;  %v3425_v45 = vpop.xlane.xlu0 %3424  ;;  %vm3667_vm12 = vweird.f32 %v5771_v61 }
 0x817   : > { %5772 = vrsqrt.f32 %v3573_v34  ;;  %v8515_v27 = vmul.f32 %v3425_v45, %v9022_v42  ;;  %vm3668_vm14 = vmor %vm3666_vm13, %vm3667_vm12  ;;  %vm3676_vm0 = vweird.f32 %v3573_v34 }
 0x818   : > { %v3659_v20 = vsel %vm3658_vm11, %v5769_v10, %v3655_v50  ;;  %v3662_v8 = vmul.f32 %v5771_v61, %v3661_v18  ;;  %v8518_v32 = vadd.f32 %v5866_v39, %v3386_v43  ;;  %v3489_v48 = vpop.xlane.xlu2 %3488  ;;  %v3786_v10 = vadd.f32 %v8438_v37, %v3766_v41 }
 0x819   : > { %v3526_v30 = vmul.f32 %v8515_v27, %v8515_v27  ;;  %v3510_v17 = vmul.f32 %v3489_v48, %v9022_v42  ;;  %v3747_v31 = vmul.f32 %v3659_v20, %v3555_v54  ;;  %v3557_v18 = vsub.f32 %v8391_v12, %v8497_v7 }
 0x81a   : > { %v3663_v40 = vmul.f32 0.5, %v3662_v8  ;;  %3434 = vadd.xlane.f32.xlu0 %v8518_v32  ;;  %v3467_v9 = vmul.f32 %v8518_v32, %v8518_v32 }
 0x81b   : > { %v3542_v55 = vsub.f32 %v3510_v17, %v3526_v30  ;;  %v3767_v6 = vmul.f32 %v8431_v0, %v3747_v31 }
 0x81c   : > { %v3664_v62 = vsub.f32 1.5, %v3663_v40  ;;  %3498 = vadd.xlane.f32.xlu2 %v3467_v9  ;;  %v3558_v9 = vsub.f32 %v8398_v44, %v8515_v27 }
 0x81d   : > { %v5773_v35 = vpop.eup %5772  ;;  %v3574_v16 = vadd.f32 1e-05, %v3542_v55  ;;  %v3787_v29 = vadd.f32 %v8438_v37, %v3767_v6  ;;  %v5145_v6 = vld [vmem:[#allocation15 + $0x38] sm:$0xff] }
 0x81e   : > { %v3665_v3 = vmul.f32 %v5771_v61, %v3664_v62  ;;  %v3671_v26 = vmul.f32 %v5773_v35, %v3573_v34  ;;  %v3427_v53 = vpop.xlane.xlu1 %3426  ;;  %vm3677_vm15 = vweird.f32 %v5773_v35  ;;  %4440 = vmatpush.bf16.msrb.mxu2 %v5145_v6 }
 0x81f   : > { %5774 = vrsqrt.f32 %v3574_v16  ;;  %v3447_v5 = vmul.f32 %v3427_v53, %v9022_v42  ;;  %v3799_v36 = vpack.c.bf16 %v3787_v29, %v3786_v10  ;;  %vm3678_vm1 = vmor %vm3676_vm0, %vm3677_vm15  ;;  %vm3686_vm3 = vweird.f32 %v3574_v16  ;;  %v5144_v29 = vld [vmem:[#allocation15 + $0x30] sm:$0xff] }
 0x820   : > { %v3672_v63 = vmul.f32 %v5773_v35, %v3671_v26  ;;  %v3491_v14 = vpop.xlane.xlu0 %3490  ;;  %v3669_v38 = vsel %vm3668_vm14, %v5771_v61, %v3665_v3 }
 0x821   : > { %v3527_v22 = vmul.f32 %v3447_v5, %v3447_v5  ;;  %v3511_v33 = vmul.f32 %v3491_v14, %v9022_v42  ;;  %3929 = vmatmul.bf16.gmra.mxu0 %v3799_v36  ;;  %3978 = vmatmul.bf16.gmra.mxu1 %v3799_v36  ;;  %v3748_v58 = vmul.f32 %v3669_v38, %v3556_v25  ;;  %v5143_v36 = vld [vmem:[#allocation15 + $0x28] sm:$0xff]  ;;  %v5140_v38 = vld [vmem:[#allocation15 + $0x10] sm:$0xff] }
 0x822   : > { %v3673_v24 = vmul.f32 0.5, %v3672_v63  ;;  %v3559_v10 = vsub.f32 %v8405_v15, %v3447_v5  ;;  %4441 = vmatpush.bf16.msrb.mxu2 %v5144_v29  ;;  %v5141_v5 = vld [vmem:[#allocation15 + $0x18] sm:$0xff]  ;;  %v5152_v25 = vld [vmem:[#allocation15 + $0x70] sm:$0xff] }
 0x823   : > { %v3543_v21 = vsub.f32 %v3511_v33, %v3527_v22  ;;  %v3768_v54 = vmul.f32 %v8431_v0, %v3748_v58  ;;  %v5142_v22 = vld [vmem:[#allocation15 + $0x20] sm:$0xff]  ;;  %v5153_v33 = vld [vmem:[#allocation15 + $0x78] sm:$0xff] }
 0x824   : > { %v3674_v11 = vsub.f32 1.5, %v3673_v24  ;;  %5202 = vmatpush.bf16.msrb.mxu3 %v5153_v33  ;;  %4489 = vmatpush.bf16.msra.mxu0 %v5153_v33  ;;  %v3820_v24 = vld [vmem:[%s9023_s26] sm:$0x3] }
 0x825   : > { %v5775_v60 = vpop.eup %5774  ;;  %v3575_v23 = vadd.f32 1e-05, %v3543_v21  ;;  %v3788_v48 = vadd.f32 %v8438_v37, %v3768_v54  ;;  %v5139_v21 = vld [vmem:[#allocation15 + $0x8] sm:$0xff] }
 0x826   : > { %v3675_v13 = vmul.f32 %v5773_v35, %v3674_v11  ;;  %v3681_v50 = vmul.f32 %v5775_v60, %v3574_v16  ;;  %vm3687_vm2 = vweird.f32 %v5775_v60  ;;  %4442 = vmatpush.bf16.msrb.mxu2 %v5143_v36  ;;  %v8551_v11 = vperm.slane %v3820_v24, 0 }
 0x827   : > { %5776 = vrsqrt.f32 %v3575_v23  ;;  %vm3688_vm4 = vmor %vm3686_vm3, %vm3687_vm2  ;;  %vm3696_vm6 = vweird.f32 %v3575_v23 }
 0x828   : > { %v3679_v43 = vsel %vm3678_vm1, %v5773_v35, %v3675_v13  ;;  %v3682_v61 = vmul.f32 %v5775_v60, %v3681_v50  ;;  %5203 = vmatpush.bf16.msrb.mxu3 %v5152_v25  ;;  %4490 = vmatpush.bf16.msra.mxu0 %v5152_v25 }
 0x829   : > { %v3749_v45 = vmul.f32 %v3679_v43, %v3557_v18  ;;  %v5151_v18 = vld [vmem:[#allocation15 + $0x68] sm:$0xff] }
 0x82a   : > { %v3683_v1 = vmul.f32 0.5, %v3682_v61  ;;  %4443 = vmatpush.bf16.msrb.mxu2 %v5142_v22 }
 0x82b   : > { %v3769_v20 = vmul.f32 %v8431_v0, %v3749_v45  ;;  %v5138_v45 = vld [vmem:[#allocation15] sm:$0xff] }
 0x82c   : > { %v3684_v8 = vsub.f32 1.5, %v3683_v1  ;;  %5204 = vmatpush.bf16.msrb.mxu3 %v5151_v18  ;;  %4491 = vmatpush.bf16.msra.mxu0 %v5151_v18 }
 0x82d   : > { %v5777_v39 = vpop.eup %5776  ;;  %v3789_v34 = vadd.f32 %v8438_v37, %v3769_v20  ;;  %v5150_v20 = vld [vmem:[#allocation15 + $0x60] sm:$0xff] }
 0x82e   : > { %v3685_v30 = vmul.f32 %v5775_v60, %v3684_v8  ;;  %v3691_v17 = vmul.f32 %v5777_v39, %v3575_v23  ;;  %vm3697_vm5 = vweird.f32 %v5777_v39  ;;  %4444 = vmatpush.bf16.msrb.mxu2 %v5141_v5 }
 0x82f   : > { %v3800_v7 = vpack.c.bf16 %v3789_v34, %v3788_v48  ;;  %vm3698_vm7 = vmor %vm3696_vm6, %vm3697_vm5 }
 0x830   : > { %v3692_v31 = vmul.f32 %v5777_v39, %v3691_v17  ;;  %v3689_v41 = vsel %vm3688_vm4, %v5775_v60, %v3685_v30  ;;  %v8553_v60 = vperm.slane %v3820_v24, 1  ;;  %5205 = vmatpush.bf16.msrb.mxu3 %v5150_v20  ;;  %4492 = vmatpush.bf16.msra.mxu0 %v5150_v20 }
 0x831   : > { %3934 = vmatmul.bf16.gmra.mxu0 %v3800_v7  ;;  %3983 = vmatmul.bf16.gmra.mxu1 %v3800_v7  ;;  %v3750_v62 = vmul.f32 %v3689_v41, %v3558_v9  ;;  %v5149_v41 = vld [vmem:[#allocation15 + $0x58] sm:$0xff] }
 0x832   : > { %v3693_v40 = vmul.f32 0.5, %v3692_v31  ;;  %4445 = vmatpush.bf16.msrb.mxu2 %v5140_v38 }
 0x833   : > { %v3770_v26 = vmul.f32 %v8431_v0, %v3750_v62 }
 0x834   : > { %v3694_v55 = vsub.f32 1.5, %v3693_v40  ;;  %5206 = vmatpush.bf16.msrb.mxu3 %v5149_v41  ;;  %4493 = vmatpush.bf16.msra.mxu0 %v5149_v41 }
 0x835   : > { %v3790_v27 = vadd.f32 %v8438_v37, %v3770_v26 }
 0x836   : > { %v3695_v35 = vmul.f32 %v5777_v39, %v3694_v55  ;;  %4446 = vmatpush.bf16.msrb.mxu2 %v5139_v21  ;;  %v5146_v21 = vld [vmem:[#allocation15 + $0x40] sm:$0xff] }
 0x838   : > { %v3699_v16 = vsel %vm3698_vm7, %v5777_v39, %v3695_v35 }
 0x839   : > { %v3751_v3 = vmul.f32 %v3699_v16, %v3559_v10  ;;  %v5148_v10 = vld [vmem:[#allocation15 + $0x50] sm:$0xff] }
 0x83a   : > { %4447 = vmatpush.bf16.msrb.mxu2 %v5138_v45  ;;  %5207 = vmatpush.bf16.msrb.mxu3 %v5148_v10 }
 0x83b   : > { %v3771_v53 = vmul.f32 %v8431_v0, %v3751_v3  ;;  %4494 = vmatpush.bf16.msra.mxu0 %v5148_v10 }
 0x83d   : > { %v3791_v63 = vadd.f32 %v8438_v37, %v3771_v53  ;;  %v5147_v53 = vld [vmem:[#allocation15 + $0x48] sm:$0xff] }
 0x83e   : > { %5208 = vmatpush.bf16.msrb.mxu3 %v5147_v53 }
 0x83f   : > { %v3801_v14 = vpack.c.bf16 %v3791_v63, %v3790_v27  ;;  %4495 = vmatpush.bf16.msra.mxu0 %v5147_v53 }
 0x841   : > { %3939 = vmatmul.bf16.gmra.mxu0 %v3801_v14  ;;  %3988 = vmatmul.bf16.gmra.mxu1 %v3801_v14 }
 0x842   : > { %5209 = vmatpush.bf16.msrb.mxu3 %v5146_v21 }
 0x843   : > { %4496 = vmatpush.bf16.msra.mxu0 %v5146_v21 }
 0x850   : > { %v3915_v23 = vpop.f32.mrf.mxu0  ;;  %v3964_v58 = vpop.f32.mrf.mxu1 }
 0x851   : > { %v8556_v13 = vadd.f32 %v3915_v23, %v8551_v11  ;;  %v8559_v50 = vadd.f32 %v3964_v58, %v8553_v60 }
 0x853   : > { %v4004_v43 = vmul.f32 %v8556_v13, %v8556_v13  ;;  %v4005_v61 = vmul.f32 %v8559_v50, %v8559_v50 }
 0x855   : > { %v4036_v54 = vmul.f32 %v4004_v43, %v8556_v13  ;;  %v4037_v1 = vmul.f32 %v4005_v61, %v8559_v50 }
 0x857   : > { %v4068_v8 = vmul.f32 0.044715, %v4036_v54  ;;  %v4069_v39 = vmul.f32 0.044715, %v4037_v1 }
 0x858   : > { %v3917_v48 = vpop.f32.mrf.mxu0  ;;  %v3966_v34 = vpop.f32.mrf.mxu1 }
 0x859   : > { %v4100_v30 = vadd.f32 %v4068_v8, %v8556_v13  ;;  %v4101_v17 = vadd.f32 %v4069_v39, %v8559_v50  ;;  %v8570_v7 = vadd.f32 %v3917_v48, %v8551_v11  ;;  %v8573_v31 = vadd.f32 %v3966_v34, %v8553_v60 }
 0x85b   : > { %v4132_v40 = vmul.f32 0.7978846, %v4100_v30  ;;  %v4006_v9 = vmul.f32 %v8570_v7, %v8570_v7  ;;  %v4007_v55 = vmul.f32 %v8573_v31, %v8573_v31  ;;  %v4133_v6 = vmul.f32 0.7978846, %v4101_v17 }
 0x85d   : > { %v4038_v62 = vmul.f32 %v4006_v9, %v8570_v7  ;;  %v4039_v35 = vmul.f32 %v4007_v55, %v8573_v31  ;;  %5778 = vtanh.f32 %v4132_v40 }
 0x85e   : > { %5780 = vtanh.f32 %v4133_v6 }
 0x85f   : > { %v4070_v16 = vmul.f32 0.044715, %v4038_v62  ;;  %v4071_v29 = vmul.f32 0.044715, %v4039_v35 }
 0x861   : > { %v4102_v3 = vadd.f32 %v4070_v16, %v8570_v7  ;;  %v4103_v26 = vadd.f32 %v4071_v29, %v8573_v31 }
 0x863   : > { %v4134_v36 = vmul.f32 0.7978846, %v4102_v3  ;;  %v4135_v27 = vmul.f32 0.7978846, %v4103_v26  ;;  %v3920_v63 = vpop.f32.mrf.mxu0  ;;  %v3969_v14 = vpop.f32.mrf.mxu1 }
 0x864   : > { %v5779_v22 = vpop.eup %5778  ;;  %v8584_v5 = vadd.f32 %v3920_v63, %v8551_v11  ;;  %v8587_v33 = vadd.f32 %v3969_v14, %v8553_v60 }
 0x865   : > { %5782 = vtanh.f32 %v4134_v36  ;;  %v5781_v38 = vpop.eup %5780  ;;  %v4196_v23 = vadd.f32 1.0, %v5779_v22 }
 0x866   : > { %5784 = vtanh.f32 %v4135_v27  ;;  %v4008_v24 = vmul.f32 %v8584_v5, %v8584_v5  ;;  %v4009_v25 = vmul.f32 %v8587_v33, %v8587_v33  ;;  %v4197_v43 = vadd.f32 1.0, %v5781_v38 }
 0x867   : > { %v4228_v1 = vmul.f32 0.5, %v4196_v23 }
 0x868   : > { %v4040_v58 = vmul.f32 %v4008_v24, %v8584_v5  ;;  %v4041_v18 = vmul.f32 %v4009_v25, %v8587_v33  ;;  %v4229_v41 = vmul.f32 0.5, %v4197_v43 }
 0x869   : > { %v4260_v26 = vmul.f32 %v4228_v1, %v8556_v13 }
 0x86a   : > { %v4072_v61 = vmul.f32 0.044715, %v4040_v58  ;;  %v4073_v45 = vmul.f32 0.044715, %v4041_v18  ;;  %v8614_v63 = vmul.f32 %v4229_v41, %v8559_v50 }
 0x86b   : > { %v5783_v54 = vpop.eup %5782  ;;  %v3922_v20 = vpop.f32.mrf.mxu0 }
 0x86c   : > { %v3971_v8 = vpop.f32.mrf.mxu1  ;;  %v5785_v39 = vpop.eup %5784  ;;  %v4198_v48 = vadd.f32 1.0, %v5783_v54  ;;  %v4104_v34 = vadd.f32 %v4072_v61, %v8584_v5  ;;  %v4105_v30 = vadd.f32 %v4073_v45, %v8587_v33  ;;  %v8598_v17 = vadd.f32 %v3922_v20, %v8551_v11 }
 0x86d   : > { %v4199_v40 = vadd.f32 1.0, %v5785_v39  ;;  %v8601_v9 = vadd.f32 %v3971_v8, %v8553_v60 }
 0x86e   : > { %v4230_v55 = vmul.f32 0.5, %v4198_v48  ;;  %v4136_v6 = vmul.f32 0.7978846, %v4104_v34  ;;  %v4010_v62 = vmul.f32 %v8598_v17, %v8598_v17  ;;  %v3429_v35 = vpop.xlane.xlu1 %3428  ;;  %v4137_v16 = vmul.f32 0.7978846, %v4105_v30 }
 0x86f   : > { %v4231_v10 = vmul.f32 0.5, %v4199_v40  ;;  %v4011_v29 = vmul.f32 %v8601_v9, %v8601_v9  ;;  %v8608_v3 = vmul.f32 %v3429_v35, %v9022_v42 }
 0x870   : > { %v4262_v53 = vmul.f32 %v4230_v55, %v8570_v7  ;;  %v4042_v36 = vmul.f32 %v4010_v62, %v8598_v17  ;;  %v3493_v27 = vpop.xlane.xlu0 %3492  ;;  %5786 = vtanh.f32 %v4136_v6 }
 0x871   : > { %v8617_v14 = vmul.f32 %v4231_v10, %v8573_v31  ;;  %v4043_v22 = vmul.f32 %v4011_v29, %v8601_v9  ;;  %v3528_v38 = vmul.f32 %v8608_v3, %v8608_v3  ;;  %v3512_v13 = vmul.f32 %v3493_v27, %v9022_v42 }
 0x872   : > { %v4292_v24 = vpack.c.bf16 %v4262_v53, %v4260_v26  ;;  %v4074_v25 = vmul.f32 0.044715, %v4042_v36  ;;  %5788 = vtanh.f32 %v4137_v16 }
 0x873   : > { %v4293_v7 = vpack.c.bf16 %v8617_v14, %v8614_v63  ;;  %v4075_v21 = vmul.f32 0.044715, %v4043_v22  ;;  %v3544_v23 = vsub.f32 %v3512_v13, %v3528_v38 }
 0x874   : > { %v4106_v50 = vadd.f32 %v4074_v25, %v8598_v17  ;;  %4448 = vmatmul.bf16.vlgmr.msrb.gmra.mxu2 %v4292_v24 }
 0x875   : > { %v4107_v31 = vadd.f32 %v4075_v21, %v8601_v9  ;;  %v8627_v18 = vadd.f32 1e-05, %v3544_v23 }
 0x876   : > { %v4138_v58 = vmul.f32 0.7978846, %v4106_v50  ;;  %v3431_v43 = vpop.xlane.xlu2 %3430  ;;  %v5787_v54 = vpop.eup %5786 }
 0x877   : > { %v4139_v61 = vmul.f32 0.7978846, %v4107_v31  ;;  %v8630_v45 = vmul.f32 %v3431_v43, %v9022_v42  ;;  %v4200_v34 = vadd.f32 1.0, %v5787_v54  ;;  %vm3706_vm9 = vweird.f32 %v8627_v18 }
 0x878   : > { %5790 = vtanh.f32 %v4138_v58  ;;  %v3495_v1 = vpop.xlane.xlu1 %3494  ;;  %v5789_v20 = vpop.eup %5788 }
 0x879   : > { %5792 = vtanh.f32 %v4139_v61  ;;  %v3529_v8 = vmul.f32 %v8630_v45, %v8630_v45  ;;  %v3513_v39 = vmul.f32 %v3495_v1, %v9022_v42  ;;  %v4201_v30 = vadd.f32 1.0, %v5789_v20 }
 0x87a   : > { %5794 = vrsqrt.f32 %v8627_v18  ;;  %v4232_v10 = vmul.f32 0.5, %v4200_v34 }
 0x87b   : > { %v3545_v48 = vsub.f32 %v3513_v39, %v3529_v8  ;;  %v4233_v29 = vmul.f32 0.5, %v4201_v30 }
 0x87c   : > { %v4264_v21 = vmul.f32 %v4232_v10, %v8584_v5 }
 0x87d   : > { %v8636_v41 = vadd.f32 1e-05, %v3545_v48  ;;  %v4265_v23 = vmul.f32 %v4233_v29, %v8587_v33 }
 0x87e   : > { %v5791_v40 = vpop.eup %5790  ;;  %v3925_v6 = vpop.f32.mrf.mxu0 }
 0x87f   : > { %v5793_v55 = vpop.eup %5792  ;;  %5796 = vrsqrt.f32 %v8636_v41  ;;  %v3974_v62 = vpop.f32.mrf.mxu1  ;;  %v4202_v35 = vadd.f32 1.0, %v5791_v40  ;;  %v8640_v53 = vadd.f32 %v3925_v6, %v8551_v11  ;;  %vm3716_vm12 = vweird.f32 %v8636_v41 }
 0x880   : > { %v5795_v16 = vpop.eup %5794  ;;  %v4203_v26 = vadd.f32 1.0, %v5793_v55  ;;  %v8643_v36 = vadd.f32 %v3974_v62, %v8553_v60 }
 0x881   : > { %v3701_v27 = vmul.f32 %v5795_v16, %v8627_v18  ;;  %v4234_v22 = vmul.f32 0.5, %v4202_v35  ;;  %v4012_v24 = vmul.f32 %v8640_v53, %v8640_v53  ;;  %vm3707_vm8 = vweird.f32 %v5795_v16 }
 0x882   : > { %v4235_v38 = vmul.f32 0.5, %v4203_v26  ;;  %v4013_v25 = vmul.f32 %v8643_v36, %v8643_v36  ;;  %vm8672_vm10 = vmor %vm3706_vm9, %vm3707_vm8  ;;  %v3560_v18 = vsub.f32 %v8461_v19, %v8608_v3 }
 0x883   : > { %v3702_v13 = vmul.f32 %v5795_v16, %v3701_v27  ;;  %v4266_v50 = vmul.f32 %v4234_v22, %v8598_v17  ;;  %v4044_v58 = vmul.f32 %v4012_v24, %v8640_v53 }
 0x884   : > { %v4267_v31 = vmul.f32 %v4235_v38, %v8601_v9  ;;  %v4045_v43 = vmul.f32 %v4013_v25, %v8643_v36 }
 0x885   : > { %v5797_v61 = vpop.eup %5796  ;;  %v3703_v54 = vmul.f32 0.5, %v3702_v13  ;;  %v3433_v1 = vpop.xlane.xlu2 %3432  ;;  %v4294_v20 = vpack.c.bf16 %v4266_v50, %v4264_v21  ;;  %v4076_v48 = vmul.f32 0.044715, %v4044_v58 }
 0x886   : > { %v4295_v8 = vpack.c.bf16 %v4267_v31, %v4265_v23  ;;  %v3711_v39 = vmul.f32 %v5797_v61, %v8636_v41  ;;  %v4077_v5 = vmul.f32 0.044715, %v4045_v43  ;;  %v8658_v17 = vmul.f32 %v3433_v1, %v9022_v42  ;;  %v3927_v33 = vpop.f32.mrf.mxu0 }
 0x887   : > { %v3704_v34 = vsub.f32 1.5, %v3703_v54  ;;  %v3976_v9 = vpop.f32.mrf.mxu1  ;;  %4453 = vmatmul.bf16.gmra.mxu2 %v4294_v20  ;;  %v4108_v40 = vadd.f32 %v4076_v48, %v8640_v53  ;;  %v8662_v55 = vadd.f32 %v3927_v33, %v8551_v11  ;;  %v3497_v62 = vpop.xlane.xlu1 %3496  ;;  %vm3717_vm11 = vweird.f32 %v5797_v61 }
 0x888   : > { %v3712_v30 = vmul.f32 %v5797_v61, %v3711_v39  ;;  %v8665_v6 = vadd.f32 %v3976_v9, %v8553_v60  ;;  %4502 = vmatmul.bf16.vlgmr.msrb.gmra.mxu3 %v4295_v8  ;;  %v4109_v10 = vadd.f32 %v4077_v5, %v8643_v36  ;;  %v3530_v29 = vmul.f32 %v8658_v17, %v8658_v17  ;;  %vm3718_vm13 = vmor %vm3716_vm12, %vm3717_vm11 }
 0x889   : > { %v3705_v35 = vmul.f32 %v5795_v16, %v3704_v34  ;;  %v4140_v22 = vmul.f32 0.7978846, %v4108_v40  ;;  %v4014_v38 = vmul.f32 %v8662_v55, %v8662_v55  ;;  %v3514_v21 = vmul.f32 %v3497_v62, %v9022_v42 }
 0x88a   : > { %v3713_v27 = vmul.f32 0.5, %v3712_v30  ;;  %v4015_v24 = vmul.f32 %v8665_v6, %v8665_v6  ;;  %v4141_v13 = vmul.f32 0.7978846, %v4109_v10  ;;  %v3561_v8 = vsub.f32 %v8478_v52, %v8630_v45 }
 0x88b   : > { %v3709_v25 = vsel %vm8672_vm10, %v5795_v16, %v3705_v35  ;;  %v4046_v23 = vmul.f32 %v4014_v38, %v8662_v55  ;;  %5798 = vtanh.f32 %v4140_v22  ;;  %v3546_v58 = vsub.f32 %v3514_v21, %v3530_v29 }
 0x88c   : > { %v3714_v50 = vsub.f32 1.5, %v3713_v27  ;;  %v4047_v31 = vmul.f32 %v4015_v24, %v8665_v6  ;;  %v3752_v54 = vmul.f32 %v3709_v25, %v3560_v18  ;;  %5800 = vtanh.f32 %v4141_v13 }
 0x88d   : > { %v3435_v43 = vpop.xlane.xlu0 %3434  ;;  %v4078_v3 = vmul.f32 0.044715, %v4046_v23  ;;  %v3578_v39 = vadd.f32 1e-05, %v3546_v58 }
 0x88e   : > { %v3715_v1 = vmul.f32 %v5797_v61, %v3714_v50  ;;  %v4079_v20 = vmul.f32 0.044715, %v4047_v31  ;;  %v8689_v16 = vmul.f32 %v3435_v43, %v9022_v42  ;;  %v3772_v45 = vmul.f32 %v8431_v0, %v3752_v54 }
 0x88f   : > { %v3499_v48 = vpop.xlane.xlu2 %3498  ;;  %v4110_v41 = vadd.f32 %v4078_v3, %v8662_v55  ;;  %5802 = vrsqrt.f32 %v3578_v39  ;;  %vm3726_vm15 = vweird.f32 %v3578_v39 }
 0x890   : > { %v3719_v34 = vsel %vm3718_vm13, %v5797_v61, %v3715_v1  ;;  %v4111_v5 = vadd.f32 %v4079_v20, %v8665_v6  ;;  %v3531_v33 = vmul.f32 %v8689_v16, %v8689_v16  ;;  %v3515_v9 = vmul.f32 %v3499_v48, %v9022_v42 }
 0x891   : > { %v4142_v30 = vmul.f32 0.7978846, %v4110_v41  ;;  %v3753_v62 = vmul.f32 %v3719_v34, %v3561_v8  ;;  %v5799_v35 = vpop.eup %5798  ;;  %v3792_v27 = vadd.f32 %v8438_v37, %v3772_v45 }
 0x892   : > { %v4143_v40 = vmul.f32 0.7978846, %v4111_v5  ;;  %v3547_v10 = vsub.f32 %v3515_v9, %v3531_v33  ;;  %v5801_v29 = vpop.eup %5800  ;;  %v4204_v38 = vadd.f32 1.0, %v5799_v35 }
 0x893   : > { %5804 = vtanh.f32 %v4142_v30  ;;  %v3773_v61 = vmul.f32 %v8431_v0, %v3753_v62  ;;  %v4205_v25 = vadd.f32 1.0, %v5801_v29 }
 0x894   : > { %5806 = vtanh.f32 %v4143_v40  ;;  %v3579_v26 = vadd.f32 1e-05, %v3547_v10  ;;  %v4236_v50 = vmul.f32 0.5, %v4204_v38 }
 0x895   : > { %v3793_v22 = vadd.f32 %v8438_v37, %v3773_v61  ;;  %v5803_v24 = vpop.eup %5802  ;;  %v4237_v43 = vmul.f32 0.5, %v4205_v25 }
 0x896   : > { %5808 = vrsqrt.f32 %v3579_v26  ;;  %v3721_v42 = vmul.f32 %v5803_v24, %v3578_v39  ;;  %v4268_v48 = vmul.f32 %v4236_v50, %v8640_v53  ;;  %vm3727_vm14 = vweird.f32 %v5803_v24 }
 0x897   : > { %v3802_v18 = vpack.c.bf16 %v3793_v22, %v3792_v27  ;;  %v4269_v40 = vmul.f32 %v4237_v43, %v8643_v36  ;;  %vm8716_vm0 = vmor %vm3726_vm15, %vm3727_vm14  ;;  %v3562_v39 = vsub.f32 %v8500_v49, %v8658_v17  ;;  %vm3736_vm2 = vweird.f32 %v3579_v26 }
 0x898   : > { %v3722_v21 = vmul.f32 %v5803_v24, %v3721_v42 }
 0x899   : > { %v5805_v13 = vpop.eup %5804  ;;  %3944 = vmatmul.bf16.gmra.mxu0 %v3802_v18  ;;  %3993 = vmatmul.bf16.gmra.mxu1 %v3802_v18 }
 0x89a   : > { %v5807_v23 = vpop.eup %5806  ;;  %v4206_v0 = vadd.f32 1.0, %v5805_v13  ;;  %v3723_v31 = vmul.f32 0.5, %v3722_v21 }
 0x89b   : > { %v4207_v58 = vadd.f32 1.0, %v5807_v23  ;;  %v3563_v23 = vsub.f32 %v8518_v32, %v8689_v16 }
 0x89c   : > { %v5809_v54 = vpop.eup %5808  ;;  %v4238_v1 = vmul.f32 0.5, %v4206_v0  ;;  %v3724_v3 = vsub.f32 1.5, %v3723_v31 }
 0x89d   : > { %v3731_v37 = vmul.f32 %v5809_v54, %v3579_v26  ;;  %v4239_v34 = vmul.f32 0.5, %v4207_v58  ;;  %vm3737_vm1 = vweird.f32 %v5809_v54 }
 0x89e   : > { %v3930_v20 = vpop.f32.mrf.mxu0  ;;  %v3979_v8 = vpop.f32.mrf.mxu1  ;;  %v4270_v33 = vmul.f32 %v4238_v1, %v8662_v55  ;;  %v3725_v9 = vmul.f32 %v5803_v24, %v3724_v3  ;;  %vm3738_vm3 = vmor %vm3736_vm2, %vm3737_vm1  ;;  %v5867_v3 = vld [vmem:[%s8948_s8] ss:$0 sm:$0xff] }
 0x89f   : > { %v8704_v41 = vadd.f32 %v3930_v20, %v8551_v11  ;;  %v8707_v5 = vadd.f32 %v3979_v8, %v8553_v60  ;;  %v3732_v30 = vmul.f32 %v5809_v54, %v3731_v37  ;;  %v4271_v62 = vmul.f32 %v4239_v34, %v8665_v6 }
 0x8a0   : > { %v4296_v35 = vpack.c.bf16 %v4270_v33, %v4268_v48  ;;  %v3729_v29 = vsel %vm8716_vm0, %v5803_v24, %v3725_v9  ;;  %v5868_v9 = vld [vmem:[%s8949_s9] ss:$0 sm:$0xff] }
 0x8a1   : > { %v4016_v53 = vmul.f32 %v8704_v41, %v8704_v41  ;;  %v4017_v45 = vmul.f32 %v8707_v5, %v8707_v5  ;;  %v3733_v61 = vmul.f32 0.5, %v3732_v30  ;;  %v4297_v55 = vpack.c.bf16 %v4271_v62, %v4269_v40 }
 0x8a2   : > { %4458 = vmatmul.bf16.gmra.mxu2 %v4296_v35  ;;  %v3754_v13 = vmul.f32 %v3729_v29, %v3562_v39 }
 0x8a3   : > { %v4048_v36 = vmul.f32 %v4016_v53, %v8704_v41  ;;  %v4049_v6 = vmul.f32 %v4017_v45, %v8707_v5  ;;  %v3734_v27 = vsub.f32 1.5, %v3733_v61  ;;  %4507 = vmatmul.bf16.gmra.mxu3 %v4297_v55 }
 0x8a4   : > { %v3774_v37 = vmul.f32 %v5867_v3, %v3754_v13 }
 0x8a5   : > { %v4080_v22 = vmul.f32 0.044715, %v4048_v36  ;;  %v4081_v38 = vmul.f32 0.044715, %v4049_v6  ;;  %v3735_v42 = vmul.f32 %v5809_v54, %v3734_v27 }
 0x8a6   : > { %v3932_v18 = vpop.f32.mrf.mxu0  ;;  %v3981_v25 = vpop.f32.mrf.mxu1  ;;  %v3794_v30 = vadd.f32 %v5868_v9, %v3774_v37 }
 0x8a7   : > { %v4112_v24 = vadd.f32 %v4080_v22, %v8704_v41  ;;  %v4113_v21 = vadd.f32 %v4081_v38, %v8707_v5  ;;  %v8729_v50 = vadd.f32 %v3932_v18, %v8551_v11  ;;  %v8732_v17 = vadd.f32 %v3981_v25, %v8553_v60 }
 0x8a8   : > { %v3739_v0 = vsel %vm3738_vm3, %v5809_v54, %v3735_v42 }
 0x8a9   : > { %v4144_v31 = vmul.f32 0.7978846, %v4112_v24  ;;  %v4018_v26 = vmul.f32 %v8729_v50, %v8729_v50  ;;  %v4019_v58 = vmul.f32 %v8732_v17, %v8732_v17  ;;  %v4145_v43 = vmul.f32 0.7978846, %v4113_v21 }
 0x8aa   : > { %v3755_v1 = vmul.f32 %v3739_v0, %v3563_v23 }
 0x8ab   : > { %v4050_v20 = vmul.f32 %v4018_v26, %v8729_v50  ;;  %v4051_v8 = vmul.f32 %v4019_v58, %v8732_v17  ;;  %5810 = vtanh.f32 %v4144_v31 }
 0x8ac   : > { %v3775_v16 = vmul.f32 %v5867_v3, %v3755_v1  ;;  %5812 = vtanh.f32 %v4145_v43 }
 0x8ad   : > { %v4082_v54 = vmul.f32 0.044715, %v4050_v20  ;;  %v4083_v48 = vmul.f32 0.044715, %v4051_v8 }
 0x8ae   : > { %v3935_v34 = vpop.f32.mrf.mxu0  ;;  %v3984_v33 = vpop.f32.mrf.mxu1  ;;  %v3795_v40 = vadd.f32 %v5868_v9, %v3775_v16 }
 0x8af   : > { %v4114_v62 = vadd.f32 %v4082_v54, %v8729_v50  ;;  %v4115_v53 = vadd.f32 %v4083_v48, %v8732_v17  ;;  %v8751_v45 = vadd.f32 %v3935_v34, %v8551_v11  ;;  %v8754_v35 = vadd.f32 %v3984_v33, %v8553_v60 }
 0x8b0   : > { %v3803_v10 = vpack.c.bf16 %v3795_v40, %v3794_v30 }
 0x8b1   : > { %v4146_v61 = vmul.f32 0.7978846, %v4114_v62  ;;  %v4147_v55 = vmul.f32 0.7978846, %v4115_v53  ;;  %v4020_v29 = vmul.f32 %v8751_v45, %v8751_v45  ;;  %v4021_v36 = vmul.f32 %v8754_v35, %v8754_v35  ;;  %v5811_v6 = vpop.eup %5810 }
 0x8b2   : > { %3949 = vmatmul.bf16.gmra.mxu0 %v3803_v10  ;;  %3998 = vmatmul.bf16.gmra.mxu1 %v3803_v10  ;;  %v5813_v22 = vpop.eup %5812  ;;  %v4208_v13 = vadd.f32 1.0, %v5811_v6 }
 0x8b3   : > { %5814 = vtanh.f32 %v4146_v61  ;;  %v4052_v39 = vmul.f32 %v4020_v29, %v8751_v45  ;;  %v4053_v27 = vmul.f32 %v4021_v36, %v8754_v35  ;;  %v4209_v31 = vadd.f32 1.0, %v5813_v22 }
 0x8b4   : > { %5816 = vtanh.f32 %v4147_v55  ;;  %v4240_v8 = vmul.f32 0.5, %v4208_v13 }
 0x8b5   : > { %v4084_v38 = vmul.f32 0.044715, %v4052_v39  ;;  %v4085_v42 = vmul.f32 0.044715, %v4053_v27  ;;  %v4241_v33 = vmul.f32 0.5, %v4209_v31 }
 0x8b6   : > { %v3937_v18 = vpop.f32.mrf.mxu0  ;;  %v3986_v25 = vpop.f32.mrf.mxu1  ;;  %v4272_v10 = vmul.f32 %v4240_v8, %v8704_v41 }
 0x8b7   : > { %v4116_v24 = vadd.f32 %v4084_v38, %v8751_v45  ;;  %v4117_v21 = vadd.f32 %v4085_v42, %v8754_v35  ;;  %v8765_v23 = vadd.f32 %v3937_v18, %v8551_v11  ;;  %v8768_v0 = vadd.f32 %v3986_v25, %v8553_v60 }
 0x8b8   : > { %v4273_v27 = vmul.f32 %v4241_v33, %v8707_v5 }
 0x8b9   : > { %v5815_v26 = vpop.eup %5814  ;;  %v4148_v58 = vmul.f32 0.7978846, %v4116_v24  ;;  %v4149_v43 = vmul.f32 0.7978846, %v4117_v21  ;;  %v4022_v1 = vmul.f32 %v8765_v23, %v8765_v23  ;;  %v4023_v3 = vmul.f32 %v8768_v0, %v8768_v0 }
 0x8ba   : > { %v5817_v37 = vpop.eup %5816  ;;  %v4210_v20 = vadd.f32 1.0, %v5815_v26 }
 0x8bb   : > { %v4054_v16 = vmul.f32 %v4022_v1, %v8765_v23  ;;  %v4055_v54 = vmul.f32 %v4023_v3, %v8768_v0  ;;  %v4211_v48 = vadd.f32 1.0, %v5817_v37  ;;  %5818 = vtanh.f32 %v4148_v58 }
 0x8bc   : > { %v4242_v34 = vmul.f32 0.5, %v4210_v20  ;;  %5820 = vtanh.f32 %v4149_v43 }
 0x8bd   : > { %v4086_v9 = vmul.f32 0.044715, %v4054_v16  ;;  %v4087_v30 = vmul.f32 0.044715, %v4055_v54  ;;  %v4243_v40 = vmul.f32 0.5, %v4211_v48 }
 0x8be   : > { %v3940_v62 = vpop.f32.mrf.mxu0  ;;  %v3989_v53 = vpop.f32.mrf.mxu1  ;;  %v4274_v61 = vmul.f32 %v4242_v34, %v8729_v50 }
 0x8bf   : > { %v4118_v55 = vadd.f32 %v4086_v9, %v8765_v23  ;;  %v4119_v29 = vadd.f32 %v4087_v30, %v8768_v0  ;;  %v8781_v36 = vadd.f32 %v3940_v62, %v8551_v11  ;;  %v8784_v6 = vadd.f32 %v3989_v53, %v8553_v60 }
 0x8c0   : > { %v4298_v39 = vpack.c.bf16 %v4274_v61, %v4272_v10  ;;  %v4275_v22 = vmul.f32 %v4243_v40, %v8732_v17 }
 0x8c1   : > { %v4150_v38 = vmul.f32 0.7978846, %v4118_v55  ;;  %v4151_v42 = vmul.f32 0.7978846, %v4119_v29  ;;  %v4024_v41 = vmul.f32 %v8781_v36, %v8781_v36  ;;  %v4025_v50 = vmul.f32 %v8784_v6, %v8784_v6  ;;  %v5819_v18 = vpop.eup %5818 }
 0x8c2   : > { %4497 = vmatmul.bf16.vlgmr.msra.gmra.mxu0 %v4293_v7  ;;  %4463 = vmatmul.bf16.gmra.mxu2 %v4298_v39  ;;  %v4299_v25 = vpack.c.bf16 %v4275_v22, %v4273_v27  ;;  %v5821_v13 = vpop.eup %5820  ;;  %v4212_v58 = vadd.f32 1.0, %v5819_v18 }
 0x8c3   : > { %5822 = vtanh.f32 %v4150_v38  ;;  %v4056_v5 = vmul.f32 %v4024_v41, %v8781_v36  ;;  %v4057_v17 = vmul.f32 %v4025_v50, %v8784_v6  ;;  %v4213_v43 = vadd.f32 1.0, %v5821_v13 }
 0x8c4   : > { %5824 = vtanh.f32 %v4151_v42  ;;  %4512 = vmatmul.bf16.gmra.mxu3 %v4299_v25  ;;  %v4244_v34 = vmul.f32 0.5, %v4212_v58 }
 0x8c5   : > { %v4088_v24 = vmul.f32 0.044715, %v4056_v5  ;;  %v4089_v21 = vmul.f32 0.044715, %v4057_v17  ;;  %v4245_v40 = vmul.f32 0.5, %v4213_v43 }
 0x8c6   : > { %v3942_v31 = vpop.f32.mrf.mxu0  ;;  %v3991_v26 = vpop.f32.mrf.mxu1  ;;  %v4276_v55 = vmul.f32 %v4244_v34, %v8751_v45 }
 0x8c7   : > { %v4120_v1 = vadd.f32 %v4088_v24, %v8781_v36  ;;  %v4121_v63 = vadd.f32 %v4089_v21, %v8784_v6  ;;  %v3943_v14 = vadd.f32 %v3942_v31, %v8551_v11  ;;  %v3992_v7 = vadd.f32 %v3991_v26, %v8553_v60 }
 0x8c8   : > { %v4277_v22 = vmul.f32 %v4245_v40, %v8754_v35 }
 0x8c9   : > { %v5823_v3 = vpop.eup %5822  ;;  %v4152_v37 = vmul.f32 0.7978846, %v4120_v1  ;;  %v4026_v20 = vmul.f32 %v3943_v14, %v3943_v14  ;;  %v4027_v8 = vmul.f32 %v3992_v7, %v3992_v7  ;;  %v4153_v54 = vmul.f32 0.7978846, %v4121_v63 }
 0x8ca   : > { %v5825_v16 = vpop.eup %5824  ;;  %v4214_v48 = vadd.f32 1.0, %v5823_v3 }
 0x8cb   : > { %v4058_v33 = vmul.f32 %v4026_v20, %v3943_v14  ;;  %v4059_v9 = vmul.f32 %v4027_v8, %v3992_v7  ;;  %v4215_v30 = vadd.f32 1.0, %v5825_v16  ;;  %5826 = vtanh.f32 %v4152_v37  ;;  %v8814_v16 = vld [vmem:[%s9028_s3] ss:$0 sm:$0xff] }
 0x8cc   : > { %v4246_v62 = vmul.f32 0.5, %v4214_v48  ;;  %5828 = vtanh.f32 %v4153_v54 }
 0x8cd   : > { %v4090_v53 = vmul.f32 0.044715, %v4058_v33  ;;  %v4091_v10 = vmul.f32 0.044715, %v4059_v9  ;;  %v4247_v61 = vmul.f32 0.5, %v4215_v30 }
 0x8ce   : > { %v4278_v29 = vmul.f32 %v4246_v62, %v8765_v23 }
 0x8cf   : > { %v4122_v39 = vadd.f32 %v4090_v53, %v3943_v14  ;;  %v4123_v27 = vadd.f32 %v4091_v10, %v3992_v7  ;;  %v4279_v38 = vmul.f32 %v4247_v61, %v8768_v0 }
 0x8d0   : > { %v4300_v42 = vpack.c.bf16 %v4278_v29, %v4276_v55 }
 0x8d1   : > { %v4154_v41 = vmul.f32 0.7978846, %v4122_v39  ;;  %v4155_v50 = vmul.f32 0.7978846, %v4123_v27  ;;  %v4301_v18 = vpack.c.bf16 %v4279_v38, %v4277_v22  ;;  %v5827_v25 = vpop.eup %5826 }
 0x8d2   : > { %4468 = vmatmul.bf16.gmra.mxu2 %v4300_v42  ;;  %v5829_v13 = vpop.eup %5828  ;;  %v4216_v5 = vadd.f32 1.0, %v5827_v25 }
 0x8d3   : > { %5830 = vtanh.f32 %v4154_v41  ;;  %v4217_v45 = vadd.f32 1.0, %v5829_v13 }
 0x8d4   : > { %5832 = vtanh.f32 %v4155_v50  ;;  %4517 = vmatmul.bf16.gmra.mxu3 %v4301_v18  ;;  %v4248_v21 = vmul.f32 0.5, %v4216_v5 }
 0x8d5   : > { %v4249_v35 = vmul.f32 0.5, %v4217_v45 }
 0x8d6   : > { %v4280_v58 = vmul.f32 %v4248_v21, %v8781_v36 }
 0x8d7   : > { %v4281_v1 = vmul.f32 %v4249_v35, %v8784_v6 }
 0x8d9   : > { %v5831_v17 = vpop.eup %5830 }
 0x8da   : > { %v5833_v23 = vpop.eup %5832  ;;  %v4218_v24 = vadd.f32 1.0, %v5831_v17 }
 0x8db   : > { %v4219_v31 = vadd.f32 1.0, %v5833_v23 }
 0x8dc   : > { %v4250_v26 = vmul.f32 0.5, %v4218_v24 }
 0x8dd   : > { %v4251_v0 = vmul.f32 0.5, %v4219_v31 }
 0x8de   : > { %v4282_v43 = vmul.f32 %v4250_v26, %v3943_v14 }
 0x8df   : > { %v4283_v63 = vmul.f32 %v4251_v0, %v3992_v7 }
 0x8e0   : > { %v4302_v3 = vpack.c.bf16 %v4282_v43, %v4280_v58 }
 0x8e1   : > { %v4303_v37 = vpack.c.bf16 %v4283_v63, %v4281_v1 }
 0x8e2   : > { %4473 = vmatmul.bf16.gmra.mxu2 %v4302_v3 }
 0x8e4   : > { %4522 = vmatmul.bf16.gmra.mxu3 %v4303_v37 }
 0x8f7   : > { %v8807_v20 = vpop.f32.mrf.mxu2 }
 0x8ff   : > { %v8809_v8 = vpop.f32.mrf.mxu2 }
 0x90a   : > { %v4454_v54 = vpop.f32.mrf.mxu2 }
 0x90b   : > { %v4455_v36 = vadd.f32 %v8814_v16, %v4454_v54  ;;  %v4503_v14 = vpop.f32.mrf.mxu3 }
 0x90d   : > { %v4504_v48 = vadd.f32 %v4503_v14, %v4455_v36 }
 0x90f   : > { %v4540_v6 = vadd.f32 %v4504_v48, %v8326_v59 }
 0x911   : > { %4556 = vst [vmem:[%s8820_s25 + $0x10] sm:$0xff] %v4540_v6 }
 0x912   : > { %v4456_v7 = vpop.f32.mrf.mxu2 }
 0x913   : > { %v4457_v34 = vadd.f32 %v8814_v16, %v4456_v7  ;;  %v4505_v33 = vpop.f32.mrf.mxu3 }
 0x915   : > { %v4506_v9 = vadd.f32 %v4505_v33, %v4457_v34 }
 0x916   : > { %v3945_v40 = vpop.f32.mrf.mxu0  ;;  %v3994_v62 = vpop.f32.mrf.mxu1 }
 0x917   : > { %v4541_v30 = vadd.f32 %v4506_v9, %v8333_v46  ;;  %v8826_v53 = vadd.f32 %v3945_v40, %v8551_v11  ;;  %v8829_v59 = vadd.f32 %v3994_v62, %v8553_v60 }
 0x919   : > { %4557 = vst [vmem:[%s8820_s25 + $0x18] sm:$0xff] %v4541_v30  ;;  %v4028_v10 = vmul.f32 %v8826_v53, %v8826_v53  ;;  %v4029_v61 = vmul.f32 %v8829_v59, %v8829_v59 }
 0x91b   : > { %v4060_v55 = vmul.f32 %v4028_v10, %v8826_v53  ;;  %v4061_v29 = vmul.f32 %v4029_v61, %v8829_v59 }
 0x91d   : > { %v4092_v46 = vmul.f32 0.044715, %v4060_v55  ;;  %v4093_v39 = vmul.f32 0.044715, %v4061_v29 }
 0x91e   : > { %v3947_v27 = vpop.f32.mrf.mxu0  ;;  %v3996_v22 = vpop.f32.mrf.mxu1 }
 0x91f   : > { %v4124_v38 = vadd.f32 %v4092_v46, %v8826_v53  ;;  %v4125_v42 = vadd.f32 %v4093_v39, %v8829_v59  ;;  %v3948_v41 = vadd.f32 %v3947_v27, %v8551_v11  ;;  %v3997_v50 = vadd.f32 %v3996_v22, %v8553_v60 }
 0x921   : > { %v4156_v18 = vmul.f32 0.7978846, %v4124_v38  ;;  %v4030_v25 = vmul.f32 %v3948_v41, %v3948_v41  ;;  %v4031_v13 = vmul.f32 %v3997_v50, %v3997_v50  ;;  %v4157_v5 = vmul.f32 0.7978846, %v4125_v42 }
 0x923   : > { %v4062_v45 = vmul.f32 %v4030_v25, %v3948_v41  ;;  %v4063_v17 = vmul.f32 %v4031_v13, %v3997_v50  ;;  %5834 = vtanh.f32 %v4156_v18 }
 0x924   : > { %5836 = vtanh.f32 %v4157_v5 }
 0x925   : > { %v4094_v23 = vmul.f32 0.044715, %v4062_v45  ;;  %v4095_v24 = vmul.f32 0.044715, %v4063_v17  ;;  %v4459_v21 = vpop.f32.mrf.mxu2 }
 0x926   : > { %v4460_v31 = vadd.f32 %v8814_v16, %v4459_v21  ;;  %v4508_v35 = vpop.f32.mrf.mxu3 }
 0x927   : > { %v4126_v26 = vadd.f32 %v4094_v23, %v3948_v41  ;;  %v4127_v0 = vadd.f32 %v4095_v24, %v3997_v50 }
 0x928   : > { %v4509_v58 = vadd.f32 %v4508_v35, %v4460_v31 }
 0x929   : > { %v4158_v43 = vmul.f32 0.7978846, %v4126_v26  ;;  %v4159_v1 = vmul.f32 0.7978846, %v4127_v0  ;;  %v5835_v3 = vpop.eup %5834 }
 0x92a   : > { %v4542_v63 = vadd.f32 %v4509_v58, %v8340_v57  ;;  %v5837_v37 = vpop.eup %5836  ;;  %v4220_v6 = vadd.f32 1.0, %v5835_v3  ;;  %v4450_v3 = vadd.f32 %v8814_v16, %v8807_v20  ;;  %v4452_v20 = vadd.f32 %v8814_v16, %v8809_v8 }
 0x92b   : > { %5838 = vtanh.f32 %v4158_v43  ;;  %v4221_v9 = vadd.f32 1.0, %v5837_v37 }
 0x92c   : > { %5840 = vtanh.f32 %v4159_v1  ;;  %4558 = vst [vmem:[%s8820_s25 + $0x20] sm:$0xff] %v4542_v63  ;;  %v4252_v29 = vmul.f32 0.5, %v4220_v6 }
 0x92d   : > { %v4461_v54 = vpop.f32.mrf.mxu2  ;;  %v4253_v38 = vmul.f32 0.5, %v4221_v9 }
 0x92e   : > { %v4462_v48 = vadd.f32 %v8814_v16, %v4461_v54  ;;  %v4510_v33 = vpop.f32.mrf.mxu3  ;;  %v4284_v45 = vmul.f32 %v4252_v29, %v8826_v53 }
 0x92f   : > { %v3950_v36 = vpop.f32.mrf.mxu0  ;;  %v3999_v14 = vpop.f32.mrf.mxu1  ;;  %v4285_v35 = vmul.f32 %v4253_v38, %v8829_v59 }
 0x930   : > { %v8847_v7 = vadd.f32 %v3950_v36, %v8551_v11  ;;  %v8850_v34 = vadd.f32 %v3999_v14, %v8553_v60  ;;  %v4511_v57 = vadd.f32 %v4510_v33, %v4462_v48 }
 0x931   : > { %v5839_v30 = vpop.eup %5838 }
 0x932   : > { %v4032_v40 = vmul.f32 %v8847_v7, %v8847_v7  ;;  %v4033_v62 = vmul.f32 %v8850_v34, %v8850_v34  ;;  %v5841_v10 = vpop.eup %5840  ;;  %v4543_v61 = vadd.f32 %v4511_v57, %v8355_v47  ;;  %v4222_v55 = vadd.f32 1.0, %v5839_v30 }
 0x933   : > { %v4223_v27 = vadd.f32 1.0, %v5841_v10 }
 0x934   : > { %v4064_v46 = vmul.f32 %v4032_v40, %v8847_v7  ;;  %v4065_v39 = vmul.f32 %v4033_v62, %v8850_v34  ;;  %4559 = vst [vmem:[%s8820_s25 + $0x28] sm:$0xff] %v4543_v61  ;;  %v4254_v22 = vmul.f32 0.5, %v4222_v55 }
 0x935   : > { %v4255_v25 = vmul.f32 0.5, %v4223_v27 }
 0x936   : > { %v4096_v42 = vmul.f32 0.044715, %v4064_v46  ;;  %v4097_v18 = vmul.f32 0.044715, %v4065_v39  ;;  %v4286_v17 = vmul.f32 %v4254_v22, %v3948_v41 }
 0x937   : > { %v3952_v13 = vpop.f32.mrf.mxu0  ;;  %v4001_v5 = vpop.f32.mrf.mxu1  ;;  %v4287_v26 = vmul.f32 %v4255_v25, %v3997_v50 }
 0x938   : > { %v4128_v47 = vadd.f32 %v4096_v42, %v8847_v7  ;;  %v4129_v23 = vadd.f32 %v4097_v18, %v8850_v34  ;;  %v3953_v24 = vadd.f32 %v3952_v13, %v8551_v11  ;;  %v4002_v21 = vadd.f32 %v4001_v5, %v8553_v60 }
 0x939   : > { %v4304_v31 = vpack.c.bf16 %v4286_v17, %v4284_v45  ;;  %v4305_v63 = vpack.c.bf16 %v4287_v26, %v4285_v35 }
 0x93a   : > { %v4160_v0 = vmul.f32 0.7978846, %v4128_v47  ;;  %v4034_v58 = vmul.f32 %v3953_v24, %v3953_v24  ;;  %v4035_v43 = vmul.f32 %v4002_v21, %v4002_v21  ;;  %v4161_v1 = vmul.f32 0.7978846, %v4129_v23 }
 0x93b   : > { %4478 = vmatmul.bf16.gmra.mxu2 %v4304_v31  ;;  %4527 = vmatmul.bf16.gmra.mxu3 %v4305_v63 }
 0x93c   : > { %v4066_v53 = vmul.f32 %v4034_v58, %v3953_v24  ;;  %v4067_v41 = vmul.f32 %v4035_v43, %v4002_v21  ;;  %5842 = vtanh.f32 %v4160_v0 }
 0x93d   : > { %5844 = vtanh.f32 %v4161_v1 }
 0x93e   : > { %v4098_v11 = vmul.f32 0.044715, %v4066_v53  ;;  %v4099_v60 = vmul.f32 0.044715, %v4067_v41 }
 0x93f   : > { %v4498_v37 = vpop.f32.mrf.mxu0 }
 0x940   : > { %v4130_v59 = vadd.f32 %v4098_v11, %v3953_v24  ;;  %v4131_v50 = vadd.f32 %v4099_v60, %v4002_v21  ;;  %v4499_v54 = vadd.f32 %v4498_v37, %v4450_v3 }
 0x942   : > { %v4162_v36 = vmul.f32 0.7978846, %v4130_v59  ;;  %v4163_v14 = vmul.f32 0.7978846, %v4131_v50  ;;  %v4538_v48 = vadd.f32 %v4499_v54, %v8312_v56  ;;  %v5843_v6 = vpop.eup %5842 }
 0x943   : > { %v5845_v33 = vpop.eup %5844  ;;  %v4224_v62 = vadd.f32 1.0, %v5843_v6 }
 0x944   : > { %5846 = vtanh.f32 %v4162_v36  ;;  %4554 = vst [vmem:[%s8820_s25] sm:$0xff] %v4538_v48  ;;  %v4225_v55 = vadd.f32 1.0, %v5845_v33 }
 0x945   : > { %5848 = vtanh.f32 %v4163_v14  ;;  %v4464_v57 = vpop.f32.mrf.mxu2  ;;  %v4256_v22 = vmul.f32 0.5, %v4224_v62 }
 0x946   : > { %v4465_v9 = vadd.f32 %v8814_v16, %v4464_v57  ;;  %v4257_v8 = vmul.f32 0.5, %v4225_v55 }
 0x947   : > { %v4500_v30 = vpop.f32.mrf.mxu0  ;;  %v4513_v40 = vpop.f32.mrf.mxu3  ;;  %v4288_v45 = vmul.f32 %v4256_v22, %v8847_v7 }
 0x948   : > { %v4501_v10 = vadd.f32 %v4500_v30, %v4452_v20  ;;  %v4514_v61 = vadd.f32 %v4513_v40, %v4465_v9 }
 0x94a   : > { %v5847_v56 = vpop.eup %5846  ;;  %v4539_v29 = vadd.f32 %v4501_v10, %v8319_v2  ;;  %v4544_v46 = vadd.f32 %v4514_v61, %v8370_v51  ;;  %v4289_v51 = vmul.f32 %v4257_v8, %v8850_v34 }
 0x94b   : > { %v5849_v39 = vpop.eup %5848  ;;  %v4226_v27 = vadd.f32 1.0, %v5847_v56 }
 0x94c   : > { %4555 = vst [vmem:[%s8820_s25 + $0x8] sm:$0xff] %v4539_v29  ;;  %v4227_v38 = vadd.f32 1.0, %v5849_v39 }
 0x94d   : > { %4560 = vst [vmem:[%s8820_s25 + $0x30] sm:$0xff] %v4544_v46  ;;  %v4466_v42 = vpop.f32.mrf.mxu2  ;;  %v4258_v18 = vmul.f32 0.5, %v4226_v27 }
 0x94e   : > { %v4467_v25 = vadd.f32 %v8814_v16, %v4466_v42  ;;  %v4259_v13 = vmul.f32 0.5, %v4227_v38 }
 0x94f   : > { %v4515_v5 = vpop.f32.mrf.mxu3  ;;  %v4290_v2 = vmul.f32 %v4258_v18, %v3953_v24 }
 0x950   : > { %v4516_v17 = vadd.f32 %v4515_v5, %v4467_v25  ;;  %v4291_v47 = vmul.f32 %v4259_v13, %v4002_v21 }
 0x951   : > { %v4306_v23 = vpack.c.bf16 %v4290_v2, %v4288_v45 }
 0x952   : > { %v4545_v31 = vadd.f32 %v4516_v17, %v8377_v4  ;;  %v4307_v35 = vpack.c.bf16 %v4291_v47, %v4289_v51 }
 0x953   : > { %4483 = vmatmul.bf16.gmra.mxu2 %v4306_v23 }
 0x954   : > { %4561 = vst [vmem:[%s8820_s25 + $0x38] sm:$0xff] %v4545_v31  ;;  %4532 = vmatmul.bf16.gmra.mxu3 %v4307_v35 }
 0x955   : > { %v4469_v26 = vpop.f32.mrf.mxu2 }
 0x956   : > { %v4470_v0 = vadd.f32 %v8814_v16, %v4469_v26 }
 0x957   : > { %v4518_v58 = vpop.f32.mrf.mxu3 }
 0x958   : > { %v4519_v7 = vadd.f32 %v4518_v58, %v4470_v0 }
 0x95a   : > { %v4546_v24 = vadd.f32 %v4519_v7, %v8384_v28 }
 0x95c   : > { %4562 = vst [vmem:[%s8820_s25 + $0x40] sm:$0xff] %v4546_v24 }
 0x95d   : > { %v4471_v43 = vpop.f32.mrf.mxu2 }
 0x95e   : > { %v4472_v34 = vadd.f32 %v8814_v16, %v4471_v43 }
 0x95f   : > { %v4520_v21 = vpop.f32.mrf.mxu3 }
 0x960   : > { %v4521_v4 = vadd.f32 %v4520_v21, %v4472_v34 }
 0x962   : > { %v4547_v1 = vadd.f32 %v4521_v4, %v8391_v12 }
 0x964   : > { %4563 = vst [vmem:[%s8820_s25 + $0x48] sm:$0xff] %v4547_v1 }
 0x965   : > { %v4474_v63 = vpop.f32.mrf.mxu2 }
 0x966   : > { %v4475_v53 = vadd.f32 %v8814_v16, %v4474_v63 }
 0x967   : > { %v4523_v41 = vpop.f32.mrf.mxu3 }
 0x968   : > { %v4524_v3 = vadd.f32 %v4523_v41, %v4475_v53 }
 0x96a   : > { %v4548_v11 = vadd.f32 %v4524_v3, %v8398_v44 }
 0x96c   : > { %4564 = vst [vmem:[%s8820_s25 + $0x50] sm:$0xff] %v4548_v11 }
 0x96d   : > { %v4476_v28 = vpop.f32.mrf.mxu2 }
 0x96e   : > { %v4477_v60 = vadd.f32 %v8814_v16, %v4476_v28 }
 0x96f   : > { %v4525_v37 = vpop.f32.mrf.mxu3 }
 0x970   : > { %v4526_v59 = vadd.f32 %v4525_v37, %v4477_v60 }
 0x972   : > { %v4549_v50 = vadd.f32 %v4526_v59, %v8405_v15 }
 0x974   : > { %4565 = vst [vmem:[%s8820_s25 + $0x58] sm:$0xff] %v4549_v50 }
 0x9be   : > { %v4479_v12 = vpop.f32.mrf.mxu2  ;;  %v4528_v36 = vpop.f32.mrf.mxu3 }
 0x9bf   : > { %v4480_v54 = vadd.f32 %v8814_v16, %v4479_v12 }
 0x9c1   : > { %v4529_v14 = vadd.f32 %v4528_v36, %v4480_v54 }
 0x9c3   : > { %v4550_v48 = vadd.f32 %v4529_v14, %v8461_v19 }
 0x9c5   : > { %4566 = vst [vmem:[%s8820_s25 + $0x60] sm:$0xff] %v4550_v48 }
 0x9c6   : > { %v4481_v44 = vpop.f32.mrf.mxu2  ;;  %v4530_v33 = vpop.f32.mrf.mxu3 }
 0x9c7   : > { %v4482_v6 = vadd.f32 %v8814_v16, %v4481_v44 }
 0x9c9   : > { %v4531_v57 = vadd.f32 %v4530_v33, %v4482_v6 }
 0x9cb   : > { %v4551_v20 = vadd.f32 %v4531_v57, %v8478_v52 }
 0x9cd   : > { %4567 = vst [vmem:[%s8820_s25 + $0x68] sm:$0xff] %v4551_v20 }
 0x9d6   : > { %v4484_v15 = vpop.f32.mrf.mxu2 }
 0x9d7   : > { %v4485_v9 = vadd.f32 %v8814_v16, %v4484_v15  ;;  %v4533_v30 = vpop.f32.mrf.mxu3 }
 0x9d9   : > { %v4534_v40 = vadd.f32 %v4533_v30, %v4485_v9 }
 0x9db   : > { %v4552_v19 = vadd.f32 %v4534_v40, %v8500_v49 }
 0x9dd   : > { %4568 = vst [vmem:[%s8820_s25 + $0x70] sm:$0xff] %v4552_v19 }
 0x9de   : > { %v4486_v62 = vpop.f32.mrf.mxu2 }
 0x9df   : > { %v4487_v52 = vadd.f32 %v8814_v16, %v4486_v62  ;;  %v4535_v10 = vpop.f32.mrf.mxu3 }
 0x9e1   : > { %v4536_v61 = vadd.f32 %v4535_v10, %v4487_v52 }
 0x9e3   : > { %v4553_v55 = vadd.f32 %v4536_v61, %v8518_v32 }
 0x9e5   : > { %4569 = vst [vmem:[%s8820_s25 + $0x78] sm:$0xff] %v4553_v55 }
 0x9e6   : > { %6136 = shalt.err (!%p6133_p8)
}
 0x9e7   : > { %s6213_s4 = smov 128   ;;  %s6214_s14 = smov 8  }
 0x9e8   : > { %5238 = dma.vmem_to_hbm [thread:$0]  (%p6392_p5), %s4584_s2, 2048, %s4586_s23, %s4571_s20, %s6213_s4, %s6213_s4, %s6214_s14  }
 0x9e9 PF: > { %s4600_s18 = sand.u32 1, %s6183_s29   ;;  %p9030_p10 = scmp.ge.s32.totalorder %s6195_s16, 2 }
 0x9ea   : > { %s4601_s12 = scalar_lea.sflag [#allocation5], %s4600_s18 }
 0x9eb   : > { %p5267_p13 = pnand %p9030_p10, %p6396_p6 }
 0x9ed   : > { %p5268_p11 = pneg %p5267_p13 }
 0x9ef   : > { %6178 = dma.done.wait (%p5268_p11), %s4601_s12, 2048  }
 0x9f0   : > { %6180 = vsyncadd (%p5268_p11), %s4601_s12, 4294965248  ;;  %s9031_s16 = sld [smem:[#allocation26_spill]]  ;;  %s9034_s29 = smov %s6187_s30 }
 0x9f1   : > { %s9032_s3 = sld [smem:[#allocation25_spill]] }
 0x9f2   : > { %s9033_s15 = sld [smem:[#allocation27_spill]] }
 0x9f6   : > { %p33_p0 = scmp.ge.s32.totalorder %s9031_s16, 4  }
 0x9f7   : > { %s9035_s30 = smov %s9032_s3 }
 0x9f8   :  { %35 = sbr.rel (!%p33_p0) target bundleno = 21 (0x15), region = 158 }
 0x9fd   :  { %4607 = vsyncpa [#allocation4], 1 }
 0x9fe   :  { %4609 = vsyncpa [#allocation4 + $0x1], 1 }
 0x9ff   :  { %4610 = vsyncpa [#allocation7], 1 }
 0xa00   :  { %4612 = vsyncpa [#allocation7 + $0x1], 1 }
 0xa01   :  { %4613 = vsyncpa [#allocation10], 1 }
 0xa02   :  { %4614 = vsyncpa [#allocation13], 1 }
 0xa03   :  { %4615 = vsyncpa [#allocation16], 1 }
 0xa04   :  { %4616 = vsyncpa [#allocation5], 1 }
 0xa05   :  { %4618 = vsyncpa [#allocation5 + $0x1], 1 }

</bundles_post_ra>
